<compile_context>
chip_gen: v7x
topology: tpu7x:2x2x1
jax: 0.10.0
libtpu: 0.0.40
codegen_flags: <defaults>
</compile_context>

<pallas_src>
import jax
import jax.numpy as jnp
from jax import lax
from jax.experimental import pallas as pl
from jax.experimental.pallas import tpu as pltpu

N = 256  # small, lane-aligned stand-in for the module's 3x3 shapes


def model_kernel(x1_ref, inp_ref, x3_ref, x4_ref, z3_ref, z4_ref):
    # x1_ref:  (N, N) f32
    # inp_ref: (N, N) f32  -- single copy, used by both the matmul and z2
    # x3_ref / x4_ref: (1, N) f32 -- broadcast over rows (torch trailing-dim rule)

    # z1 = x1 @ inp : f32 MXU matmul (full precision), matching torch.mm numerics.
    z1 = jnp.dot(x1_ref[...], inp_ref[...],
                 preferred_element_type=jnp.float32,
                 precision=lax.Precision.HIGHEST)

    x4 = x4_ref[...]
    # z3 = z1 + x4 -- store immediately (shortest live range for this consumer).
    z3_ref[...] = z1 + x4

    x3 = x3_ref[...]
    # z4 = z1 * z2 + x4 + x3  with  z2 = x3 * (x4 + inp)  fused in-place
    # (no materialized full-tile z2 temporary).
    z4_ref[...] = z1 * (x3 * (x4 + inp_ref[...])) + (x4 + x3)


def model_forward(x1, x2, x3, x4, inp):
    del x2  # x2 is unused in the torch module's forward
    n = x1.shape[0]

    x3_2d = x3.reshape(1, n)
    x4_2d = x4.reshape(1, n)

    full_spec = pl.BlockSpec((n, n), lambda i: (0, 0))
    vec_spec = pl.BlockSpec((1, n), lambda i: (0, 0))

    z3, z4 = pl.pallas_call(
        model_kernel,
        out_shape=(jax.ShapeDtypeStruct((n, n), jnp.float32),
                   jax.ShapeDtypeStruct((n, n), jnp.float32)),
        grid=(1,),  # single step: whole problem fits VMEM comfortably
        in_specs=[full_spec, full_spec, vec_spec, vec_spec],
        out_specs=(full_spec, full_spec),
        compiler_params=pltpu.CompilerParams(
            dimension_semantics=("arbitrary",)),
    )(x1, inp, x3_2d, x4_2d)
    return z3, z4


if __name__ == "__main__":
    key = jax.random.PRNGKey(0)
    k1, k2, k3, k4, k5 = jax.random.split(key, 5)
    x1 = jax.random.normal(k1, (N, N), dtype=jnp.float32)
    x2 = jax.random.normal(k2, (N, N), dtype=jnp.float32)  # unused, mirrors torch API
    x3 = jax.random.normal(k3, (N,), dtype=jnp.float32)
    x4 = jax.random.normal(k4, (N,), dtype=jnp.float32)
    inp = jax.random.normal(k5, (N, N), dtype=jnp.float32)

    z3, z4 = model_forward(x1, x2, x3, x4, inp)
    jax.block_until_ready((z3, z4))

    # Full-f32 reference, same op grouping as the kernel.
    z1_ref = jnp.dot(x1, inp, precision=jax.lax.Precision.HIGHEST)
    z2_ref = x3 * (x4 + inp)
    z3_ref = z1_ref + x4
    z4_ref = z1_ref * z2_ref + x4 + x3
    assert jnp.allclose(z3, z3_ref, atol=1e-3, rtol=1e-3)
    assert jnp.allclose(z4, z4_ref, atol=1e-3, rtol=1e-3)

    print("KERNEL_OK")
</pallas_src>

<mosaic_0001>
module attributes {stable_mosaic.version = 11 : i64} {
  func.func @model_kernel(%arg0: i32, %arg1: memref<256x256xf32, #tpu.memory_space<vmem>>, %arg2: memref<256x256xf32, #tpu.memory_space<vmem>>, %arg3: memref<1x256xf32, #tpu.memory_space<vmem>>, %arg4: memref<1x256xf32, #tpu.memory_space<vmem>>, %arg5: memref<256x256xf32, #tpu.memory_space<vmem>>, %arg6: memref<256x256xf32, #tpu.memory_space<vmem>>) attributes {dimension_semantics = [#tpu.dimension_semantics<arbitrary>], iteration_bounds = array<i64: 1>, scalar_prefetch = 0 : i64, scratch_operands = 0 : i64, tpu.core_type = #tpu.core_type<tc>, window_params = [{pipeline_mode = #tpu.pipeline_mode<synchronous>, transform_indices = @transform_0, window_bounds = array<i64: 256, 256>}, {pipeline_mode = #tpu.pipeline_mode<synchronous>, transform_indices = @transform_1, window_bounds = array<i64: 256, 256>}, {pipeline_mode = #tpu.pipeline_mode<synchronous>, transform_indices = @transform_2, window_bounds = array<i64: 1, 256>}, {pipeline_mode = #tpu.pipeline_mode<synchronous>, transform_indices = @transform_3, window_bounds = array<i64: 1, 256>}, {pipeline_mode = #tpu.pipeline_mode<synchronous>, transform_indices = @transform_4, window_bounds = array<i64: 256, 256>}, {pipeline_mode = #tpu.pipeline_mode<synchronous>, transform_indices = @transform_5, window_bounds = array<i64: 256, 256>}]} {
    %c0 = arith.constant 0 : index
    %c0_0 = arith.constant 0 : index
    %0 = vector.load %arg1[%c0, %c0_0] : memref<256x256xf32, #tpu.memory_space<vmem>>, vector<256x256xf32>
    %c0_1 = arith.constant 0 : index
    %c0_2 = arith.constant 0 : index
    %1 = vector.load %arg2[%c0_1, %c0_2] : memref<256x256xf32, #tpu.memory_space<vmem>>, vector<256x256xf32>
    %cst = arith.constant dense<0.000000e+00> : vector<256x256xf32>
    %2 = tpu.matmul %0, %1, %cst {dimension_numbers = #tpu.dot_dimension_numbers<[1], [0], [0], [1], [0, 0, 1, 1], [], []>, precision = #tpu.contract_precision<fp32>} : vector<256x256xf32>, vector<256x256xf32>, vector<256x256xf32> -> vector<256x256xf32>
    %c0_3 = arith.constant 0 : index
    %c0_4 = arith.constant 0 : index
    %3 = vector.load %arg4[%c0_3, %c0_4] : memref<1x256xf32, #tpu.memory_space<vmem>>, vector<1x256xf32>
    %4 = vector.broadcast %3 : vector<1x256xf32> to vector<256x256xf32>
    %5 = arith.addf %2, %4 : vector<256x256xf32>
    %c0_5 = arith.constant 0 : index
    %c0_6 = arith.constant 0 : index
    %6 = vector.load %arg5[%c0_5, %c0_6] : memref<256x256xf32, #tpu.memory_space<vmem>>, vector<256x256xf32>
    tpu.vector_store %arg5[%c0_5, %c0_6], %5 {strides = array<i32>} : memref<256x256xf32, #tpu.memory_space<vmem>>, vector<256x256xf32>,
    %c0_7 = arith.constant 0 : index
    %c0_8 = arith.constant 0 : index
    %7 = vector.load %arg3[%c0_7, %c0_8] : memref<1x256xf32, #tpu.memory_space<vmem>>, vector<1x256xf32>
    %c0_9 = arith.constant 0 : index
    %c0_10 = arith.constant 0 : index
    %8 = vector.load %arg2[%c0_9, %c0_10] : memref<256x256xf32, #tpu.memory_space<vmem>>, vector<256x256xf32>
    %9 = vector.broadcast %3 : vector<1x256xf32> to vector<256x256xf32>
    %10 = arith.addf %9, %8 : vector<256x256xf32>
    %11 = vector.broadcast %7 : vector<1x256xf32> to vector<256x256xf32>
    %12 = arith.mulf %11, %10 : vector<256x256xf32>
    %13 = arith.mulf %2, %12 : vector<256x256xf32>
    %14 = arith.addf %3, %7 : vector<1x256xf32>
    %15 = vector.broadcast %14 : vector<1x256xf32> to vector<256x256xf32>
    %16 = arith.addf %13, %15 : vector<256x256xf32>
    %c0_11 = arith.constant 0 : index
    %c0_12 = arith.constant 0 : index
    %17 = vector.load %arg6[%c0_11, %c0_12] : memref<256x256xf32, #tpu.memory_space<vmem>>, vector<256x256xf32>
    tpu.vector_store %arg6[%c0_11, %c0_12], %16 {strides = array<i32>} : memref<256x256xf32, #tpu.memory_space<vmem>>, vector<256x256xf32>,
    return
  }
  func.func @transform_0(%arg0: i32) -> (i32, i32) {
    %c0_i32 = arith.constant 0 : i32
    %c0_i32_0 = arith.constant 0 : i32
    %c0_i32_1 = arith.constant 0 : i32
    return %c0_i32, %c0_i32_0 : i32, i32
  }
  func.func @transform_1(%arg0: i32) -> (i32, i32) {
    %c0_i32 = arith.constant 0 : i32
    %c0_i32_0 = arith.constant 0 : i32
    %c0_i32_1 = arith.constant 0 : i32
    return %c0_i32, %c0_i32_0 : i32, i32
  }
  func.func @transform_2(%arg0: i32) -> (i32, i32) {
    %c0_i32 = arith.constant 0 : i32
    %c0_i32_0 = arith.constant 0 : i32
    %c0_i32_1 = arith.constant 0 : i32
    return %c0_i32, %c0_i32_0 : i32, i32
  }
  func.func @transform_3(%arg0: i32) -> (i32, i32) {
    %c0_i32 = arith.constant 0 : i32
    %c0_i32_0 = arith.constant 0 : i32
    %c0_i32_1 = arith.constant 0 : i32
    return %c0_i32, %c0_i32_0 : i32, i32
  }
  func.func @transform_4(%arg0: i32) -> (i32, i32) {
    %c0_i32 = arith.constant 0 : i32
    %c0_i32_0 = arith.constant 0 : i32
    %c0_i32_1 = arith.constant 0 : i32
    return %c0_i32, %c0_i32_0 : i32, i32
  }
  func.func @transform_5(%arg0: i32) -> (i32, i32) {
    %c0_i32 = arith.constant 0 : i32
    %c0_i32_0 = arith.constant 0 : i32
    %c0_i32_1 = arith.constant 0 : i32
    return %c0_i32, %c0_i32_0 : i32, i32
  }
}

</mosaic_0001>

<bundles_post_ra>
// kernel: tpu_custom_call.1
= control target key start
LH: loop header
LB: loop body
LE: loop exit
PB: predicated region body
PF: predicated region fallthrough
CT: control target
= control target key end

     0   :  { %11 = vsyncpa [#allocation3], 0  ;;  %s6756_s0 = inlined_call_operand.hbm [shape: f32[256,256], index: 0, kind: input, shape index: {}]   ;;  %s6757_s1 = inlined_call_operand.hbm [shape: f32[256,256], index: 1, kind: input, shape index: {}]   ;;  %s6758_s2 = inlined_call_operand.vmem [shape: f32[1,256], index: 2, kind: input, shape index: {}]   ;;  %s6759_s3 = inlined_call_operand.vmem [shape: f32[1,256], index: 3, kind: input, shape index: {}]   ;;  %s6760_s4 = inlined_call_operand.hbm [shape: f32[256,256], index: 4, kind: output, shape index: {0}]   ;;  %s6761_s5 = inlined_call_operand.hbm [shape: f32[256,256], index: 5, kind: output, shape index: {1}]  }
   0x1   :  { %12 = vsyncpa [#allocation6], 0 }
   0x2   :  { %13 = vsyncpa [#allocation4], 0 }
   0x3   :  { %14 = vsyncpa [#allocation9], 0  ;;  %s4771_s18 = smov [#allocation2]   ;;  %s4675_s22 = scalar_lea.hbm %s6756_s0, 8192 }
   0x4   :  { %s20_s19 = sshll.u32 %s4771_s18, 4  ;;  %p4676_p0 = scmp.ne.s32.totalorder %s6756_s0, %s4675_s22  ;;  %s21_s19 = int_to_ptr.vmem [resolvable:$true] %s20_s19 }
   0x5   :  { %p4679_p1 = scmp.lt.u32.totalorder %s4675_s22, %s6756_s0 }
   0x7   :  { %p4681_p2 = pnand %p4679_p1, %p4676_p0 }
   0x9   :  { %4684 = shalt.err (!%p4681_p2)
}
   0xa   :  { %s4685_s27 = scalar_lea.vmem %s21_s19, 8192  ;;  %p4690_p4 = scmp.lt.s32.totalorder %s21_s19, %s21_s19 }
   0xb   :  { %p4686_p3 = scmp.ne.s32.totalorder %s21_s19, %s4685_s27  ;;  %p4691_p5 = scmp.lt.s32.totalorder %s4685_s27, %s4685_s27 }
   0xd   :  { %p4692_p6 = por %p4691_p5, %p4690_p4 }
   0xf   :  { %p4693_p7 = pnand %p4692_p6, %p4686_p3 }
  0x11   :  { %4696 = shalt.err (!%p4693_p7)
}
  0x12   :  { %s4772_s28 = smov 256   ;;  %s4773_s29 = smov 16  }
  0x13   :  { %26 = dma.hbm_to_vmem [thread:$0]  %s6756_s0, 8192, %s21_s19, [#allocation3], %s4772_s28, %s4772_s28, %s4773_s29  }
  0x14   :  { %s4774_s7 = smov [#allocation5]   ;;  %s4697_s11 = scalar_lea.hbm %s6757_s1, 8192 }
  0x15   :  { %s32_s8 = sshll.u32 %s4774_s7, 4  ;;  %p4698_p8 = scmp.ne.s32.totalorder %s6757_s1, %s4697_s11  ;;  %s33_s8 = int_to_ptr.vmem [resolvable:$true] %s32_s8 }
  0x16   :  { %p4701_p9 = scmp.lt.u32.totalorder %s4697_s11, %s6757_s1 }
  0x18   :  { %p4703_p10 = pnand %p4701_p9, %p4698_p8 }
  0x1a   :  { %4706 = shalt.err (!%p4703_p10)
}
  0x1b   :  { %s4707_s16 = scalar_lea.vmem %s33_s8, 8192  ;;  %p4712_p12 = scmp.lt.s32.totalorder %s33_s8, %s33_s8 }
  0x1c   :  { %p4708_p11 = scmp.ne.s32.totalorder %s33_s8, %s4707_s16  ;;  %p4713_p13 = scmp.lt.s32.totalorder %s4707_s16, %s4707_s16 }
  0x1e   :  { %p4714_p0 = por %p4713_p13, %p4712_p12 }
  0x20   :  { %p4715_p1 = pnand %p4714_p0, %p4708_p11 }
  0x22   :  { %4718 = shalt.err (!%p4715_p1)
}
  0x23   :  { %38 = dma.hbm_to_vmem [thread:$0]  %s6757_s1, 8192, %s33_s8, [#allocation6], %s4772_s28, %s4772_s28, %s4773_s29  }
  0x24   :  { %4763 = dma.done.wait [#allocation3], 8192  }
  0x25   :  { %4764 = vsyncadd [#allocation3], 4294959104 }
  0x26   :  { %4765 = dma.done.wait [#allocation6], 8192  }
  0x27   :  { %4766 = vsyncadd [#allocation6], 4294959104  ;;  %v114_v0 = vld [vmem:[#allocation5 + $0x8] sm:$0xff]  ;;  %v116_v1 = vld [vmem:[#allocation5 + $0x18] sm:$0xff]  ;;  %s4776_s21 = smov [#allocation8]  }
  0x28   :  { %v113_v2 = vld [vmem:[#allocation5] sm:$0xff]  ;;  %v177_v3 = vand.u32 4294901760, %v114_v0  ;;  %v181_v4 = vand.u32 4294901760, %v116_v1  ;;  %v115_v5 = vld [vmem:[#allocation5 + $0x10] sm:$0xff]  ;;  %v118_v7 = vld [vmem:[#allocation5 + $0x28] sm:$0xff]  ;;  %s3948_s22 = sshll.u32 %s4776_s21, 4  ;;  %s6719_s22 = int_to_ptr.vmem [resolvable:$true] %s3948_s22 }
  0x29   :  { %v179_v6 = vand.u32 4294901760, %v113_v2  ;;  %v120_v8 = vld [vmem:[#allocation5 + $0x38] sm:$0xff]  ;;  %v183_v9 = vand.u32 4294901760, %v115_v5  ;;  %v185_v10 = vand.u32 4294901760, %v118_v7  ;;  %v117_v12 = vld [vmem:[#allocation5 + $0x20] sm:$0xff]  ;;  %v119_v13 = vld [vmem:[#allocation5 + $0x30] sm:$0xff] }
  0x2a   :  { %v189_v11 = vand.u32 4294901760, %v120_v8  ;;  %v122_v14 = vld [vmem:[#allocation5 + $0x48] sm:$0xff]  ;;  %v4837_v15 = vpack.c.bf16 %v181_v4, %v177_v3  ;;  %v4839_v16 = vsub.f32 %v114_v0, %v177_v3  ;;  %v4841_v17 = vsub.f32 %v116_v1, %v181_v4  ;;  %v124_v19 = vld [vmem:[#allocation5 + $0x58] sm:$0xff]  ;;  %v121_v20 = vld [vmem:[#allocation5 + $0x40] sm:$0xff] }
  0x2b   :  { %v4843_v18 = vsub.f32 %v113_v2, %v179_v6  ;;  %v123_v21 = vld [vmem:[#allocation5 + $0x50] sm:$0xff]  ;;  %v4845_v22 = vpack.c.bf16 %v183_v9, %v179_v6  ;;  %v4847_v23 = vsub.f32 %v115_v5, %v183_v9  ;;  %v4851_v25 = vsub.f32 %v118_v7, %v185_v10  ;;  %v126_v26 = vld [vmem:[#allocation5 + $0x68] sm:$0xff]  ;;  %v128_v27 = vld [vmem:[#allocation5 + $0x78] sm:$0xff] }
  0x2c   :  { %7090 = vst [vmem:[#allocation14_spill] sm:$0xff] %v4837_v15  ;;  %7091 = vst [vmem:[#allocation15_spill] sm:$0xff] %v4839_v16  ;;  %v4849_v24 = vpack.c.bf16 %v189_v11, %v185_v10  ;;  %3966 = vmatprep.subr.bf16.mxu1 %v4837_v15  ;;  %4158 = vmatprep.subr.bf16.mxu0 %v4837_v15  ;;  %v4855_v28 = vsub.f32 %v120_v8, %v189_v11  ;;  %v187_v29 = vand.u32 4294901760, %v117_v12  ;;  %v125_v36 = vld [vmem:[#allocation5 + $0x60] sm:$0xff]  ;;  %v127_v41 = vld [vmem:[#allocation5 + $0x70] sm:$0xff] }
  0x2d   :  { %7092 = vst [vmem:[#allocation16_spill] sm:$0xff] %v4841_v17  ;;  %7093 = vst [vmem:[#allocation17_spill] sm:$0xff] %v4843_v18  ;;  %v191_v30 = vand.u32 4294901760, %v119_v13  ;;  %v193_v31 = vand.u32 4294901760, %v122_v14  ;;  %3968 = vmatpush1.bf16.msra.mxu1 %v4845_v22  ;;  %4160 = vmatpush1.bf16.msra.mxu0 %v4845_v22  ;;  %v197_v32 = vand.u32 4294901760, %v124_v19  ;;  %v195_v33 = vand.u32 4294901760, %v121_v20 }
  0x2e   :  { %7094 = vst [vmem:[#allocation18_spill] sm:$0xff] %v4845_v22  ;;  %7095 = vst [vmem:[#allocation19_spill] sm:$0xff] %v4847_v23  ;;  %v199_v34 = vand.u32 4294901760, %v123_v21  ;;  %v201_v35 = vand.u32 4294901760, %v126_v26  ;;  %3970 = vmatprep.subr.bf16.mxu1 %v4849_v24  ;;  %4162 = vmatprep.subr.bf16.mxu0 %v4849_v24  ;;  %v4863_v38 = vsub.f32 %v117_v12, %v187_v29  ;;  %v205_v40 = vand.u32 4294901760, %v128_v27  ;;  %v130_v42 = vld [vmem:[#allocation5 + $0x88] sm:$0xff] }
  0x2f   :  { %7096 = vst [vmem:[#allocation20_spill] sm:$0xff] %v4849_v24  ;;  %7097 = vst [vmem:[#allocation21_spill] sm:$0xff] %v4851_v25  ;;  %v4861_v37 = vpack.c.bf16 %v191_v30, %v187_v29  ;;  %v4865_v39 = vsub.f32 %v119_v13, %v191_v30  ;;  %v132_v43 = vld [vmem:[#allocation5 + $0x98] sm:$0xff]  ;;  %v4867_v44 = vpack.c.bf16 %v197_v32, %v193_v31  ;;  %v129_v48 = vld [vmem:[#allocation5 + $0x80] sm:$0xff]  ;;  %v203_v56 = vand.u32 4294901760, %v125_v36 }
  0x30   :  { %7098 = vst [vmem:[#allocation22_spill] sm:$0xff] %v4855_v28  ;;  %7100 = vst [vmem:[#allocation24_spill] sm:$0xff] %v4863_v38  ;;  %v4869_v45 = vsub.f32 %v122_v14, %v193_v31  ;;  %v4871_v46 = vsub.f32 %v124_v19, %v197_v32  ;;  %v4873_v47 = vpack.c.bf16 %v199_v34, %v195_v33  ;;  %v131_v49 = vld [vmem:[#allocation5 + $0x90] sm:$0xff]  ;;  %v134_v50 = vld [vmem:[#allocation5 + $0xa8] sm:$0xff]  ;;  %v207_v57 = vand.u32 4294901760, %v127_v41 }
  0x31   :  { %7099 = vst [vmem:[#allocation23_spill] sm:$0xff] %v4861_v37  ;;  %7101 = vst [vmem:[#allocation25_spill] sm:$0xff] %v4865_v39  ;;  %v4875_v51 = vsub.f32 %v121_v20, %v195_v33  ;;  %v4877_v52 = vsub.f32 %v123_v21, %v199_v34  ;;  %v4879_v53 = vpack.c.bf16 %v205_v40, %v201_v35  ;;  %3972 = vmatpush1.bf16.msra.mxu1 %v4861_v37  ;;  %v136_v59 = vld [vmem:[#allocation5 + $0xb8] sm:$0xff]  ;;  %v133_v0 = vld [vmem:[#allocation5 + $0xa0] sm:$0xff] }
  0x32   :  { %7102 = vst [vmem:[#allocation26_spill] sm:$0xff] %v4867_v44  ;;  %7103 = vst [vmem:[#allocation27_spill] sm:$0xff] %v4869_v45  ;;  %v4881_v54 = vsub.f32 %v126_v26, %v201_v35  ;;  %4164 = vmatpush1.bf16.msra.mxu0 %v4861_v37  ;;  %v4885_v55 = vsub.f32 %v128_v27, %v205_v40  ;;  %v209_v58 = vand.u32 4294901760, %v130_v42  ;;  %3974 = vmatprep.subr.bf16.mxu1 %v4867_v44  ;;  %v135_v1 = vld [vmem:[#allocation5 + $0xb0] sm:$0xff]  ;;  %v138_v6 = vld [vmem:[#allocation5 + $0xc8] sm:$0xff] }
  0x33   :  { %7104 = vst [vmem:[#allocation28_spill] sm:$0xff] %v4871_v46  ;;  %7105 = vst [vmem:[#allocation29_spill] sm:$0xff] %v4873_v47  ;;  %4166 = vmatprep.subr.bf16.mxu0 %v4867_v44  ;;  %v213_v60 = vand.u32 4294901760, %v132_v43  ;;  %v211_v61 = vand.u32 4294901760, %v129_v48  ;;  %v215_v62 = vand.u32 4294901760, %v131_v49  ;;  %v217_v63 = vand.u32 4294901760, %v134_v50 }
  0x34   :  { %7106 = vst [vmem:[#allocation30_spill] sm:$0xff] %v4875_v51  ;;  %7107 = vst [vmem:[#allocation31_spill] sm:$0xff] %v4879_v53  ;;  %v4889_v2 = vpack.c.bf16 %v207_v57, %v203_v56  ;;  %v4891_v3 = vsub.f32 %v125_v36, %v203_v56  ;;  %v4893_v4 = vsub.f32 %v127_v41, %v207_v57  ;;  %v140_v7 = vld [vmem:[#allocation5 + $0xd8] sm:$0xff]  ;;  %v137_v8 = vld [vmem:[#allocation5 + $0xc0] sm:$0xff]  ;;  %v221_v19 = vand.u32 4294901760, %v136_v59 }
  0x35   :  { %v4895_v5 = vsub.f32 %v130_v42, %v209_v58  ;;  %v4897_v9 = vpack.c.bf16 %v213_v60, %v209_v58  ;;  %v4899_v10 = vsub.f32 %v132_v43, %v213_v60  ;;  %v4901_v11 = vpack.c.bf16 %v215_v62, %v211_v61  ;;  %v139_v13 = vld [vmem:[#allocation5 + $0xd0] sm:$0xff]  ;;  %3976 = vmatpush1.bf16.msra.mxu1 %v4873_v47  ;;  %v142_v31 = vld [vmem:[#allocation5 + $0xe8] sm:$0xff]  ;;  %v144_v36 = vld [vmem:[#allocation5 + $0xf8] sm:$0xff] }
  0x36   :  { %7108 = vst [vmem:[#allocation32_spill] sm:$0xff] %v4889_v2  ;;  %7109 = vst [vmem:[#allocation33_spill] sm:$0xff] %v4891_v3  ;;  %v4903_v12 = vsub.f32 %v129_v48, %v211_v61  ;;  %4168 = vmatpush1.bf16.msra.mxu0 %v4873_v47  ;;  %v4907_v14 = vsub.f32 %v131_v49, %v215_v62  ;;  %v4909_v20 = vsub.f32 %v134_v50, %v217_v63  ;;  %v141_v40 = vld [vmem:[#allocation5 + $0xe0] sm:$0xff]  ;;  %v143_v41 = vld [vmem:[#allocation5 + $0xf0] sm:$0xff] }
  0x37   :  { %7110 = vst [vmem:[#allocation34_spill] sm:$0xff] %v4897_v9  ;;  %7111 = vst [vmem:[#allocation35_spill] sm:$0xff] %v4901_v11  ;;  %v219_v21 = vand.u32 4294901760, %v133_v0  ;;  %3978 = vmatprep.subr.bf16.mxu1 %v4879_v53  ;;  %4170 = vmatprep.subr.bf16.mxu0 %v4879_v53  ;;  %v223_v26 = vand.u32 4294901760, %v135_v1  ;;  %v225_v27 = vand.u32 4294901760, %v138_v6  ;;  %v229_v29 = vand.u32 4294901760, %v140_v7 }
  0x38   :  { %v227_v30 = vand.u32 4294901760, %v137_v8  ;;  %v4913_v32 = vpack.c.bf16 %v221_v19, %v217_v63  ;;  %v4915_v33 = vsub.f32 %v136_v59, %v221_v19  ;;  %v231_v35 = vand.u32 4294901760, %v139_v13  ;;  %v146_v50 = vld [vmem:[#allocation5 + $0x108] sm:$0xff]  ;;  %v148_v56 = vld [vmem:[#allocation5 + $0x118] sm:$0xff]  ;;  %v145_v57 = vld [vmem:[#allocation5 + $0x100] sm:$0xff] }
  0x39   :  { %v4917_v34 = vsub.f32 %v133_v0, %v219_v21  ;;  %v4919_v42 = vpack.c.bf16 %v223_v26, %v219_v21  ;;  %v4921_v43 = vsub.f32 %v135_v1, %v223_v26  ;;  %v4923_v48 = vpack.c.bf16 %v229_v29, %v225_v27  ;;  %3980 = vmatpush1.bf16.msra.mxu1 %v4889_v2  ;;  %v154_v44 = vld [vmem:[#allocation5 + $0x148] sm:$0xff]  ;;  %v156_v37 = vld [vmem:[#allocation5 + $0x158] sm:$0xff]  ;;  %v155_v24 = vld [vmem:[#allocation5 + $0x150] sm:$0xff] }
  0x3a   :  { %7112 = vst [vmem:[#allocation36_spill] sm:$0xff] %v4913_v32  ;;  %v4925_v49 = vsub.f32 %v138_v6, %v225_v27  ;;  %4172 = vmatpush1.bf16.msra.mxu0 %v4889_v2  ;;  %v4929_v58 = vsub.f32 %v140_v7, %v229_v29  ;;  %v4931_v59 = vpack.c.bf16 %v231_v35, %v227_v30  ;;  %v233_v61 = vand.u32 4294901760, %v142_v31  ;;  %v147_v6 = vld [vmem:[#allocation5 + $0x110] sm:$0xff]  ;;  %v150_v27 = vld [vmem:[#allocation5 + $0x128] sm:$0xff]  ;;  %v152_v29 = vld [vmem:[#allocation5 + $0x138] sm:$0xff] }
  0x3b   :  { %7113 = vst [vmem:[#allocation37_spill] sm:$0xff] %v4917_v34  ;;  %7114 = vst [vmem:[#allocation38_spill] sm:$0xff] %v4919_v42  ;;  %v4933_v60 = vsub.f32 %v137_v8, %v227_v30  ;;  %3982 = vmatprep.subr.bf16.mxu1 %v4897_v9  ;;  %4174 = vmatprep.subr.bf16.mxu0 %v4897_v9  ;;  %v4937_v62 = vsub.f32 %v139_v13, %v231_v35  ;;  %v237_v63 = vand.u32 4294901760, %v144_v36  ;;  %v149_v13 = vld [vmem:[#allocation5 + $0x120] sm:$0xff]  ;;  %v151_v35 = vld [vmem:[#allocation5 + $0x130] sm:$0xff] }
  0x3c   :  { %7115 = vst [vmem:[#allocation39_spill] sm:$0xff] %v4921_v43  ;;  %7116 = vst [vmem:[#allocation40_spill] sm:$0xff] %v4923_v48  ;;  %v235_v0 = vand.u32 4294901760, %v141_v40  ;;  %v239_v1 = vand.u32 4294901760, %v143_v41  ;;  %v4939_v19 = vsub.f32 %v142_v31, %v233_v61  ;;  %v241_v21 = vand.u32 4294901760, %v146_v50  ;;  %v158_v22 = vld [vmem:[#allocation5 + $0x168] sm:$0xff] }
  0x3d   :  { %7117 = vst [vmem:[#allocation41_spill] sm:$0xff] %v4925_v49  ;;  %7118 = vst [vmem:[#allocation42_spill] sm:$0xff] %v4929_v58  ;;  %v245_v7 = vand.u32 4294901760, %v148_v56  ;;  %v243_v26 = vand.u32 4294901760, %v145_v57  ;;  %v4941_v8 = vpack.c.bf16 %v237_v63, %v233_v61  ;;  %v4943_v30 = vsub.f32 %v144_v36, %v237_v63  ;;  %3984 = vmatpush1.bf16.msra.mxu1 %v4901_v11 }
  0x3e   :  { %7119 = vst [vmem:[#allocation43_spill] sm:$0xff] %v4931_v59  ;;  %7120 = vst [vmem:[#allocation44_spill] sm:$0xff] %v4933_v60  ;;  %v4945_v2 = vpack.c.bf16 %v239_v1, %v235_v0  ;;  %v4947_v9 = vsub.f32 %v141_v40, %v235_v0  ;;  %4176 = vmatpush1.bf16.msra.mxu0 %v4901_v11  ;;  %v4951_v31 = vsub.f32 %v143_v41, %v239_v1 }
  0x3f   :  { %7121 = vst [vmem:[#allocation45_spill] sm:$0xff] %v4937_v62  ;;  %7122 = vst [vmem:[#allocation46_spill] sm:$0xff] %v4939_v19  ;;  %v4953_v53 = vpack.c.bf16 %v245_v7, %v241_v21  ;;  %v4955_v47 = vsub.f32 %v146_v50, %v241_v21  ;;  %v247_v61 = vand.u32 4294901760, %v147_v6  ;;  %3986 = vmatprep.subr.bf16.mxu1 %v4913_v32  ;;  %4178 = vmatprep.subr.bf16.mxu0 %v4913_v32  ;;  %v153_v21 = vld [vmem:[#allocation5 + $0x140] sm:$0xff] }
  0x40   :  { %7123 = vst [vmem:[#allocation47_spill] sm:$0xff] %v4941_v8  ;;  %7124 = vst [vmem:[#allocation48_spill] sm:$0xff] %v4943_v30  ;;  %v4959_v36 = vsub.f32 %v148_v56, %v245_v7  ;;  %v4961_v40 = vsub.f32 %v145_v57, %v243_v26  ;;  %v249_v63 = vand.u32 4294901760, %v150_v27  ;;  %v253_v0 = vand.u32 4294901760, %v152_v29  ;;  %v160_v7 = vld [vmem:[#allocation5 + $0x178] sm:$0xff]  ;;  %v157_v32 = vld [vmem:[#allocation5 + $0x160] sm:$0xff] }
  0x41   :  { %7125 = vst [vmem:[#allocation49_spill] sm:$0xff] %v4945_v2  ;;  %7126 = vst [vmem:[#allocation50_spill] sm:$0xff] %v4947_v9  ;;  %v4963_v11 = vpack.c.bf16 %v247_v61, %v243_v26  ;;  %v4965_v41 = vsub.f32 %v147_v6, %v247_v61  ;;  %v251_v1 = vand.u32 4294901760, %v149_v13  ;;  %v255_v50 = vand.u32 4294901760, %v151_v35  ;;  %3988 = vmatpush1.bf16.msra.mxu1 %v4919_v42  ;;  %v169_v9 = vld [vmem:[#allocation5 + $0x1c0] sm:$0xff]  ;;  %v171_v30 = vld [vmem:[#allocation5 + $0x1d0] sm:$0xff] }
  0x42   :  { %7127 = vst [vmem:[#allocation51_spill] sm:$0xff] %v4951_v31  ;;  %7128 = vst [vmem:[#allocation52_spill] sm:$0xff] %v4953_v53  ;;  %v4967_v15 = vpack.c.bf16 %v253_v0, %v249_v63  ;;  %v4971_v56 = vsub.f32 %v152_v29, %v253_v0  ;;  %v257_v57 = vand.u32 4294901760, %v154_v44  ;;  %4180 = vmatpush1.bf16.msra.mxu0 %v4919_v42  ;;  %3990 = vmatprep.subr.bf16.mxu1 %v4923_v48  ;;  %v168_v31 = vld [vmem:[#allocation5 + $0x1b8] sm:$0xff] }
  0x43   :  { %7129 = vst [vmem:[#allocation53_spill] sm:$0xff] %v4955_v47  ;;  %7130 = vst [vmem:[#allocation54_spill] sm:$0xff] %v4959_v36  ;;  %v4969_v47 = vsub.f32 %v150_v27, %v249_v63  ;;  %v4975_v6 = vpack.c.bf16 %v255_v50, %v251_v1  ;;  %v4977_v26 = vsub.f32 %v149_v13, %v251_v1  ;;  %4182 = vmatprep.subr.bf16.mxu0 %v4923_v48 }
  0x44   :  { %7131 = vst [vmem:[#allocation55_spill] sm:$0xff] %v4961_v40  ;;  %7132 = vst [vmem:[#allocation56_spill] sm:$0xff] %v4963_v11  ;;  %v4979_v61 = vsub.f32 %v151_v35, %v255_v50  ;;  %v4983_v27 = vsub.f32 %v154_v44, %v257_v57  ;;  %v259_v29 = vand.u32 4294901760, %v153_v21  ;;  %v263_v63 = vand.u32 4294901760, %v155_v24  ;;  %v164_v35 = vld [vmem:[#allocation5 + $0x198] sm:$0xff]  ;;  %v161_v50 = vld [vmem:[#allocation5 + $0x180] sm:$0xff] }
  0x45   :  { %7133 = vst [vmem:[#allocation57_spill] sm:$0xff] %v4965_v41  ;;  %7134 = vst [vmem:[#allocation58_spill] sm:$0xff] %v4967_v15  ;;  %v261_v41 = vand.u32 4294901760, %v156_v37  ;;  %v265_v0 = vand.u32 4294901760, %v158_v22  ;;  %v269_v13 = vand.u32 4294901760, %v160_v7  ;;  %v267_v1 = vand.u32 4294901760, %v157_v32  ;;  %3992 = vmatpush1.bf16.msra.mxu1 %v4931_v59 }
  0x46   :  { %7135 = vst [vmem:[#allocation59_spill] sm:$0xff] %v4969_v47  ;;  %7136 = vst [vmem:[#allocation60_spill] sm:$0xff] %v4971_v56  ;;  %v159_v56 = vld [vmem:[#allocation5 + $0x170] sm:$0xff]  ;;  %v162_v47 = vld [vmem:[#allocation5 + $0x188] sm:$0xff]  ;;  %v4991_v36 = vsub.f32 %v153_v21, %v259_v29  ;;  %v4993_v44 = vsub.f32 %v155_v24, %v263_v63  ;;  %4184 = vmatpush1.bf16.msra.mxu0 %v4931_v59  ;;  %3994 = vmatprep.subr.bf16.mxu1 %v4941_v8  ;;  %v275_v21 = vand.u32 4294901760, %v161_v50 }
  0x47   :  { %7137 = vst [vmem:[#allocation61_spill] sm:$0xff] %v4975_v6  ;;  %7138 = vst [vmem:[#allocation62_spill] sm:$0xff] %v4977_v26  ;;  %v4985_v40 = vpack.c.bf16 %v261_v41, %v257_v57  ;;  %v4987_v42 = vsub.f32 %v156_v37, %v261_v41  ;;  %v4989_v26 = vpack.c.bf16 %v263_v63, %v259_v29  ;;  %v271_v57 = vand.u32 4294901760, %v159_v56  ;;  %v165_v63 = vld [vmem:[#allocation5 + $0x1a0] sm:$0xff] }
  0x48   :  { %7139 = vst [vmem:[#allocation63_spill] sm:$0xff] %v4979_v61  ;;  %7140 = vst [vmem:[#allocation64_spill] sm:$0xff] %v4983_v27  ;;  %v163_v61 = vld [vmem:[#allocation5 + $0x190] sm:$0xff]  ;;  %v4995_v48 = vsub.f32 %v158_v22, %v265_v0  ;;  %v166_v27 = vld [vmem:[#allocation5 + $0x1a8] sm:$0xff]  ;;  %v4999_v37 = vpack.c.bf16 %v269_v13, %v265_v0  ;;  %v5001_v41 = vsub.f32 %v160_v7, %v269_v13  ;;  %4186 = vmatprep.subr.bf16.mxu0 %v4941_v8 }
  0x49   :  { %7141 = vst [vmem:[#allocation65_spill] sm:$0xff] %v4985_v40  ;;  %7142 = vst [vmem:[#allocation66_spill] sm:$0xff] %v4987_v42  ;;  %v5003_v42 = vsub.f32 %v157_v32, %v267_v1  ;;  %v273_v24 = vand.u32 4294901760, %v162_v47  ;;  %v277_v22 = vand.u32 4294901760, %v164_v35  ;;  %v279_v29 = vand.u32 4294901760, %v163_v61  ;;  %v167_v7 = vld [vmem:[#allocation5 + $0x1b0] sm:$0xff]  ;;  %3996 = vmatpush1.bf16.msra.mxu1 %v4945_v2 }
  0x4a   :  { %7143 = vst [vmem:[#allocation67_spill] sm:$0xff] %v4989_v26  ;;  %7144 = vst [vmem:[#allocation68_spill] sm:$0xff] %v4991_v36  ;;  %v281_v0 = vand.u32 4294901760, %v166_v27  ;;  %v285_v59 = vand.u32 4294901760, %v168_v31  ;;  %v170_v13 = vld [vmem:[#allocation5 + $0x1c8] sm:$0xff]  ;;  %v172_v36 = vld [vmem:[#allocation5 + $0x1d8] sm:$0xff]  ;;  %4188 = vmatpush1.bf16.msra.mxu0 %v4945_v2  ;;  %3998 = vmatprep.subr.bf16.mxu1 %v4953_v53 }
  0x4b   :  { %7145 = vst [vmem:[#allocation69_spill] sm:$0xff] %v4993_v44  ;;  %7146 = vst [vmem:[#allocation70_spill] sm:$0xff] %v4995_v48  ;;  %v5007_v48 = vpack.c.bf16 %v271_v57, %v267_v1  ;;  %v5009_v44 = vsub.f32 %v159_v56, %v271_v57  ;;  %v5013_v32 = vsub.f32 %v162_v47, %v273_v24  ;;  %v174_v47 = vld [vmem:[#allocation5 + $0x1e8] sm:$0xff]  ;;  %4190 = vmatprep.subr.bf16.mxu0 %v4953_v53 }
  0x4c   :  { %7147 = vst [vmem:[#allocation71_spill] sm:$0xff] %v4999_v37  ;;  %7148 = vst [vmem:[#allocation72_spill] sm:$0xff] %v5001_v41  ;;  %v5011_v41 = vpack.c.bf16 %v277_v22, %v273_v24  ;;  %v5017_v8 = vpack.c.bf16 %v279_v29, %v275_v21  ;;  %v5021_v56 = vsub.f32 %v161_v50, %v275_v21  ;;  %v293_v50 = vand.u32 4294901760, %v172_v36 }
  0x4d   :  { %7149 = vst [vmem:[#allocation73_spill] sm:$0xff] %v5003_v42  ;;  %7150 = vst [vmem:[#allocation74_spill] sm:$0xff] %v5007_v48  ;;  %v5015_v42 = vsub.f32 %v164_v35, %v277_v22  ;;  %v5023_v1 = vsub.f32 %v163_v61, %v279_v29  ;;  %v5025_v57 = vpack.c.bf16 %v285_v59, %v281_v0  ;;  %v287_v22 = vand.u32 4294901760, %v167_v7  ;;  %v173_v29 = vld [vmem:[#allocation5 + $0x1e0] sm:$0xff] }
  0x4e   :  { %7151 = vst [vmem:[#allocation75_spill] sm:$0xff] %v5009_v44  ;;  %7152 = vst [vmem:[#allocation76_spill] sm:$0xff] %v5011_v41  ;;  %v283_v44 = vand.u32 4294901760, %v165_v63  ;;  %v5029_v35 = vsub.f32 %v166_v27, %v281_v0  ;;  %v5031_v24 = vsub.f32 %v168_v31, %v285_v59  ;;  %v291_v61 = vand.u32 4294901760, %v169_v9  ;;  %v175_v27 = vld [vmem:[#allocation5 + $0x1f0] sm:$0xff]  ;;  %v50_v0 = vld [vmem:[#allocation2 + $0x8] sm:$0xff]  ;;  %4000 = vmatpush1.bf16.msra.mxu1 %v4963_v11 }
  0x4f   :  { %7153 = vst [vmem:[#allocation77_spill] sm:$0xff] %v5013_v32  ;;  %7154 = vst [vmem:[#allocation78_spill] sm:$0xff] %v5015_v42  ;;  %v289_v42 = vand.u32 4294901760, %v170_v13  ;;  %v176_v32 = vld [vmem:[#allocation5 + $0x1f8] sm:$0xff]  ;;  %v295_v21 = vand.u32 4294901760, %v171_v30  ;;  %v297_v53 = vand.u32 4294901760, %v174_v47  ;;  %4192 = vmatpush1.bf16.msra.mxu0 %v4963_v11  ;;  %v5045_v31 = vsub.f32 %v172_v36, %v293_v50  ;;  %4002 = vmatprep.subr.bf16.mxu1 %v4967_v15 }
  0x50   :  { %7155 = vst [vmem:[#allocation79_spill] sm:$0xff] %v5017_v8  ;;  %7156 = vst [vmem:[#allocation80_spill] sm:$0xff] %v5021_v56  ;;  %v5033_v2 = vsub.f32 %v165_v63, %v283_v44  ;;  %v5037_v56 = vsub.f32 %v167_v7, %v287_v22  ;;  %4194 = vmatprep.subr.bf16.mxu0 %v4967_v15  ;;  %v5051_v7 = vsub.f32 %v169_v9, %v291_v61 }
  0x51   :  { %7157 = vst [vmem:[#allocation81_spill] sm:$0xff] %v5023_v1  ;;  %7158 = vst [vmem:[#allocation82_spill] sm:$0xff] %v5025_v57  ;;  %v5035_v1 = vpack.c.bf16 %v287_v22, %v283_v44  ;;  %v5039_v19 = vsub.f32 %v170_v13, %v289_v42  ;;  %v5043_v59 = vpack.c.bf16 %v293_v50, %v289_v42  ;;  %v49_v44 = vld [vmem:[#allocation2] sm:$0xff]  ;;  %v303_v36 = vand.u32 4294901760, %v175_v27 }
  0x52   :  { %7159 = vst [vmem:[#allocation83_spill] sm:$0xff] %v5031_v24  ;;  %7160 = vst [vmem:[#allocation84_spill] sm:$0xff] %v5033_v2  ;;  %v5047_v63 = vpack.c.bf16 %v295_v21, %v291_v61  ;;  %v301_v2 = vand.u32 4294901760, %v176_v32  ;;  %v5053_v13 = vsub.f32 %v171_v30, %v295_v21  ;;  %v5055_v22 = vsub.f32 %v174_v47, %v297_v53  ;;  %v52_v30 = vld [vmem:[#allocation2 + $0x18] sm:$0xff] }
  0x53   :  { %7161 = vst [vmem:[#allocation85_spill] sm:$0xff] %v5035_v1  ;;  %7162 = vst [vmem:[#allocation86_spill] sm:$0xff] %v5037_v56  ;;  %v5061_v50 = vand.u32 4294901760, %v50_v0  ;;  %v5065_v56 = vand.u32 4294901760, %v49_v44  ;;  %v820_v15 = vand.u32 4294901760, %v4839_v16  ;;  %v832_v9 = vand.u32 4294901760, %v4841_v17  ;;  %4004 = vmatpush1.bf16.msra.mxu1 %v4975_v6  ;;  %4196 = vmatpush1.bf16.msra.mxu0 %v4975_v6 }
  0x54   :  { %7163 = vst [vmem:[#allocation87_spill] sm:$0xff] %v5039_v19  ;;  %7164 = vst [vmem:[#allocation88_spill] sm:$0xff] %v5043_v59  ;;  %v299_v19 = vand.u32 4294901760, %v173_v29  ;;  %v5057_v11 = vpack.c.bf16 %v301_v2, %v297_v53  ;;  %v5059_v42 = vsub.f32 %v176_v32, %v301_v2  ;;  %v5073_v2 = vsub.f32 %v175_v27, %v303_v36 }
  0x55   :  { %7165 = vst [vmem:[#allocation89_spill] sm:$0xff] %v5045_v31  ;;  %7166 = vst [vmem:[#allocation90_spill] sm:$0xff] %v5047_v63  ;;  %v5076_v32 = vsub.f32 %v50_v0, %v5061_v50  ;;  %v826_v47 = vand.u32 4294901760, %v4843_v18  ;;  %4006 = vmatprep.subr.bf16.mxu1 %v4985_v40  ;;  %4198 = vmatprep.subr.bf16.mxu0 %v4985_v40  ;;  %v5082_v61 = vsub.f32 %v49_v44, %v5065_v56 }
  0x56   :  { %7167 = vst [vmem:[#allocation91_spill] sm:$0xff] %v5051_v7  ;;  %7168 = vst [vmem:[#allocation92_spill] sm:$0xff] %v5053_v13  ;;  %v5063_v31 = vsub.f32 %v173_v29, %v299_v19  ;;  %v5071_v53 = vpack.c.bf16 %v303_v36, %v299_v19  ;;  %v821_v21 = vsub.f32 %v4839_v16, %v820_v15  ;;  %v838_v19 = vand.u32 4294901760, %v4847_v23  ;;  %v54_v16 = vld [vmem:[#allocation2 + $0x28] sm:$0xff] }
  0x57   :  { %7169 = vst [vmem:[#allocation93_spill] sm:$0xff] %v5055_v22  ;;  %7170 = vst [vmem:[#allocation94_spill] sm:$0xff] %v5057_v11  ;;  %v833_v29 = vsub.f32 %v4841_v17, %v832_v9  ;;  %v307_v27 = vand.u32 4294901760, %v5076_v32  ;;  %v5088_v36 = vpack.c.bf16 %v832_v9, %v820_v15  ;;  %v827_v0 = vsub.f32 %v4843_v18, %v826_v47 }
  0x58   :  { %7171 = vst [vmem:[#allocation95_spill] sm:$0xff] %v5059_v42  ;;  %7172 = vst [vmem:[#allocation96_spill] sm:$0xff] %v5061_v50  ;;  %v5091_v6 = vand.u32 4294901760, %v52_v30  ;;  %v51_v50 = vld [vmem:[#allocation2 + $0x10] sm:$0xff]  ;;  %v6824_v40 = vand.u32 4294901760, %v5082_v61  ;;  %4008 = vmatpush1.bf16.msra.mxu1 %v4989_v26  ;;  %4200 = vmatpush1.bf16.msra.mxu0 %v4989_v26  ;;  %v5098_v17 = vpack.c.bf16 %v838_v19, %v826_v47  ;;  %v892_v7 = vand.u32 4294901760, %v4881_v54 }
  0x59   :  { %7173 = vst [vmem:[#allocation97_spill] sm:$0xff] %v5063_v31  ;;  %7174 = vst [vmem:[#allocation98_spill] sm:$0xff] %v5065_v56  ;;  %v834_v44 = vand.u32 4294901760, %v833_v29  ;;  %v839_v56 = vsub.f32 %v4847_v23, %v838_v19  ;;  %v53_v31 = vld [vmem:[#allocation2 + $0x20] sm:$0xff]  ;;  %v308_v15 = vsub.f32 %v5076_v32, %v307_v27  ;;  %v828_v9 = vand.u32 4294901760, %v827_v0  ;;  %4010 = vmatprep.subr.bf16.mxu1 %v4999_v37 }
  0x5a   :  { %7175 = vst [vmem:[#allocation99_spill] sm:$0xff] %v5071_v53  ;;  %7176 = vst [vmem:[#allocation100_spill] sm:$0xff] %v5073_v2  ;;  %v822_v2 = vand.u32 4294901760, %v821_v21  ;;  %v5101_v18 = vsub.f32 %v52_v30, %v5091_v6  ;;  %4202 = vmatprep.subr.bf16.mxu0 %v4999_v37  ;;  %v5108_v21 = vsub.f32 %v5082_v61, %v6824_v40  ;;  %v5112_v23 = vand.u32 4294901760, %v51_v50 }
  0x5b   :  { %7177 = vst [vmem:[#allocation101_spill] sm:$0xff] %v5076_v32  ;;  %7178 = vst [vmem:[#allocation102_spill] sm:$0xff] %v5082_v61  ;;  %v840_v26 = vand.u32 4294901760, %v839_v56  ;;  %v309_v0 = vand.u32 4294901760, %v308_v15  ;;  %2103 = vmatprep.mubr.f32.mxu0 %v307_v27  ;;  %v5115_v30 = vand.u32 4294901760, %v54_v16  ;;  %v5117_v19 = vand.u32 4294901760, %v53_v31 }
  0x5c   :  { %7179 = vst [vmem:[#allocation103_spill] sm:$0xff] %v5091_v6  ;;  %7180 = vst [vmem:[#allocation104_spill] sm:$0xff] %v5101_v18  ;;  %v5110_v29 = vpack.c.bf16 %v834_v44, %v822_v2  ;;  %v6825_v47 = vand.u32 4294901760, %v5101_v18  ;;  %v5123_v40 = vsub.f32 %v51_v50, %v5112_v23  ;;  %v844_v2 = vand.u32 4294901760, %v4851_v25  ;;  %4012 = vmatpush1.bf16.msra.mxu1 %v5007_v48 }
  0x5d   :  { %7181 = vst [vmem:[#allocation105_spill] sm:$0xff] %v5112_v23  ;;  %7182 = vst [vmem:[#allocation106_spill] sm:$0xff] %v5115_v30  ;;  %v5120_v37 = vpack.c.bf16 %v840_v26, %v828_v9  ;;  %4204 = vmatpush1.bf16.msra.mxu0 %v5007_v48  ;;  %v5134_v27 = vsub.f32 %v54_v16, %v5115_v30  ;;  %v5137_v26 = vsub.f32 %v53_v31, %v5117_v19 }
  0x5e   :  { %7183 = vst [vmem:[#allocation107_spill] sm:$0xff] %v5117_v19  ;;  %7184 = vst [vmem:[#allocation108_spill] sm:$0xff] %v5123_v40  ;;  %v5131_v56 = vsub.f32 %v5101_v18, %v6825_v47  ;;  %v856_v50 = vand.u32 4294901760, %v4855_v28  ;;  %4014 = vmatprep.subr.bf16.mxu1 %v5011_v41  ;;  %4206 = vmatprep.subr.bf16.mxu0 %v5011_v41  ;;  %v6836_v44 = vand.u32 4294901760, %v5123_v40  ;;  %v850_v9 = vand.u32 4294901760, %v4863_v38  ;;  %v56_v19 = vld [vmem:[#allocation2 + $0x38] sm:$0xff] }
  0x5f   :  { %7185 = vst [vmem:[#allocation109_spill] sm:$0xff] %v5134_v27  ;;  %7186 = vst [vmem:[#allocation110_spill] sm:$0xff] %v5137_v26  ;;  %v845_v15 = vsub.f32 %v4851_v25, %v844_v2  ;;  %v862_v47 = vand.u32 4294901760, %v4865_v39  ;;  %310 = vmatprep.mubr.f32.mxu1 %v309_v0  ;;  %v6840_v31 = vand.u32 4294901760, %v5134_v27  ;;  %v6842_v32 = vand.u32 4294901760, %v5137_v26 }
  0x60   :  { %v857_v48 = vsub.f32 %v4855_v28, %v856_v50  ;;  %v5153_v41 = vsub.f32 %v5123_v40, %v6836_v44  ;;  %v5155_v23 = vpack.c.bf16 %v856_v50, %v844_v2  ;;  %v851_v6 = vsub.f32 %v4863_v38, %v850_v9  ;;  %4016 = vmatpush1.bf16.msra.mxu1 %v5017_v8  ;;  %v55_v50 = vld [vmem:[#allocation2 + $0x30] sm:$0xff]  ;;  %v57_v38 = vld [vmem:[#allocation2 + $0x40] sm:$0xff] }
  0x61   :  { %v846_v30 = vand.u32 4294901760, %v845_v15  ;;  %4208 = vmatpush1.bf16.msra.mxu0 %v5017_v8  ;;  %v5163_v0 = vsub.f32 %v5134_v27, %v6840_v31  ;;  %v5168_v16 = vsub.f32 %v5137_v26, %v6842_v32  ;;  %v863_v2 = vsub.f32 %v4865_v39, %v862_v47  ;;  %v58_v15 = vld [vmem:[#allocation2 + $0x48] sm:$0xff]  ;;  %4018 = vmatprep.subr.bf16.mxu1 %v5025_v57 }
  0x62   :  { %v858_v44 = vand.u32 4294901760, %v857_v48  ;;  %4210 = vmatprep.subr.bf16.mxu0 %v5025_v57  ;;  %v852_v28 = vand.u32 4294901760, %v851_v6  ;;  %v5174_v31 = vpack.c.bf16 %v862_v47, %v850_v9  ;;  %v5176_v25 = vand.u32 4294901760, %v56_v19 }
  0x63   :  { %v864_v39 = vand.u32 4294901760, %v863_v2  ;;  %v5185_v13 = vand.u32 4294901760, %v55_v50  ;;  %v5187_v57 = vand.u32 4294901760, %v58_v15  ;;  %v5189_v8 = vand.u32 4294901760, %v57_v38 }
  0x64   :  { %7187 = vst [vmem:[#allocation111_spill] sm:$0xff] %v5176_v25  ;;  %v5180_v42 = vpack.c.bf16 %v858_v44, %v846_v30  ;;  %v5183_v22 = vsub.f32 %v56_v19, %v5176_v25  ;;  %4020 = vmatpush1.bf16.msra.mxu1 %v5035_v1  ;;  %v868_v47 = vand.u32 4294901760, %v4869_v45  ;;  %v880_v30 = vand.u32 4294901760, %v4871_v46  ;;  %v59_v25 = vld [vmem:[#allocation2 + $0x50] sm:$0xff] }
  0x65   :  { %7189 = vst [vmem:[#allocation113_spill] sm:$0xff] %v5185_v13  ;;  %7190 = vst [vmem:[#allocation114_spill] sm:$0xff] %v5187_v57  ;;  %4212 = vmatpush1.bf16.msra.mxu0 %v5035_v1  ;;  %v5193_v6 = vpack.c.bf16 %v864_v39, %v852_v28  ;;  %v874_v44 = vand.u32 4294901760, %v4875_v51  ;;  %4022 = vmatprep.subr.bf16.mxu1 %v5043_v59  ;;  %v5202_v9 = vsub.f32 %v55_v50, %v5185_v13 }
  0x66   :  { %7188 = vst [vmem:[#allocation112_spill] sm:$0xff] %v5183_v22  ;;  %7191 = vst [vmem:[#allocation115_spill] sm:$0xff] %v5189_v8  ;;  %4214 = vmatprep.subr.bf16.mxu0 %v5043_v59  ;;  %v6858_v19 = vand.u32 4294901760, %v5183_v22  ;;  %v5205_v2 = vsub.f32 %v58_v15, %v5187_v57  ;;  %v5208_v28 = vsub.f32 %v57_v38, %v5189_v8  ;;  %v60_v8 = vld [vmem:[#allocation2 + $0x58] sm:$0xff]  ;;  %v886_v13 = vand.u32 4294901760, %v4877_v52 }
  0x67   :  { %7192 = vst [vmem:[#allocation116_spill] sm:$0xff] %v5202_v9  ;;  %v869_v39 = vsub.f32 %v4869_v45, %v868_v47  ;;  %v881_v48 = vsub.f32 %v4871_v46, %v880_v30  ;;  %v5212_v32 = vpack.c.bf16 %v880_v30, %v868_v47  ;;  %v875_v1 = vsub.f32 %v4875_v51, %v874_v44  ;;  %v61_v51 = vld [vmem:[#allocation2 + $0x60] sm:$0xff] }
  0x68   :  { %7193 = vst [vmem:[#allocation117_spill] sm:$0xff] %v5205_v2  ;;  %7194 = vst [vmem:[#allocation118_spill] sm:$0xff] %v5208_v28  ;;  %v5218_v59 = vsub.f32 %v5183_v22, %v6858_v19  ;;  %v6863_v50 = vand.u32 4294901760, %v5202_v9  ;;  %v6865_v15 = vand.u32 4294901760, %v5205_v2  ;;  %4024 = vmatpush1.bf16.msra.mxu1 %v5047_v63  ;;  %v887_v19 = vsub.f32 %v4877_v52, %v886_v13 }
  0x69   :  { %4216 = vmatpush1.bf16.msra.mxu0 %v5047_v63  ;;  %v870_v47 = vand.u32 4294901760, %v869_v39  ;;  %v882_v30 = vand.u32 4294901760, %v881_v48  ;;  %v876_v57 = vand.u32 4294901760, %v875_v1  ;;  %4026 = vmatprep.subr.bf16.mxu1 %v5057_v11  ;;  %v7195_v1 = vand.u32 4294901760, %v5208_v28  ;;  %v62_v63 = vld [vmem:[#allocation2 + $0x68] sm:$0xff] }
  0x6a   :  { %4218 = vmatprep.subr.bf16.mxu0 %v5057_v11  ;;  %v5232_v38 = vsub.f32 %v5202_v9, %v6863_v50  ;;  %v5237_v39 = vsub.f32 %v5205_v2, %v6865_v15  ;;  %v5247_v46 = vpack.c.bf16 %v886_v13, %v874_v44  ;;  %v5249_v50 = vand.u32 4294901760, %v60_v8 }
  0x6b   :  { %v5242_v48 = vsub.f32 %v5208_v28, %v7195_v1  ;;  %v5244_v11 = vpack.c.bf16 %v882_v30, %v870_v47  ;;  %v5254_v24 = vand.u32 4294901760, %v59_v25  ;;  %v888_v47 = vand.u32 4294901760, %v887_v19 }
  0x6c   :  { %7196 = vst [vmem:[#allocation119_spill] sm:$0xff] %v5249_v50  ;;  %4028 = vmatpush1.bf16.msra.mxu1 %v5071_v53  ;;  %v5259_v30 = vsub.f32 %v60_v8, %v5249_v50  ;;  %v5261_v13 = vand.u32 4294901760, %v62_v63  ;;  %v5263_v44 = vand.u32 4294901760, %v61_v51  ;;  %v904_v15 = vand.u32 4294901760, %v4885_v55 }
  0x6d   :  { %7197 = vst [vmem:[#allocation120_spill] sm:$0xff] %v5254_v24  ;;  %4220 = vmatpush1.bf16.msra.mxu0 %v5071_v53  ;;  %4030 = vmatprep.subr.bf16.mxu1 %v5110_v29  ;;  %v5268_v1 = vsub.f32 %v59_v25, %v5254_v24  ;;  %v898_v19 = vand.u32 4294901760, %v4891_v3  ;;  %v5273_v45 = vpack.c.bf16 %v888_v47, %v876_v57  ;;  %v7205_v25 = vand.u32 4294901760, %v5082_v61  ;;  %v63_v61 = vld [vmem:[#allocation2 + $0x70] sm:$0xff] }
  0x6e   :  { %7198 = vst [vmem:[#allocation121_spill] sm:$0xff] %v5259_v30  ;;  %7199 = vst [vmem:[#allocation122_spill] sm:$0xff] %v5261_v13  ;;  %4222 = vmatprep.subr.bf16.mxu0 %v5088_v36  ;;  %v6873_v8 = vand.u32 4294901760, %v5259_v30  ;;  %v5277_v53 = vsub.f32 %v62_v63, %v5261_v13  ;;  %v5280_v29 = vsub.f32 %v61_v51, %v5263_v44  ;;  %v7204_v36 = vand.u32 4294901760, %v5108_v21  ;;  %v64_v63 = vld [vmem:[#allocation2 + $0x78] sm:$0xff] }
  0x6f   :  { %7200 = vst [vmem:[#allocation123_spill] sm:$0xff] %v5263_v44  ;;  %7201 = vst [vmem:[#allocation124_spill] sm:$0xff] %v5268_v1  ;;  %v6875_v24 = vand.u32 4294901760, %v5268_v1  ;;  %v893_v50 = vsub.f32 %v4881_v54, %v892_v7  ;;  %v905_v57 = vsub.f32 %v4885_v55, %v904_v15  ;;  %v5289_v47 = vpack.c.bf16 %v904_v15, %v892_v7 }
  0x70   :  { %7202 = vst [vmem:[#allocation125_spill] sm:$0xff] %v5277_v53  ;;  %7203 = vst [vmem:[#allocation126_spill] sm:$0xff] %v5280_v29  ;;  %316 = vmatmul.mubr.f32.vlgmr.msra.gmra.mrb[0].mxu1 %v7204_v36  ;;  %2107 = vmatmul.mubr.f32.vlgmr.msra.gmra.mrb[0].mxu0 %v7205_v25  ;;  %v5296_v51 = vsub.f32 %v5259_v30, %v6873_v8  ;;  %v6882_v21 = vand.u32 4294901760, %v5280_v29  ;;  %v899_v36 = vsub.f32 %v4891_v3, %v898_v19 }
  0x71   :  { %4032 = vmatpush1.bf16.msra.mxu1 %v5120_v37  ;;  %4224 = vmatpush1.bf16.msra.mxu0 %v5098_v17  ;;  %v7206_v25 = vand.u32 4294901760, %v5131_v56  ;;  %v7207_v7 = vand.u32 4294901760, %v5101_v18  ;;  %v5308_v17 = vsub.f32 %v5268_v1, %v6875_v24  ;;  %v894_v37 = vand.u32 4294901760, %v893_v50  ;;  %v66_v24 = vld [vmem:[#allocation2 + $0x88] sm:$0xff]  ;;  %v65_v18 = vld [vmem:[#allocation2 + $0x80] sm:$0xff] }
  0x72   :  { %v906_v15 = vand.u32 4294901760, %v905_v57  ;;  %v910_v8 = vand.u32 4294901760, %v4893_v4  ;;  %4034 = vmatprep.subr.bf16.mxu1 %v5180_v42  ;;  %4226 = vmatprep.subr.bf16.mxu0 %v5155_v23  ;;  %v5322_v50 = vsub.f32 %v5280_v29, %v6882_v21  ;;  %v900_v57 = vand.u32 4294901760, %v899_v36  ;;  %v68_v36 = vld [vmem:[#allocation2 + $0x98] sm:$0xff] }
  0x73   :  { %326 = vmatprep.mubr.f32.mxu1 %v7206_v25  ;;  %2115 = vmatprep.mubr.f32.mxu0 %v7207_v7  ;;  %v7208_v25 = vand.u32 4294901760, %v5277_v53  ;;  %v7209_v44 = vand.u32 4294901760, %v5153_v41  ;;  %v7210_v23 = vand.u32 4294901760, %v5123_v40  ;;  %v7211_v3 = vand.u32 4294901760, %v5163_v0  ;;  %v72_v42 = vld [vmem:[#allocation2 + $0xb8] sm:$0xff] }
  0x74   :  { %v4041_v56 = vpack.c.bf16 %v906_v15, %v894_v37  ;;  %v4235_v13 = vpack.c.bf16 %v910_v8, %v898_v19  ;;  %v7212_v21 = vand.u32 4294901760, %v5134_v27  ;;  %v5338_v40 = vand.u32 4294901760, %v63_v61 }
  0x75   :  { %v5317_v7 = vsub.f32 %v5277_v53, %v7208_v25  ;;  %332 = vmatmul.mubr.f32.gmra.mrb[2].mxu1 %v7209_v44  ;;  %2119 = vmatmul.mubr.f32.gmra.mrb[2].mxu0 %v7210_v23  ;;  %v911_v25 = vsub.f32 %v4893_v4, %v910_v8  ;;  %v5336_v44 = vand.u32 4294901760, %v64_v63  ;;  %v5342_v19 = vand.u32 4294901760, %v66_v24 }
  0x76   :  { %342 = vmatprep.mubr.f32.mxu1 %v7211_v3  ;;  %2127 = vmatprep.mubr.f32.mxu0 %v7212_v21  ;;  %7214 = vst [vmem:[#allocation128_spill] sm:$0xff] %v5338_v40  ;;  %v5344_v0 = vand.u32 4294901760, %v65_v18  ;;  %v916_v3 = vand.u32 4294901760, %v4895_v5  ;;  %v5353_v21 = vsub.f32 %v63_v61, %v5338_v40  ;;  %v7219_v15 = vand.u32 4294901760, %v5168_v16 }
  0x77   :  { %7213 = vst [vmem:[#allocation127_spill] sm:$0xff] %v5336_v44  ;;  %4036 = vmatpush1.bf16.msra.mxu1 %v5193_v6  ;;  %4228 = vmatpush1.bf16.msra.mxu0 %v5174_v31  ;;  %v912_v37 = vand.u32 4294901760, %v911_v25  ;;  %7215 = vst [vmem:[#allocation129_spill] sm:$0xff] %v5342_v19  ;;  %v5350_v8 = vsub.f32 %v64_v63, %v5336_v44  ;;  %v928_v6 = vand.u32 4294901760, %v4899_v10  ;;  %v922_v31 = vand.u32 4294901760, %v4903_v12 }
  0x78   :  { %7216 = vst [vmem:[#allocation130_spill] sm:$0xff] %v5344_v0  ;;  %4038 = vmatprep.subr.bf16.mxu1 %v5244_v11  ;;  %4230 = vmatprep.subr.bf16.mxu0 %v5212_v32  ;;  %7218 = vst [vmem:[#allocation132_spill] sm:$0xff] %v5353_v21  ;;  %v7220_v23 = vand.u32 4294901760, %v5137_v26  ;;  %v5362_v11 = vsub.f32 %v66_v24, %v5342_v19  ;;  %v5365_v32 = vsub.f32 %v65_v18, %v5344_v0 }
  0x79   :  { %7217 = vst [vmem:[#allocation131_spill] sm:$0xff] %v5350_v8  ;;  %348 = vmatmul.mubr.f32.gmra.mrb[4].mxu1 %v7219_v15  ;;  %v4043_v25 = vpack.c.bf16 %v912_v37, %v900_v57  ;;  %v934_v61 = vand.u32 4294901760, %v4907_v14  ;;  %v7223_v63 = vand.u32 4294901760, %v5218_v59  ;;  %v7224_v41 = vand.u32 4294901760, %v5183_v22 }
  0x7a   :  { %2131 = vmatmul.mubr.f32.gmra.mrb[4].mxu0 %v7220_v23  ;;  %7221 = vst [vmem:[#allocation133_spill] sm:$0xff] %v5362_v11  ;;  %7222 = vst [vmem:[#allocation134_spill] sm:$0xff] %v5365_v32  ;;  %v6885_v16 = vand.u32 4294901760, %v5350_v8  ;;  %v6884_v15 = vand.u32 4294901760, %v5353_v21  ;;  %v917_v57 = vsub.f32 %v4895_v5, %v916_v3  ;;  %v929_v24 = vsub.f32 %v4899_v10, %v928_v6 }
  0x7b   :  { %358 = vmatprep.mubr.f32.mxu1 %v7223_v63  ;;  %2139 = vmatprep.mubr.f32.mxu0 %v7224_v41  ;;  %v6886_v18 = vand.u32 4294901760, %v5362_v11  ;;  %v6889_v59 = vand.u32 4294901760, %v5365_v32  ;;  %v4237_v37 = vpack.c.bf16 %v928_v6, %v916_v3  ;;  %v923_v23 = vsub.f32 %v4903_v12, %v922_v31 }
  0x7c   :  { %4040 = vmatpush1.bf16.msra.mxu1 %v5273_v45  ;;  %4232 = vmatpush1.bf16.msra.mxu0 %v5247_v46  ;;  %v5385_v41 = vsub.f32 %v5350_v8, %v6885_v16  ;;  %v5390_v45 = vsub.f32 %v5353_v21, %v6884_v15  ;;  %v918_v46 = vand.u32 4294901760, %v917_v57  ;;  %v930_v63 = vand.u32 4294901760, %v929_v24  ;;  %v67_v24 = vld [vmem:[#allocation2 + $0x90] sm:$0xff]  ;;  %v70_v16 = vld [vmem:[#allocation2 + $0xa8] sm:$0xff] }
  0x7d   :  { %4042 = vmatprep.subr.bf16.mxu1 %v4041_v56  ;;  %4234 = vmatprep.subr.bf16.mxu0 %v5289_v47  ;;  %v7225_v3 = vand.u32 4294901760, %v5232_v38  ;;  %v7226_v56 = vand.u32 4294901760, %v5202_v9  ;;  %v5399_v47 = vsub.f32 %v5362_v11, %v6886_v18  ;;  %v5404_v6 = vsub.f32 %v5365_v32, %v6889_v59  ;;  %v69_v38 = vld [vmem:[#allocation2 + $0xa0] sm:$0xff] }
  0x7e   :  { %v924_v15 = vand.u32 4294901760, %v923_v23  ;;  %v935_v57 = vsub.f32 %v4907_v14, %v934_v61  ;;  %v4045_v9 = vpack.c.bf16 %v930_v63, %v918_v46  ;;  %v4239_v22 = vpack.c.bf16 %v934_v61, %v922_v31 }
  0x7f   :  { %364 = vmatmul.mubr.f32.gmra.mrb[6].mxu1 %v7225_v3  ;;  %2143 = vmatmul.mubr.f32.gmra.mrb[6].mxu0 %v7226_v56  ;;  %v7227_v3 = vand.u32 4294901760, %v5237_v39  ;;  %v7228_v56 = vand.u32 4294901760, %v5205_v2  ;;  %v5415_v27 = vand.u32 4294901760, %v68_v36  ;;  %v5417_v39 = vand.u32 4294901760, %v67_v24 }
  0x80   :  { %4044 = vmatpush1.bf16.msra.mxu1 %v4043_v25  ;;  %4236 = vmatpush1.bf16.msra.mxu0 %v4235_v13  ;;  %v936_v26 = vand.u32 4294901760, %v935_v57  ;;  %v940_v46 = vand.u32 4294901760, %v4909_v20  ;;  %v7233_v31 = vand.u32 4294901760, %v5242_v48  ;;  %v7234_v13 = vand.u32 4294901760, %v5208_v28 }
  0x81   :  { %374 = vmatprep.mubr.f32.mxu1 %v7227_v3  ;;  %2151 = vmatprep.mubr.f32.mxu0 %v7228_v56  ;;  %7229 = vst [vmem:[#allocation135_spill] sm:$0xff] %v5415_v27  ;;  %7230 = vst [vmem:[#allocation136_spill] sm:$0xff] %v5417_v39  ;;  %v5419_v3 = vand.u32 4294901760, %v70_v16  ;;  %v5421_v56 = vand.u32 4294901760, %v69_v38  ;;  %v5429_v61 = vsub.f32 %v68_v36, %v5415_v27  ;;  %v7236_v63 = vand.u32 4294901760, %v5296_v51 }
  0x82   :  { %4046 = vmatprep.subr.bf16.mxu1 %v4045_v9  ;;  %4238 = vmatprep.subr.bf16.mxu0 %v4237_v37  ;;  %v4047_v25 = vpack.c.bf16 %v936_v26, %v924_v15  ;;  %v952_v9 = vand.u32 4294901760, %v4915_v33  ;;  %v946_v37 = vand.u32 4294901760, %v4917_v34  ;;  %v7237_v57 = vand.u32 4294901760, %v5259_v30 }
  0x83   :  { %7231 = vst [vmem:[#allocation137_spill] sm:$0xff] %v5419_v3  ;;  %7232 = vst [vmem:[#allocation138_spill] sm:$0xff] %v5421_v56  ;;  %380 = vmatmul.mubr.f32.gmra.mrb[8].mxu1 %v7233_v31  ;;  %2155 = vmatmul.mubr.f32.gmra.mrb[8].mxu0 %v7234_v13  ;;  %v5438_v48 = vsub.f32 %v67_v24, %v5417_v39  ;;  %v5441_v31 = vsub.f32 %v70_v16, %v5419_v3  ;;  %v958_v36 = vand.u32 4294901760, %v4921_v43 }
  0x84   :  { %7235 = vst [vmem:[#allocation139_spill] sm:$0xff] %v5429_v61  ;;  %390 = vmatprep.mubr.f32.mxu1 %v7236_v63  ;;  %2163 = vmatprep.mubr.f32.mxu0 %v7237_v57  ;;  %v5444_v26 = vsub.f32 %v69_v38, %v5421_v56  ;;  %v6892_v15 = vand.u32 4294901760, %v5429_v61  ;;  %v941_v51 = vsub.f32 %v4909_v20, %v940_v46  ;;  %v7241_v59 = vand.u32 4294901760, %v5308_v17 }
  0x85   :  { %7238 = vst [vmem:[#allocation140_spill] sm:$0xff] %v5438_v48  ;;  %7239 = vst [vmem:[#allocation141_spill] sm:$0xff] %v5441_v31  ;;  %4048 = vmatpush1.bf16.msra.mxu1 %v4047_v25  ;;  %4240 = vmatpush1.bf16.msra.mxu0 %v4239_v22  ;;  %v953_v13 = vsub.f32 %v4915_v33, %v952_v9  ;;  %v4241_v63 = vpack.c.bf16 %v952_v9, %v940_v46  ;;  %v6894_v24 = vand.u32 4294901760, %v5438_v48 }
  0x86   :  { %7240 = vst [vmem:[#allocation142_spill] sm:$0xff] %v5444_v26  ;;  %v6897_v57 = vand.u32 4294901760, %v5441_v31  ;;  %v947_v38 = vsub.f32 %v4917_v34, %v946_v37  ;;  %v7242_v22 = vand.u32 4294901760, %v5268_v1  ;;  %v5461_v25 = vsub.f32 %v5429_v61, %v6892_v15  ;;  %v73_v15 = vld [vmem:[#allocation2 + $0xc0] sm:$0xff] }
  0x87   :  { %396 = vmatmul.mubr.f32.gmra.mrb[10].mxu1 %v7241_v59  ;;  %v942_v46 = vand.u32 4294901760, %v941_v51  ;;  %v954_v9 = vand.u32 4294901760, %v953_v13  ;;  %v959_v23 = vsub.f32 %v4921_v43, %v958_v36  ;;  %v7243_v18 = vand.u32 4294901760, %v5317_v7  ;;  %4242 = vmatprep.subr.bf16.mxu0 %v4241_v63 }
  0x88   :  { %2167 = vmatmul.mubr.f32.gmra.mrb[10].mxu0 %v7242_v22  ;;  %v7244_v16 = vand.u32 4294901760, %v5277_v53  ;;  %v5471_v17 = vsub.f32 %v5438_v48, %v6894_v24  ;;  %v5476_v59 = vsub.f32 %v5441_v31, %v6897_v57  ;;  %v7245_v51 = vand.u32 4294901760, %v5444_v26  ;;  %v74_v22 = vld [vmem:[#allocation2 + $0xc8] sm:$0xff] }
  0x89   :  { %406 = vmatprep.mubr.f32.mxu1 %v7243_v18  ;;  %v948_v7 = vand.u32 4294901760, %v947_v38  ;;  %v71_v18 = vld [vmem:[#allocation2 + $0xb0] sm:$0xff]  ;;  %v4049_v53 = vpack.c.bf16 %v954_v9, %v942_v46  ;;  %v960_v24 = vand.u32 4294901760, %v959_v23  ;;  %v4243_v1 = vpack.c.bf16 %v958_v36, %v946_v37 }
  0x8a   :  { %2175 = vmatprep.mubr.f32.mxu0 %v7244_v16  ;;  %v5481_v13 = vsub.f32 %v5444_v26, %v7245_v51  ;;  %v453_v16 = vand.u32 4294901760, %v5461_v25  ;;  %v5487_v2 = vand.u32 4294901760, %v72_v42  ;;  %v7247_v51 = vand.u32 4294901760, %v5322_v50 }
  0x8b   :  { %v7248_v38 = vand.u32 4294901760, %v5280_v29  ;;  %v4051_v56 = vpack.c.bf16 %v960_v24, %v948_v7  ;;  %v5493_v25 = vand.u32 4294901760, %v71_v18  ;;  %v5495_v63 = vand.u32 4294901760, %v74_v22  ;;  %4050 = vmatprep.subr.bf16.mxu1 %v4049_v53  ;;  %4244 = vmatpush1.bf16.msra.mxu0 %v4243_v1 }
  0x8c   :  { %7246 = vst [vmem:[#allocation143_spill] sm:$0xff] %v5487_v2  ;;  %412 = vmatmul.mubr.f32.gmra.mrb[12].mxu1 %v7247_v51  ;;  %v5497_v23 = vand.u32 4294901760, %v73_v15  ;;  %v7252_v37 = vand.u32 4294901760, %v5385_v41  ;;  %v7253_v36 = vand.u32 4294901760, %v5350_v8  ;;  %v5504_v46 = vsub.f32 %v72_v42, %v5487_v2 }
  0x8d   :  { %2179 = vmatmul.mubr.f32.gmra.mrb[12].mxu0 %v7248_v38  ;;  %7249 = vst [vmem:[#allocation144_spill] sm:$0xff] %v5493_v25  ;;  %7250 = vst [vmem:[#allocation145_spill] sm:$0xff] %v5495_v63  ;;  %v964_v50 = vand.u32 4294901760, %v4925_v49  ;;  %v976_v9 = vand.u32 4294901760, %v4929_v58  ;;  %v970_v24 = vand.u32 4294901760, %v4933_v60  ;;  %v5510_v7 = vsub.f32 %v71_v18, %v5493_v25  ;;  %4052 = vmatpush1.bf16.msra.mxu1 %v4051_v56 }
  0x8e   :  { %7251 = vst [vmem:[#allocation146_spill] sm:$0xff] %v5497_v23  ;;  %422 = vmatprep.mubr.f32.mxu1 %v7252_v37  ;;  %2187 = vmatprep.mubr.f32.mxu0 %v7253_v36  ;;  %7254 = vst [vmem:[#allocation147_spill] sm:$0xff] %v5504_v46  ;;  %v5513_v41 = vsub.f32 %v74_v22, %v5495_v63  ;;  %v5516_v51 = vsub.f32 %v73_v15, %v5497_v23  ;;  %v982_v42 = vand.u32 4294901760, %v4937_v62 }
  0x8f   :  { %7255 = vst [vmem:[#allocation148_spill] sm:$0xff] %v5510_v7  ;;  %v6902_v38 = vand.u32 4294901760, %v5504_v46  ;;  %v965_v37 = vsub.f32 %v4925_v49, %v964_v50  ;;  %v977_v36 = vsub.f32 %v4929_v58, %v976_v9  ;;  %v4245_v53 = vpack.c.bf16 %v976_v9, %v964_v50 }
  0x90   :  { %7256 = vst [vmem:[#allocation149_spill] sm:$0xff] %v5513_v41  ;;  %7257 = vst [vmem:[#allocation150_spill] sm:$0xff] %v5516_v51  ;;  %v7258_v1 = vand.u32 4294901760, %v5390_v45  ;;  %v7259_v18 = vand.u32 4294901760, %v5353_v21  ;;  %v6906_v22 = vand.u32 4294901760, %v5510_v7  ;;  %v6910_v15 = vand.u32 4294901760, %v5513_v41 }
  0x91   :  { %v971_v56 = vsub.f32 %v4933_v60, %v970_v24  ;;  %v7260_v57 = vand.u32 4294901760, %v5399_v47  ;;  %v7261_v30 = vand.u32 4294901760, %v5362_v11  ;;  %v5537_v45 = vsub.f32 %v5504_v46, %v6902_v38  ;;  %4246 = vmatprep.subr.bf16.mxu0 %v4245_v53  ;;  %v78_v38 = vld [vmem:[#allocation2 + $0xe8] sm:$0xff]  ;;  %v77_v11 = vld [vmem:[#allocation2 + $0xe0] sm:$0xff] }
  0x92   :  { %428 = vmatmul.mubr.f32.gmra.mrb[14].mxu1 %v7258_v1  ;;  %2191 = vmatmul.mubr.f32.gmra.mrb[14].mxu0 %v7259_v18  ;;  %v966_v50 = vand.u32 4294901760, %v965_v37  ;;  %v978_v9 = vand.u32 4294901760, %v977_v36  ;;  %v983_v1 = vsub.f32 %v4937_v62, %v982_v42  ;;  %v76_v18 = vld [vmem:[#allocation2 + $0xd8] sm:$0xff]  ;;  %v5543_v28 = vsub.f32 %v5510_v7, %v6906_v22  ;;  %v75_v36 = vld [vmem:[#allocation2 + $0xd0] sm:$0xff] }
  0x93   :  { %438 = vmatprep.mubr.f32.mxu1 %v7260_v57  ;;  %2199 = vmatprep.mubr.f32.mxu0 %v7261_v30  ;;  %v5548_v47 = vsub.f32 %v5513_v41, %v6910_v15  ;;  %v7262_v30 = vand.u32 4294901760, %v5516_v51  ;;  %v972_v37 = vand.u32 4294901760, %v971_v56  ;;  %v485_v21 = vand.u32 4294901760, %v5537_v45 }
  0x94   :  { %v4053_v8 = vpack.c.bf16 %v978_v9, %v966_v50  ;;  %v984_v22 = vand.u32 4294901760, %v983_v1  ;;  %v4247_v29 = vpack.c.bf16 %v982_v42, %v970_v24  ;;  %v7263_v23 = vand.u32 4294901760, %v5404_v6  ;;  %v7272_v1 = vld [vmem:[#allocation48_spill] sm:$0xff] }
  0x95   :  { %v5553_v57 = vsub.f32 %v5516_v51, %v7262_v30  ;;  %v7264_v15 = vand.u32 4294901760, %v5365_v32  ;;  %v5563_v56 = vand.u32 4294901760, %v76_v18  ;;  %v7266_v45 = vand.u32 4294901760, %v5429_v61 }
  0x96   :  { %444 = vmatmul.mubr.f32.gmra.mrb[16].mxu1 %v7263_v23  ;;  %v4055_v50 = vpack.c.bf16 %v984_v22, %v972_v37  ;;  %v5567_v24 = vand.u32 4294901760, %v75_v36  ;;  %v5569_v6 = vand.u32 4294901760, %v78_v38  ;;  %v5571_v23 = vand.u32 4294901760, %v77_v11  ;;  %4054 = vmatprep.subr.bf16.mxu1 %v4053_v8 }
  0x97   :  { %2203 = vmatmul.mubr.f32.gmra.mrb[16].mxu0 %v7264_v15  ;;  %7265 = vst [vmem:[#allocation151_spill] sm:$0xff] %v5563_v56  ;;  %454 = vmatprep.mubr.f32.mxu1 %v453_v16  ;;  %v5574_v42 = vsub.f32 %v76_v18, %v5563_v56  ;;  %v7271_v15 = vld [vmem:[#allocation46_spill] sm:$0xff]  ;;  %v1000_v53 = vand.u32 4294901760, %v7272_v1  ;;  %v7278_v18 = vand.u32 4294901760, %v5471_v17  ;;  %v7279_v63 = vand.u32 4294901760, %v5438_v48 }
  0x98   :  { %2211 = vmatprep.mubr.f32.mxu0 %v7266_v45  ;;  %7267 = vst [vmem:[#allocation152_spill] sm:$0xff] %v5567_v24  ;;  %7268 = vst [vmem:[#allocation153_spill] sm:$0xff] %v5569_v6  ;;  %4248 = vmatpush1.bf16.msra.mxu0 %v4247_v29  ;;  %v988_v9 = vand.u32 4294901760, %v7271_v15  ;;  %v7273_v16 = vld [vmem:[#allocation50_spill] sm:$0xff]  ;;  %v5580_v22 = vsub.f32 %v75_v36, %v5567_v24  ;;  %v5583_v37 = vsub.f32 %v78_v38, %v5569_v6  ;;  %v7277_v29 = vld [vmem:[#allocation51_spill] sm:$0xff] }
  0x99   :  { %7269 = vst [vmem:[#allocation154_spill] sm:$0xff] %v5571_v23  ;;  %7270 = vst [vmem:[#allocation155_spill] sm:$0xff] %v5574_v42  ;;  %v994_v30 = vand.u32 4294901760, %v7273_v16  ;;  %4056 = vmatpush1.bf16.msra.mxu1 %v4055_v50  ;;  %v5586_v45 = vsub.f32 %v77_v11, %v5571_v23  ;;  %v1006_v8 = vand.u32 4294901760, %v7277_v29  ;;  %v6919_v61 = vand.u32 4294901760, %v5574_v42  ;;  %v81_v6 = vld [vmem:[#allocation2 + $0x100] sm:$0xff] }
  0x9a   :  { %7274 = vst [vmem:[#allocation156_spill] sm:$0xff] %v5580_v22  ;;  %7275 = vst [vmem:[#allocation157_spill] sm:$0xff] %v5583_v37  ;;  %460 = vmatmul.mubr.f32.gmra.mrb[18].mxu1 %v7278_v18  ;;  %v989_v50 = vsub.f32 %v7271_v15, %v988_v9  ;;  %v1001_v36 = vsub.f32 %v7272_v1, %v1000_v53  ;;  %v4249_v32 = vpack.c.bf16 %v1000_v53, %v988_v9 }
  0x9b   :  { %7276 = vst [vmem:[#allocation158_spill] sm:$0xff] %v5586_v45  ;;  %2215 = vmatmul.mubr.f32.gmra.mrb[18].mxu0 %v7279_v63  ;;  %v7280_v38 = vand.u32 4294901760, %v5476_v59  ;;  %v7281_v11 = vand.u32 4294901760, %v5441_v31  ;;  %v6924_v23 = vand.u32 4294901760, %v5580_v22  ;;  %v6929_v17 = vand.u32 4294901760, %v5583_v37 }
  0x9c   :  { %v995_v63 = vsub.f32 %v7273_v16, %v994_v30  ;;  %v5607_v48 = vsub.f32 %v5574_v42, %v6919_v61  ;;  %v990_v53 = vand.u32 4294901760, %v989_v50  ;;  %v1002_v9 = vand.u32 4294901760, %v1001_v36  ;;  %4250 = vmatprep.subr.bf16.mxu0 %v4249_v32  ;;  %v79_v32 = vld [vmem:[#allocation2 + $0xf0] sm:$0xff]  ;;  %v82_v36 = vld [vmem:[#allocation2 + $0x108] sm:$0xff] }
  0x9d   :  { %470 = vmatprep.mubr.f32.mxu1 %v7280_v38  ;;  %2223 = vmatprep.mubr.f32.mxu0 %v7281_v11  ;;  %v1007_v59 = vsub.f32 %v7277_v29, %v1006_v8  ;;  %v80_v38 = vld [vmem:[#allocation2 + $0xf8] sm:$0xff]  ;;  %v5613_v11 = vsub.f32 %v5580_v22, %v6924_v23  ;;  %v5618_v18 = vsub.f32 %v5583_v37, %v6929_v17  ;;  %v7282_v31 = vand.u32 4294901760, %v5586_v45 }
  0x9e   :  { %v996_v50 = vand.u32 4294901760, %v995_v63  ;;  %v7283_v24 = vand.u32 4294901760, %v5481_v13  ;;  %v7284_v23 = vand.u32 4294901760, %v5444_v26  ;;  %v517_v56 = vand.u32 4294901760, %v5607_v48 }
  0x9f   :  { %v5623_v61 = vsub.f32 %v5586_v45, %v7282_v31  ;;  %v4057_v25 = vpack.c.bf16 %v1002_v9, %v990_v53  ;;  %v1008_v17 = vand.u32 4294901760, %v1007_v59  ;;  %v4251_v2 = vpack.c.bf16 %v1006_v8, %v994_v30  ;;  %v7292_v53 = vld [vmem:[#allocation54_spill] sm:$0xff]  ;;  %v7293_v59 = vld [vmem:[#allocation55_spill] sm:$0xff] }
  0xa0   :  { %476 = vmatmul.mubr.f32.gmra.mrb[20].mxu1 %v7283_v24  ;;  %2227 = vmatmul.mubr.f32.gmra.mrb[20].mxu0 %v7284_v23  ;;  %v7285_v3 = vand.u32 4294901760, %v5504_v46  ;;  %v523_v31 = vand.u32 4294901760, %v5613_v11  ;;  %v5635_v13 = vand.u32 4294901760, %v80_v38  ;;  %v5637_v23 = vand.u32 4294901760, %v79_v32 }
  0xa1   :  { %486 = vmatprep.mubr.f32.mxu1 %v485_v21  ;;  %4058 = vmatprep.subr.bf16.mxu1 %v4057_v25  ;;  %v4059_v24 = vpack.c.bf16 %v1008_v17, %v996_v50  ;;  %v5639_v48 = vand.u32 4294901760, %v82_v36  ;;  %v5641_v30 = vand.u32 4294901760, %v81_v6  ;;  %v1024_v9 = vand.u32 4294901760, %v7292_v53  ;;  %v7299_v50 = vld [vmem:[#allocation57_spill] sm:$0xff] }
  0xa2   :  { %2235 = vmatprep.mubr.f32.mxu0 %v7285_v3  ;;  %7286 = vst [vmem:[#allocation159_spill] sm:$0xff] %v5635_v13  ;;  %4252 = vmatpush1.bf16.msra.mxu0 %v4251_v2  ;;  %7287 = vst [vmem:[#allocation160_spill] sm:$0xff] %v5637_v23  ;;  %v5644_v21 = vsub.f32 %v80_v38, %v5635_v13  ;;  %v7291_v3 = vld [vmem:[#allocation53_spill] sm:$0xff]  ;;  %v1018_v11 = vand.u32 4294901760, %v7293_v59  ;;  %v7294_v39 = vand.u32 4294901760, %v5543_v28  ;;  %v7295_v2 = vand.u32 4294901760, %v5510_v7 }
  0xa3   :  { %7288 = vst [vmem:[#allocation161_spill] sm:$0xff] %v5639_v48  ;;  %7289 = vst [vmem:[#allocation162_spill] sm:$0xff] %v5641_v30  ;;  %v1012_v8 = vand.u32 4294901760, %v7291_v3  ;;  %v5654_v25 = vsub.f32 %v79_v32, %v5637_v23  ;;  %v5657_v17 = vsub.f32 %v82_v36, %v5639_v48  ;;  %v5660_v38 = vsub.f32 %v81_v6, %v5641_v30  ;;  %v84_v48 = vld [vmem:[#allocation2 + $0x118] sm:$0xff] }
  0xa4   :  { %7290 = vst [vmem:[#allocation163_spill] sm:$0xff] %v5644_v21  ;;  %492 = vmatmul.mubr.f32.gmra.mrb[22].mxu1 %v7294_v39  ;;  %2239 = vmatmul.mubr.f32.gmra.mrb[22].mxu0 %v7295_v2  ;;  %v1030_v63 = vand.u32 4294901760, %v7299_v50  ;;  %v7300_v46 = vand.u32 4294901760, %v5548_v47  ;;  %v7301_v28 = vand.u32 4294901760, %v5513_v41  ;;  %v6944_v39 = vand.u32 4294901760, %v5644_v21 }
  0xa5   :  { %7296 = vst [vmem:[#allocation164_spill] sm:$0xff] %v5654_v25  ;;  %7297 = vst [vmem:[#allocation165_spill] sm:$0xff] %v5657_v17  ;;  %v1013_v2 = vsub.f32 %v7291_v3, %v1012_v8  ;;  %v1025_v32 = vsub.f32 %v7292_v53, %v1024_v9  ;;  %v4253_v7 = vpack.c.bf16 %v1024_v9, %v1012_v8  ;;  %4060 = vmatpush1.bf16.msra.mxu1 %v4059_v24 }
  0xa6   :  { %7298 = vst [vmem:[#allocation166_spill] sm:$0xff] %v5660_v38  ;;  %502 = vmatprep.mubr.f32.mxu1 %v7300_v46  ;;  %2247 = vmatprep.mubr.f32.mxu0 %v7301_v28  ;;  %v6945_v36 = vand.u32 4294901760, %v5654_v25  ;;  %v6951_v6 = vand.u32 4294901760, %v5657_v17  ;;  %v6956_v26 = vand.u32 4294901760, %v5660_v38  ;;  %v1019_v47 = vsub.f32 %v7293_v59, %v1018_v11 }
  0xa7   :  { %v548_v46 = vsub.f32 %v5644_v21, %v6944_v39  ;;  %v1014_v28 = vand.u32 4294901760, %v1013_v2  ;;  %v1026_v41 = vand.u32 4294901760, %v1025_v32  ;;  %4254 = vmatprep.subr.bf16.mxu0 %v4253_v7  ;;  %v1031_v30 = vsub.f32 %v7299_v50, %v1030_v63  ;;  %v83_v32 = vld [vmem:[#allocation2 + $0x110] sm:$0xff]  ;;  %v85_v39 = vld [vmem:[#allocation2 + $0x120] sm:$0xff] }
  0xa8   :  { %v7302_v24 = vand.u32 4294901760, %v5553_v57  ;;  %v7303_v8 = vand.u32 4294901760, %v5516_v51  ;;  %v5685_v9 = vsub.f32 %v5654_v25, %v6945_v36  ;;  %v5690_v2 = vsub.f32 %v5657_v17, %v6951_v6 }
  0xa9   :  { %v5695_v7 = vsub.f32 %v5660_v38, %v6956_v26  ;;  %v1020_v57 = vand.u32 4294901760, %v1019_v47  ;;  %v549_v36 = vand.u32 4294901760, %v548_v46  ;;  %v4061_v51 = vpack.c.bf16 %v1026_v41, %v1014_v28  ;;  %v7312_v46 = vld [vmem:[#allocation60_spill] sm:$0xff] }
  0xaa   :  { %508 = vmatmul.mubr.f32.gmra.mrb[24].mxu1 %v7302_v24  ;;  %2251 = vmatmul.mubr.f32.gmra.mrb[24].mxu0 %v7303_v8  ;;  %v86_v24 = vld [vmem:[#allocation2 + $0x128] sm:$0xff]  ;;  %v7304_v8 = vand.u32 4294901760, %v5574_v42  ;;  %v1032_v23 = vand.u32 4294901760, %v1031_v30  ;;  %v4255_v13 = vpack.c.bf16 %v1030_v63, %v1018_v11  ;;  %v555_v6 = vand.u32 4294901760, %v5685_v9 }
  0xab   :  { %518 = vmatprep.mubr.f32.mxu1 %v517_v56  ;;  %v565_v27 = vand.u32 4294901760, %v5690_v2  ;;  %v5702_v26 = vand.u32 4294901760, %v84_v48  ;;  %4062 = vmatprep.subr.bf16.mxu1 %v4061_v51  ;;  %v5704_v50 = vand.u32 4294901760, %v83_v32  ;;  %v5706_v56 = vand.u32 4294901760, %v86_v24  ;;  %v7311_v30 = vld [vmem:[#allocation59_spill] sm:$0xff]  ;;  %v7313_v51 = vld [vmem:[#allocation62_spill] sm:$0xff] }
  0xac   :  { %2259 = vmatprep.mubr.f32.mxu0 %v7304_v8  ;;  %v4063_v47 = vpack.c.bf16 %v1032_v23, %v1020_v57  ;;  %4256 = vmatpush1.bf16.msra.mxu0 %v4255_v13  ;;  %v5708_v8 = vand.u32 4294901760, %v85_v39  ;;  %v7309_v41 = vand.u32 4294901760, %v5580_v22  ;;  %v1036_v11 = vand.u32 4294901760, %v7311_v30  ;;  %v7319_v57 = vld [vmem:[#allocation63_spill] sm:$0xff] }
  0xad   :  { %7305 = vst [vmem:[#allocation167_spill] sm:$0xff] %v5702_v26  ;;  %7306 = vst [vmem:[#allocation168_spill] sm:$0xff] %v5704_v50  ;;  %v5713_v63 = vsub.f32 %v84_v48, %v5702_v26  ;;  %v1048_v28 = vand.u32 4294901760, %v7312_v46  ;;  %v1042_v23 = vand.u32 4294901760, %v7313_v51  ;;  %v7314_v13 = vand.u32 4294901760, %v5618_v18 }
  0xae   :  { %7307 = vst [vmem:[#allocation169_spill] sm:$0xff] %v5706_v56  ;;  %7308 = vst [vmem:[#allocation170_spill] sm:$0xff] %v5708_v8  ;;  %524 = vmatmul.mubr.f32.gmra.mrb[26].mxu1 %v523_v31  ;;  %2263 = vmatmul.mubr.f32.gmra.mrb[26].mxu0 %v7309_v41  ;;  %v7315_v9 = vand.u32 4294901760, %v5583_v37  ;;  %v5723_v31 = vsub.f32 %v83_v32, %v5704_v50  ;;  %v5726_v2 = vsub.f32 %v86_v24, %v5706_v56 }
  0xaf   :  { %7310 = vst [vmem:[#allocation171_spill] sm:$0xff] %v5713_v63  ;;  %534 = vmatprep.mubr.f32.mxu1 %v7314_v13  ;;  %v5729_v48 = vsub.f32 %v85_v39, %v5708_v8  ;;  %v1054_v41 = vand.u32 4294901760, %v7319_v57  ;;  %4064 = vmatpush1.bf16.msra.mxu1 %v4063_v47  ;;  %v579_v0 = vand.u32 4294901760, %v5713_v63  ;;  %v1037_v18 = vsub.f32 %v7311_v30, %v1036_v11 }
  0xb0   :  { %2271 = vmatprep.mubr.f32.mxu0 %v7315_v9  ;;  %7316 = vst [vmem:[#allocation172_spill] sm:$0xff] %v5723_v31  ;;  %7317 = vst [vmem:[#allocation173_spill] sm:$0xff] %v5726_v2  ;;  %v1049_v13 = vsub.f32 %v7312_v46, %v1048_v28  ;;  %v4257_v37 = vpack.c.bf16 %v1048_v28, %v1036_v11  ;;  %v6970_v9 = vand.u32 4294901760, %v5723_v31  ;;  %v7320_v39 = vand.u32 4294901760, %v5623_v61  ;;  %v88_v28 = vld [vmem:[#allocation2 + $0x138] sm:$0xff] }
  0xb1   :  { %7318 = vst [vmem:[#allocation174_spill] sm:$0xff] %v5729_v48  ;;  %v1043_v22 = vsub.f32 %v7313_v51, %v1042_v23  ;;  %v7321_v47 = vand.u32 4294901760, %v5586_v45  ;;  %v580_v42 = vsub.f32 %v5713_v63, %v579_v0  ;;  %v1038_v8 = vand.u32 4294901760, %v1037_v18  ;;  %v90_v63 = vld [vmem:[#allocation2 + $0x148] sm:$0xff] }
  0xb2   :  { %540 = vmatmul.mubr.f32.gmra.mrb[28].mxu1 %v7320_v39  ;;  %v1050_v56 = vand.u32 4294901760, %v1049_v13  ;;  %v1055_v11 = vsub.f32 %v7319_v57, %v1054_v41  ;;  %v7322_v32 = vand.u32 4294901760, %v5644_v21  ;;  %v5750_v24 = vsub.f32 %v5723_v31, %v6970_v9  ;;  %v89_v21 = vld [vmem:[#allocation2 + $0x140] sm:$0xff]  ;;  %4258 = vmatprep.subr.bf16.mxu0 %v4257_v37 }
  0xb3   :  { %2275 = vmatmul.mubr.f32.gmra.mrb[28].mxu0 %v7321_v47  ;;  %550 = vmatprep.mubr.f32.mxu1 %v549_v36  ;;  %v7323_v61 = vand.u32 4294901760, %v5726_v2  ;;  %v7324_v18 = vand.u32 4294901760, %v5729_v48  ;;  %v1044_v47 = vand.u32 4294901760, %v1043_v22  ;;  %v87_v36 = vld [vmem:[#allocation2 + $0x130] sm:$0xff]  ;;  %v4259_v9 = vpack.c.bf16 %v1054_v41, %v1042_v23 }
  0xb4   :  { %2283 = vmatprep.mubr.f32.mxu0 %v7322_v32  ;;  %v581_v32 = vand.u32 4294901760, %v580_v42  ;;  %v4065_v45 = vpack.c.bf16 %v1050_v56, %v1038_v8  ;;  %v1056_v50 = vand.u32 4294901760, %v1055_v11  ;;  %v587_v26 = vand.u32 4294901760, %v5750_v24  ;;  %v7332_v23 = vld [vmem:[#allocation64_spill] sm:$0xff] }
  0xb5   :  { %v5755_v39 = vsub.f32 %v5726_v2, %v7323_v61  ;;  %v5760_v13 = vsub.f32 %v5729_v48, %v7324_v18  ;;  %v5765_v51 = vand.u32 4294901760, %v88_v28  ;;  %v7326_v18 = vand.u32 4294901760, %v5654_v25  ;;  %v7334_v11 = vld [vmem:[#allocation68_spill] sm:$0xff]  ;;  %4260 = vmatpush1.bf16.msra.mxu0 %v4259_v9 }
  0xb6   :  { %556 = vmatmul.mubr.f32.gmra.mrb[30].mxu1 %v555_v6  ;;  %v4067_v22 = vpack.c.bf16 %v1056_v50, %v1044_v47  ;;  %v5769_v46 = vand.u32 4294901760, %v87_v36  ;;  %v5771_v42 = vand.u32 4294901760, %v90_v63  ;;  %v5773_v37 = vand.u32 4294901760, %v89_v21  ;;  %v7333_v6 = vld [vmem:[#allocation66_spill] sm:$0xff]  ;;  %4066 = vmatprep.subr.bf16.mxu1 %v4065_v45 }
  0xb7   :  { %v597_v57 = vand.u32 4294901760, %v5755_v39  ;;  %7325 = vst [vmem:[#allocation175_spill] sm:$0xff] %v5765_v51  ;;  %2287 = vmatmul.mubr.f32.gmra.mrb[30].mxu0 %v7326_v18  ;;  %566 = vmatprep.mubr.f32.mxu1 %v565_v27  ;;  %v7330_v56 = vand.u32 4294901760, %v5657_v17  ;;  %v5778_v8 = vsub.f32 %v88_v28, %v5765_v51  ;;  %v1060_v41 = vand.u32 4294901760, %v7332_v23  ;;  %v7338_v18 = vld [vmem:[#allocation69_spill] sm:$0xff] }
  0xb8   :  { %7327 = vst [vmem:[#allocation176_spill] sm:$0xff] %v5769_v46  ;;  %7328 = vst [vmem:[#allocation177_spill] sm:$0xff] %v5771_v42  ;;  %v1072_v24 = vand.u32 4294901760, %v7333_v6  ;;  %v1066_v39 = vand.u32 4294901760, %v7334_v11  ;;  %v5784_v50 = vsub.f32 %v87_v36, %v5769_v46  ;;  %v5787_v47 = vsub.f32 %v90_v63, %v5771_v42  ;;  %4068 = vmatpush1.bf16.msra.mxu1 %v4067_v22 }
  0xb9   :  { %7329 = vst [vmem:[#allocation178_spill] sm:$0xff] %v5773_v37  ;;  %2295 = vmatprep.mubr.f32.mxu0 %v7330_v56  ;;  %7331 = vst [vmem:[#allocation179_spill] sm:$0xff] %v5778_v8  ;;  %v5790_v27 = vsub.f32 %v89_v21, %v5773_v37  ;;  %v1078_v28 = vand.u32 4294901760, %v7338_v18  ;;  %v611_v56 = vand.u32 4294901760, %v5778_v8  ;;  %v1061_v61 = vsub.f32 %v7332_v23, %v1060_v41 }
  0xba   :  { %7335 = vst [vmem:[#allocation64_spill] sm:$0xff] %v5784_v50  ;;  %7336 = vst [vmem:[#allocation66_spill] sm:$0xff] %v5787_v47  ;;  %v1073_v17 = vsub.f32 %v7333_v6, %v1072_v24  ;;  %v4261_v45 = vpack.c.bf16 %v1072_v24, %v1060_v41  ;;  %v7339_v9 = vand.u32 4294901760, %v5695_v7  ;;  %v7340_v36 = vand.u32 4294901760, %v5660_v38  ;;  %v92_v24 = vld [vmem:[#allocation2 + $0x158] sm:$0xff] }
  0xbb   :  { %7337 = vst [vmem:[#allocation68_spill] sm:$0xff] %v5790_v27  ;;  %v6989_v63 = vand.u32 4294901760, %v5784_v50  ;;  %v6990_v21 = vand.u32 4294901760, %v5787_v47  ;;  %v6994_v25 = vand.u32 4294901760, %v5790_v27  ;;  %v1067_v22 = vsub.f32 %v7334_v11, %v1066_v39 }
  0xbc   :  { %572 = vmatmul.mubr.f32.gmra.mrb[32].mxu1 %v7339_v9  ;;  %2299 = vmatmul.mubr.f32.gmra.mrb[32].mxu0 %v7340_v36  ;;  %v612_v37 = vsub.f32 %v5778_v8, %v611_v56  ;;  %v1062_v42 = vand.u32 4294901760, %v1061_v61  ;;  %v1074_v41 = vand.u32 4294901760, %v1073_v17  ;;  %v1079_v7 = vsub.f32 %v7338_v18, %v1078_v28  ;;  %v91_v17 = vld [vmem:[#allocation2 + $0x150] sm:$0xff]  ;;  %v94_v61 = vld [vmem:[#allocation2 + $0x168] sm:$0xff]  ;;  %v93_v8 = vld [vmem:[#allocation2 + $0x160] sm:$0xff] }
  0xbd   :  { %582 = vmatprep.mubr.f32.mxu1 %v581_v32  ;;  %2307 = vmatprep.mubr.f32.mxu0 %v579_v0  ;;  %v618_v9 = vsub.f32 %v5784_v50, %v6989_v63  ;;  %v5812_v36 = vsub.f32 %v5787_v47, %v6990_v21  ;;  %v5817_v0 = vsub.f32 %v5790_v27, %v6994_v25  ;;  %v1068_v32 = vand.u32 4294901760, %v1067_v22 }
  0xbe   :  { %4262 = vmatprep.subr.bf16.mxu0 %v4261_v45  ;;  %v613_v38 = vand.u32 4294901760, %v612_v37  ;;  %v4069_v46 = vpack.c.bf16 %v1074_v41, %v1062_v42  ;;  %v1080_v51 = vand.u32 4294901760, %v1079_v7  ;;  %v4263_v30 = vpack.c.bf16 %v1078_v28, %v1066_v39  ;;  %v7348_v28 = vld [vmem:[#allocation70_spill] sm:$0xff]  ;;  %v7349_v41 = vld [vmem:[#allocation72_spill] sm:$0xff] }
  0xbf   :  { %v7341_v63 = vand.u32 4294901760, %v5723_v31  ;;  %v619_v21 = vand.u32 4294901760, %v618_v9  ;;  %v629_v59 = vand.u32 4294901760, %v5812_v36  ;;  %v5823_v25 = vand.u32 4294901760, %v92_v24 }
  0xc0   :  { %588 = vmatmul.mubr.f32.gmra.mrb[34].mxu1 %v587_v26  ;;  %v7343_v45 = vand.u32 4294901760, %v5726_v2  ;;  %v4071_v22 = vpack.c.bf16 %v1080_v51, %v1068_v32  ;;  %v5827_v37 = vand.u32 4294901760, %v91_v17  ;;  %v5829_v42 = vand.u32 4294901760, %v94_v61  ;;  %4070 = vmatprep.subr.bf16.mxu1 %v4069_v46 }
  0xc1   :  { %2311 = vmatmul.mubr.f32.gmra.mrb[34].mxu0 %v7341_v63  ;;  %7342 = vst [vmem:[#allocation69_spill] sm:$0xff] %v5823_v25  ;;  %598 = vmatprep.mubr.f32.mxu1 %v597_v57  ;;  %v5831_v26 = vand.u32 4294901760, %v93_v8  ;;  %v5834_v39 = vsub.f32 %v92_v24, %v5823_v25  ;;  %v1084_v63 = vand.u32 4294901760, %v7348_v28  ;;  %v1096_v7 = vand.u32 4294901760, %v7349_v41  ;;  %v7350_v57 = vld [vmem:[#allocation73_spill] sm:$0xff] }
  0xc2   :  { %2319 = vmatprep.mubr.f32.mxu0 %v7343_v45  ;;  %7344 = vst [vmem:[#allocation180_spill] sm:$0xff] %v5827_v37  ;;  %7345 = vst [vmem:[#allocation181_spill] sm:$0xff] %v5829_v42  ;;  %4264 = vmatpush1.bf16.msra.mxu0 %v4263_v30  ;;  %v1090_v9 = vand.u32 4294901760, %v7350_v57  ;;  %v5840_v51 = vsub.f32 %v91_v17, %v5827_v37  ;;  %v5843_v36 = vsub.f32 %v94_v61, %v5829_v42  ;;  %v7354_v30 = vld [vmem:[#allocation75_spill] sm:$0xff]  ;;  %v96_v42 = vld [vmem:[#allocation2 + $0x178] sm:$0xff] }
  0xc3   :  { %7346 = vst [vmem:[#allocation182_spill] sm:$0xff] %v5831_v26  ;;  %7347 = vst [vmem:[#allocation183_spill] sm:$0xff] %v5834_v39  ;;  %4072 = vmatpush1.bf16.msra.mxu1 %v4071_v22  ;;  %v5846_v32 = vsub.f32 %v93_v8, %v5831_v26  ;;  %v1102_v46 = vand.u32 4294901760, %v7354_v30  ;;  %v7355_v24 = vand.u32 4294901760, %v5760_v13  ;;  %v7356_v45 = vand.u32 4294901760, %v5729_v48  ;;  %v95_v37 = vld [vmem:[#allocation2 + $0x170] sm:$0xff] }
  0xc4   :  { %7351 = vst [vmem:[#allocation70_spill] sm:$0xff] %v5840_v51  ;;  %7352 = vst [vmem:[#allocation72_spill] sm:$0xff] %v5843_v36  ;;  %v643_v19 = vand.u32 4294901760, %v5834_v39  ;;  %v1085_v22 = vsub.f32 %v7348_v28, %v1084_v63  ;;  %v1097_v17 = vsub.f32 %v7349_v41, %v1096_v7  ;;  %v4265_v2 = vpack.c.bf16 %v1096_v7, %v1084_v63 }
  0xc5   :  { %7353 = vst [vmem:[#allocation73_spill] sm:$0xff] %v5846_v32  ;;  %604 = vmatmul.mubr.f32.gmra.mrb[36].mxu1 %v7355_v24  ;;  %2323 = vmatmul.mubr.f32.gmra.mrb[36].mxu0 %v7356_v45  ;;  %v649_v8 = vand.u32 4294901760, %v5840_v51  ;;  %v7010_v61 = vand.u32 4294901760, %v5843_v36  ;;  %v7013_v31 = vand.u32 4294901760, %v5846_v32  ;;  %v1091_v13 = vsub.f32 %v7350_v57, %v1090_v9 }
  0xc6   :  { %614 = vmatprep.mubr.f32.mxu1 %v613_v38  ;;  %2331 = vmatprep.mubr.f32.mxu0 %v611_v56  ;;  %v644_v24 = vsub.f32 %v5834_v39, %v643_v19  ;;  %v1086_v45 = vand.u32 4294901760, %v1085_v22  ;;  %v1098_v48 = vand.u32 4294901760, %v1097_v17  ;;  %v1103_v26 = vsub.f32 %v7354_v30, %v1102_v46  ;;  %v98_v39 = vld [vmem:[#allocation2 + $0x188] sm:$0xff]  ;;  %v97_v22 = vld [vmem:[#allocation2 + $0x180] sm:$0xff] }
  0xc7   :  { %4266 = vmatprep.subr.bf16.mxu0 %v4265_v2  ;;  %v650_v63 = vsub.f32 %v5840_v51, %v649_v8  ;;  %v660_v38 = vsub.f32 %v5843_v36, %v7010_v61  ;;  %v5869_v56 = vsub.f32 %v5846_v32, %v7013_v31  ;;  %v1092_v7 = vand.u32 4294901760, %v1091_v13 }
  0xc8   :  { %v7357_v2 = vand.u32 4294901760, %v5784_v50  ;;  %v645_v17 = vand.u32 4294901760, %v644_v24  ;;  %v4073_v25 = vpack.c.bf16 %v1098_v48, %v1086_v45  ;;  %v1104_v51 = vand.u32 4294901760, %v1103_v26  ;;  %v7364_v26 = vld [vmem:[#allocation77_spill] sm:$0xff]  ;;  %v7366_v24 = vld [vmem:[#allocation80_spill] sm:$0xff] }
  0xc9   :  { %620 = vmatmul.mubr.f32.gmra.mrb[38].mxu1 %v619_v21  ;;  %v4267_v40 = vpack.c.bf16 %v1102_v46, %v1090_v9  ;;  %v7358_v61 = vand.u32 4294901760, %v5787_v47  ;;  %v651_v53 = vand.u32 4294901760, %v650_v63  ;;  %v661_v3 = vand.u32 4294901760, %v660_v38  ;;  %v7365_v46 = vld [vmem:[#allocation78_spill] sm:$0xff]  ;;  %v7372_v38 = vld [vmem:[#allocation81_spill] sm:$0xff] }
  0xca   :  { %2335 = vmatmul.mubr.f32.gmra.mrb[38].mxu0 %v7357_v2  ;;  %630 = vmatprep.mubr.f32.mxu1 %v629_v59  ;;  %v667_v31 = vand.u32 4294901760, %v5869_v56  ;;  %v5876_v13 = vand.u32 4294901760, %v96_v42  ;;  %v4075_v29 = vpack.c.bf16 %v1104_v51, %v1092_v7  ;;  %v5878_v21 = vand.u32 4294901760, %v95_v37 }
  0xcb   :  { %2343 = vmatprep.mubr.f32.mxu0 %v7358_v61  ;;  %4074 = vmatprep.subr.bf16.mxu1 %v4073_v25  ;;  %v5880_v2 = vand.u32 4294901760, %v98_v39  ;;  %v5882_v48 = vand.u32 4294901760, %v97_v22  ;;  %v1108_v9 = vand.u32 4294901760, %v7364_v26  ;;  %v1120_v61 = vand.u32 4294901760, %v7365_v46 }
  0xcc   :  { %7359 = vst [vmem:[#allocation75_spill] sm:$0xff] %v5876_v13  ;;  %4268 = vmatpush1.bf16.msra.mxu0 %v4267_v40  ;;  %7360 = vst [vmem:[#allocation184_spill] sm:$0xff] %v5878_v21  ;;  %v5885_v59 = vsub.f32 %v96_v42, %v5876_v13  ;;  %v1114_v45 = vand.u32 4294901760, %v7366_v24  ;;  %v7367_v63 = vand.u32 4294901760, %v5817_v0  ;;  %v7368_v40 = vand.u32 4294901760, %v5790_v27  ;;  %4076 = vmatpush1.bf16.msra.mxu1 %v4075_v29 }
  0xcd   :  { %7361 = vst [vmem:[#allocation185_spill] sm:$0xff] %v5880_v2  ;;  %7362 = vst [vmem:[#allocation186_spill] sm:$0xff] %v5882_v48  ;;  %v5895_v25 = vsub.f32 %v95_v37, %v5878_v21  ;;  %v5898_v51 = vsub.f32 %v98_v39, %v5880_v2  ;;  %v5901_v42 = vsub.f32 %v97_v22, %v5882_v48  ;;  %v1126_v56 = vand.u32 4294901760, %v7372_v38  ;;  %v100_v48 = vld [vmem:[#allocation2 + $0x198] sm:$0xff]  ;;  %v99_v21 = vld [vmem:[#allocation2 + $0x190] sm:$0xff] }
  0xce   :  { %7363 = vst [vmem:[#allocation187_spill] sm:$0xff] %v5885_v59  ;;  %636 = vmatmul.mubr.f32.gmra.mrb[40].mxu1 %v7367_v63  ;;  %2347 = vmatmul.mubr.f32.gmra.mrb[40].mxu0 %v7368_v40  ;;  %v675_v7 = vand.u32 4294901760, %v5885_v59  ;;  %v1109_v0 = vsub.f32 %v7364_v26, %v1108_v9  ;;  %v1121_v63 = vsub.f32 %v7365_v46, %v1120_v61  ;;  %v5923_v44 = vand.u32 4294901760, %v100_v48 }
  0xcf   :  { %7369 = vst [vmem:[#allocation77_spill] sm:$0xff] %v5895_v25  ;;  %7370 = vst [vmem:[#allocation78_spill] sm:$0xff] %v5898_v51  ;;  %646 = vmatprep.mubr.f32.mxu1 %v645_v17  ;;  %2355 = vmatprep.mubr.f32.mxu0 %v643_v19  ;;  %v4269_v40 = vpack.c.bf16 %v1120_v61, %v1108_v9  ;;  %v681_v37 = vand.u32 4294901760, %v5895_v25  ;;  %v691_v39 = vand.u32 4294901760, %v5898_v51  ;;  %v7032_v27 = vand.u32 4294901760, %v5901_v42 }
  0xd0   :  { %7371 = vst [vmem:[#allocation80_spill] sm:$0xff] %v5901_v42  ;;  %v1115_v22 = vsub.f32 %v7366_v24, %v1114_v45  ;;  %v676_v47 = vsub.f32 %v5885_v59, %v675_v7  ;;  %v1110_v17 = vand.u32 4294901760, %v1109_v0  ;;  %v1122_v19 = vand.u32 4294901760, %v1121_v63  ;;  %v102_v59 = vld [vmem:[#allocation2 + $0x1a8] sm:$0xff]  ;;  %v101_v0 = vld [vmem:[#allocation2 + $0x1a0] sm:$0xff]  ;;  %7374 = vst [vmem:[#allocation81_spill] sm:$0xff] %v5923_v44 }
  0xd1   :  { %4270 = vmatprep.subr.bf16.mxu0 %v4269_v40  ;;  %v1127_v50 = vsub.f32 %v7372_v38, %v1126_v56  ;;  %v682_v29 = vsub.f32 %v5895_v25, %v681_v37  ;;  %v692_v9 = vsub.f32 %v5898_v51, %v691_v39  ;;  %v5918_v61 = vsub.f32 %v5901_v42, %v7032_v27 }
  0xd2   :  { %652 = vmatmul.mubr.f32.gmra.mrb[42].mxu1 %v651_v53  ;;  %2359 = vmatmul.mubr.f32.gmra.mrb[42].mxu0 %v649_v8  ;;  %v1116_v2 = vand.u32 4294901760, %v1115_v22  ;;  %v7373_v63 = vand.u32 4294901760, %v5843_v36  ;;  %v677_v40 = vand.u32 4294901760, %v676_v47  ;;  %v4077_v53 = vpack.c.bf16 %v1122_v19, %v1110_v17  ;;  %v7381_v19 = vld [vmem:[#allocation84_spill] sm:$0xff]  ;;  %v104_v36 = vld [vmem:[#allocation2 + $0x1b8] sm:$0xff] }
  0xd3   :  { %662 = vmatprep.mubr.f32.mxu1 %v661_v3  ;;  %v1128_v8 = vand.u32 4294901760, %v1127_v50  ;;  %v4271_v13 = vpack.c.bf16 %v1126_v56, %v1114_v45  ;;  %v683_v25 = vand.u32 4294901760, %v682_v29  ;;  %v693_v16 = vand.u32 4294901760, %v692_v9  ;;  %v7380_v56 = vld [vmem:[#allocation83_spill] sm:$0xff]  ;;  %v7385_v9 = vld [vmem:[#allocation86_spill] sm:$0xff] }
  0xd4   :  { %2367 = vmatprep.mubr.f32.mxu0 %v7373_v63  ;;  %v699_v51 = vand.u32 4294901760, %v5918_v61  ;;  %4078 = vmatprep.subr.bf16.mxu1 %v4077_v53  ;;  %v5925_v22 = vand.u32 4294901760, %v99_v21  ;;  %v5927_v1 = vand.u32 4294901760, %v102_v59  ;;  %v5929_v3 = vand.u32 4294901760, %v101_v0 }
  0xd5   :  { %v4079_v27 = vpack.c.bf16 %v1128_v8, %v1116_v2  ;;  %4272 = vmatpush1.bf16.msra.mxu0 %v4271_v13  ;;  %v7378_v47 = vand.u32 4294901760, %v5846_v32  ;;  %v5934_v50 = vsub.f32 %v100_v48, %v5923_v44  ;;  %v1132_v45 = vand.u32 4294901760, %v5029_v35 }
  0xd6   :  { %7375 = vst [vmem:[#allocation188_spill] sm:$0xff] %v5925_v22  ;;  %7376 = vst [vmem:[#allocation189_spill] sm:$0xff] %v5927_v1  ;;  %668 = vmatmul.mubr.f32.gmra.mrb[44].mxu1 %v667_v31  ;;  %v1144_v17 = vand.u32 4294901760, %v7380_v56  ;;  %v1138_v2 = vand.u32 4294901760, %v7381_v19  ;;  %v5940_v13 = vsub.f32 %v99_v21, %v5925_v22  ;;  %v5943_v29 = vsub.f32 %v102_v59, %v5927_v1  ;;  %v105_v22 = vld [vmem:[#allocation2 + $0x1c0] sm:$0xff] }
  0xd7   :  { %7377 = vst [vmem:[#allocation190_spill] sm:$0xff] %v5929_v3  ;;  %2371 = vmatmul.mubr.f32.gmra.mrb[44].mxu0 %v7378_v47  ;;  %7379 = vst [vmem:[#allocation191_spill] sm:$0xff] %v5934_v50  ;;  %678 = vmatprep.mubr.f32.mxu1 %v677_v40  ;;  %v5946_v31 = vsub.f32 %v101_v0, %v5929_v3  ;;  %v1150_v48 = vand.u32 4294901760, %v7385_v9  ;;  %v707_v61 = vand.u32 4294901760, %v5934_v50  ;;  %v5963_v62 = vand.u32 4294901760, %v104_v36 }
  0xd8   :  { %2379 = vmatprep.mubr.f32.mxu0 %v675_v7  ;;  %7382 = vst [vmem:[#allocation83_spill] sm:$0xff] %v5940_v13  ;;  %7383 = vst [vmem:[#allocation84_spill] sm:$0xff] %v5943_v29  ;;  %4080 = vmatpush1.bf16.msra.mxu1 %v4079_v27  ;;  %v1133_v63 = vsub.f32 %v5029_v35, %v1132_v45  ;;  %v1145_v53 = vsub.f32 %v7380_v56, %v1144_v17  ;;  %v713_v7 = vand.u32 4294901760, %v5940_v13 }
  0xd9   :  { %7384 = vst [vmem:[#allocation192_spill] sm:$0xff] %v5946_v31  ;;  %v4273_v40 = vpack.c.bf16 %v1144_v17, %v1132_v45  ;;  %v723_v21 = vand.u32 4294901760, %v5943_v29  ;;  %v7049_v59 = vand.u32 4294901760, %v5946_v31  ;;  %v1139_v8 = vsub.f32 %v7381_v19, %v1138_v2  ;;  %7386 = vst [vmem:[#allocation86_spill] sm:$0xff] %v5963_v62 }
  0xda   :  { %684 = vmatmul.mubr.f32.gmra.mrb[46].mxu1 %v683_v25  ;;  %v708_v0 = vsub.f32 %v5934_v50, %v707_v61  ;;  %v1134_v27 = vand.u32 4294901760, %v1133_v63  ;;  %v1146_v47 = vand.u32 4294901760, %v1145_v53  ;;  %v1151_v32 = vsub.f32 %v7385_v9, %v1150_v48  ;;  %v103_v25 = vld [vmem:[#allocation2 + $0x1b0] sm:$0xff] }
  0xdb   :  { %2383 = vmatmul.mubr.f32.gmra.mrb[46].mxu0 %v681_v37  ;;  %694 = vmatprep.mubr.f32.mxu1 %v693_v16  ;;  %v714_v45 = vsub.f32 %v5940_v13, %v713_v7  ;;  %v724_v17 = vsub.f32 %v5943_v29, %v723_v21  ;;  %v730_v3 = vsub.f32 %v5946_v31, %v7049_v59  ;;  %v1140_v1 = vand.u32 4294901760, %v1139_v8  ;;  %v106_v37 = vld [vmem:[#allocation2 + $0x1c8] sm:$0xff] }
  0xdc   :  { %2391 = vmatprep.mubr.f32.mxu0 %v691_v39  ;;  %v709_v50 = vand.u32 4294901760, %v708_v0  ;;  %v4081_v63 = vpack.c.bf16 %v1146_v47, %v1134_v27  ;;  %4274 = vmatprep.subr.bf16.mxu0 %v4273_v40  ;;  %v1152_v53 = vand.u32 4294901760, %v1151_v32  ;;  %v4275_v44 = vpack.c.bf16 %v1150_v48, %v1138_v2  ;;  %v7392_v2 = vld [vmem:[#allocation87_spill] sm:$0xff]  ;;  %v7393_v48 = vld [vmem:[#allocation89_spill] sm:$0xff] }
  0xdd   :  { %v715_v15 = vand.u32 4294901760, %v714_v45  ;;  %v725_v16 = vand.u32 4294901760, %v724_v17  ;;  %v731_v39 = vand.u32 4294901760, %v730_v3  ;;  %v7387_v29 = vand.u32 4294901760, %v5901_v42 }
  0xde   :  { %700 = vmatmul.mubr.f32.gmra.mrb[48].mxu1 %v699_v51  ;;  %v4083_v13 = vpack.c.bf16 %v1152_v53, %v1140_v1  ;;  %v5967_v59 = vand.u32 4294901760, %v103_v25  ;;  %v5969_v8 = vand.u32 4294901760, %v106_v37  ;;  %v5971_v60 = vand.u32 4294901760, %v105_v22  ;;  %v7394_v51 = vld [vmem:[#allocation91_spill] sm:$0xff]  ;;  %4082 = vmatprep.subr.bf16.mxu1 %v4081_v63 }
  0xdf   :  { %2395 = vmatmul.mubr.f32.gmra.mrb[48].mxu0 %v7387_v29  ;;  %710 = vmatprep.mubr.f32.mxu1 %v709_v50  ;;  %v5974_v32 = vsub.f32 %v104_v36, %v5963_v62  ;;  %v1156_v3 = vand.u32 4294901760, %v7392_v2  ;;  %v1168_v40 = vand.u32 4294901760, %v7393_v48  ;;  %v1162_v0 = vand.u32 4294901760, %v7394_v51 }
  0xe0   :  { %7388 = vst [vmem:[#allocation193_spill] sm:$0xff] %v5967_v59  ;;  %7389 = vst [vmem:[#allocation194_spill] sm:$0xff] %v5969_v8  ;;  %2403 = vmatprep.mubr.f32.mxu0 %v707_v61  ;;  %4276 = vmatpush1.bf16.msra.mxu0 %v4275_v44  ;;  %v5980_v1 = vsub.f32 %v103_v25, %v5967_v59  ;;  %v5983_v29 = vsub.f32 %v106_v37, %v5969_v8  ;;  %v7398_v61 = vld [vmem:[#allocation92_spill] sm:$0xff]  ;;  %v7399_v62 = vand.u32 4294901760, %v5946_v31 }
  0xe1   :  { %7390 = vst [vmem:[#allocation195_spill] sm:$0xff] %v5971_v60  ;;  %7391 = vst [vmem:[#allocation196_spill] sm:$0xff] %v5974_v32  ;;  %v5986_v50 = vsub.f32 %v105_v22, %v5971_v60  ;;  %v1174_v36 = vand.u32 4294901760, %v7398_v61  ;;  %4084 = vmatpush1.bf16.msra.mxu1 %v4083_v13  ;;  %v739_v27 = vand.u32 4294901760, %v5974_v32  ;;  %v1157_v47 = vsub.f32 %v7392_v2, %v1156_v3  ;;  %v108_v60 = vld [vmem:[#allocation2 + $0x1d8] sm:$0xff]  ;;  %v107_v8 = vld [vmem:[#allocation2 + $0x1d0] sm:$0xff] }
  0xe2   :  { %7395 = vst [vmem:[#allocation87_spill] sm:$0xff] %v5980_v1  ;;  %7396 = vst [vmem:[#allocation89_spill] sm:$0xff] %v5983_v29  ;;  %v1169_v45 = vsub.f32 %v7393_v48, %v1168_v40  ;;  %v4277_v17 = vpack.c.bf16 %v1168_v40, %v1156_v3  ;;  %716 = vmatmul.mubr.f32.gmra.mrb[50].mxu1 %v715_v15  ;;  %v745_v44 = vand.u32 4294901760, %v5980_v1  ;;  %v755_v25 = vand.u32 4294901760, %v5983_v29 }
  0xe3   :  { %7397 = vst [vmem:[#allocation91_spill] sm:$0xff] %v5986_v50  ;;  %2407 = vmatmul.mubr.f32.gmra.mrb[50].mxu0 %v713_v7  ;;  %v7065_v37 = vand.u32 4294901760, %v5986_v50  ;;  %v1163_v22 = vsub.f32 %v7394_v51, %v1162_v0  ;;  %726 = vmatprep.mubr.f32.mxu1 %v725_v16  ;;  %v740_v13 = vsub.f32 %v5974_v32, %v739_v27  ;;  %v1158_v63 = vand.u32 4294901760, %v1157_v47  ;;  %v110_v16 = vld [vmem:[#allocation2 + $0x1e8] sm:$0xff] }
  0xe4   :  { %2415 = vmatprep.mubr.f32.mxu0 %v723_v21  ;;  %v1170_v53 = vand.u32 4294901760, %v1169_v45  ;;  %v1175_v42 = vsub.f32 %v7398_v61, %v1174_v36  ;;  %v746_v15 = vsub.f32 %v5980_v1, %v745_v44  ;;  %v756_v7 = vsub.f32 %v5983_v29, %v755_v25  ;;  %4278 = vmatprep.subr.bf16.mxu0 %v4277_v17  ;;  %v109_v21 = vld [vmem:[#allocation2 + $0x1e0] sm:$0xff] }
  0xe5   :  { %v762_v3 = vsub.f32 %v5986_v50, %v7065_v37  ;;  %v1164_v40 = vand.u32 4294901760, %v1163_v22  ;;  %v741_v59 = vand.u32 4294901760, %v740_v13  ;;  %v4279_v45 = vpack.c.bf16 %v1174_v36, %v1162_v0  ;;  %v7406_v0 = vld [vmem:[#allocation95_spill] sm:$0xff] }
  0xe6   :  { %v4085_v32 = vpack.c.bf16 %v1170_v53, %v1158_v63  ;;  %v1176_v47 = vand.u32 4294901760, %v1175_v42  ;;  %732 = vmatmul.mubr.f32.gmra.mrb[52].mxu1 %v731_v39  ;;  %v747_v1 = vand.u32 4294901760, %v746_v15  ;;  %v757_v58 = vand.u32 4294901760, %v756_v7  ;;  %v7407_v63 = vld [vmem:[#allocation97_spill] sm:$0xff] }
  0xe7   :  { %2419 = vmatmul.mubr.f32.gmra.mrb[52].mxu0 %v7399_v62  ;;  %v763_v29 = vand.u32 4294901760, %v762_v3  ;;  %v6005_v49 = vand.u32 4294901760, %v108_v60  ;;  %742 = vmatprep.mubr.f32.mxu1 %v741_v59  ;;  %v6007_v22 = vand.u32 4294901760, %v107_v8  ;;  %v6009_v37 = vand.u32 4294901760, %v110_v16  ;;  %v7405_v62 = vld [vmem:[#allocation93_spill] sm:$0xff] }
  0xe8   :  { %2427 = vmatprep.mubr.f32.mxu0 %v739_v27  ;;  %v4087_v17 = vpack.c.bf16 %v1176_v47, %v1164_v40  ;;  %v6011_v13 = vand.u32 4294901760, %v109_v21  ;;  %4086 = vmatprep.subr.bf16.mxu1 %v4085_v32  ;;  %v1180_v39 = vand.u32 4294901760, %v7405_v62  ;;  %v1192_v36 = vand.u32 4294901760, %v7406_v0  ;;  %v7411_v32 = vld [vmem:[#allocation100_spill] sm:$0xff] }
  0xe9   :  { %7400 = vst [vmem:[#allocation92_spill] sm:$0xff] %v6005_v49  ;;  %7401 = vst [vmem:[#allocation197_spill] sm:$0xff] %v6007_v22  ;;  %4280 = vmatpush1.bf16.msra.mxu0 %v4279_v45  ;;  %v6014_v42 = vsub.f32 %v108_v60, %v6005_v49  ;;  %v1186_v53 = vand.u32 4294901760, %v7407_v63  ;;  %v6020_v59 = vsub.f32 %v107_v8, %v6007_v22  ;;  %v1198_v7 = vand.u32 4294901760, %v7411_v32 }
  0xea   :  { %7402 = vst [vmem:[#allocation198_spill] sm:$0xff] %v6009_v37  ;;  %7403 = vst [vmem:[#allocation199_spill] sm:$0xff] %v6011_v13  ;;  %4088 = vmatpush1.bf16.msra.mxu1 %v4087_v17  ;;  %v6023_v27 = vsub.f32 %v110_v16, %v6009_v37  ;;  %v6026_v15 = vsub.f32 %v109_v21, %v6011_v13  ;;  %v1181_v3 = vsub.f32 %v7405_v62, %v1180_v39  ;;  %v112_v13 = vld [vmem:[#allocation2 + $0x1f8] sm:$0xff]  ;;  %v111_v37 = vld [vmem:[#allocation2 + $0x1f0] sm:$0xff] }
  0xeb   :  { %7404 = vst [vmem:[#allocation200_spill] sm:$0xff] %v6014_v42  ;;  %7408 = vst [vmem:[#allocation93_spill] sm:$0xff] %v6020_v59  ;;  %748 = vmatmul.mubr.f32.gmra.mrb[54].mxu1 %v747_v1  ;;  %2431 = vmatmul.mubr.f32.gmra.mrb[54].mxu0 %v745_v44  ;;  %v771_v60 = vand.u32 4294901760, %v6014_v42  ;;  %v1193_v40 = vsub.f32 %v7406_v0, %v1192_v36  ;;  %v4281_v47 = vpack.c.bf16 %v1192_v36, %v1180_v39 }
  0xec   :  { %7409 = vst [vmem:[#allocation95_spill] sm:$0xff] %v6023_v27  ;;  %7410 = vst [vmem:[#allocation97_spill] sm:$0xff] %v6026_v15  ;;  %758 = vmatprep.mubr.f32.mxu1 %v757_v58  ;;  %2439 = vmatprep.mubr.f32.mxu0 %v755_v25  ;;  %v777_v8 = vand.u32 4294901760, %v6020_v59  ;;  %v787_v16 = vand.u32 4294901760, %v6023_v27  ;;  %v793_v21 = vand.u32 4294901760, %v6026_v15  ;;  %v1187_v45 = vsub.f32 %v7407_v63, %v1186_v53 }
  0xed   :  { %v772_v1 = vsub.f32 %v6014_v42, %v771_v60  ;;  %v1182_v44 = vand.u32 4294901760, %v1181_v3  ;;  %v1194_v17 = vand.u32 4294901760, %v1193_v40  ;;  %4282 = vmatprep.subr.bf16.mxu0 %v4281_v47  ;;  %v1199_v31 = vsub.f32 %v7411_v32, %v1198_v7 }
  0xee   :  { %v778_v39 = vsub.f32 %v6020_v59, %v777_v8  ;;  %v788_v58 = vsub.f32 %v6023_v27, %v787_v16  ;;  %v794_v25 = vsub.f32 %v6026_v15, %v793_v21  ;;  %v1188_v36 = vand.u32 4294901760, %v1187_v45  ;;  %v7416_v45 = vld [vmem:[#allocation15_spill] sm:$0xff] }
  0xef   :  { %764 = vmatmul.mubr.f32.gmra.mrb[56].mxu1 %v763_v29  ;;  %v7412_v22 = vand.u32 4294901760, %v5986_v50  ;;  %v773_v49 = vand.u32 4294901760, %v772_v1  ;;  %v4089_v42 = vpack.c.bf16 %v1194_v17, %v1182_v44  ;;  %v1200_v3 = vand.u32 4294901760, %v1199_v31  ;;  %v7480_v17 = vld [vmem:[#allocation135_spill] sm:$0xff] }
  0xf0   :  { %v4283_v40 = vpack.c.bf16 %v1198_v7, %v1186_v53  ;;  %v779_v47 = vand.u32 4294901760, %v778_v39  ;;  %v789_v43 = vand.u32 4294901760, %v788_v58  ;;  %v6043_v34 = vand.u32 4294901760, %v112_v13  ;;  %v7419_v7 = vld [vmem:[#allocation14_spill] sm:$0xff]  ;;  %v7472_v58 = vld [vmem:[#allocation129_spill] sm:$0xff] }
  0xf1   :  { %2443 = vmatmul.mubr.f32.gmra.mrb[56].mxu0 %v7412_v22  ;;  %774 = vmatprep.mubr.f32.mxu1 %v773_v49  ;;  %v4091_v27 = vpack.c.bf16 %v1200_v3, %v1188_v36  ;;  %v6045_v59 = vand.u32 4294901760, %v111_v37  ;;  %v7417_v22 = vld [vmem:[#allocation16_spill] sm:$0xff]  ;;  %v795_v31 = vand.u32 4294901760, %v794_v25  ;;  %v4139_v44 = vpack.c.bf16 %v7354_v30, %v7350_v57  ;;  %v7436_v36 = vld [vmem:[#allocation30_spill] sm:$0xff]  ;;  %v7467_v25 = vld [vmem:[#allocation51_spill] sm:$0xff] }
  0xf2   :  { %2451 = vmatprep.mubr.f32.mxu0 %v771_v60  ;;  %7413 = vst [vmem:[#allocation100_spill] sm:$0xff] %v6043_v34  ;;  %4090 = vmatprep.subr.bf16.mxu1 %v4089_v42  ;;  %v6048_v29 = vsub.f32 %v112_v13, %v6043_v34  ;;  %v4093_v1 = vpack.c.bf16 %v7417_v22, %v7416_v45  ;;  %v7422_v45 = vld [vmem:[#allocation19_spill] sm:$0xff]  ;;  %v7432_v3 = vld [vmem:[#allocation28_spill] sm:$0xff]  ;;  %v7475_v39 = vld [vmem:[#allocation57_spill] sm:$0xff] }
  0xf3   :  { %7414 = vst [vmem:[#allocation201_spill] sm:$0xff] %v6045_v59  ;;  %4284 = vmatpush1.bf16.msra.mxu0 %v4283_v40  ;;  %780 = vmatmul.mubr.f32.gmra.mrb[58].mxu1 %v779_v47  ;;  %v6053_v53 = vsub.f32 %v111_v37, %v6045_v59  ;;  %v7420_v40 = vld [vmem:[#allocation96_spill] sm:$0xff]  ;;  %v7421_v47 = vld [vmem:[#allocation17_spill] sm:$0xff]  ;;  %v7500_v57 = vpack.c.bf16 %v7372_v38, %v7366_v24  ;;  %v7501_v30 = vld [vmem:[#allocation79_spill] sm:$0xff] }
  0xf4   :  { %7415 = vst [vmem:[#allocation202_spill] sm:$0xff] %v6048_v29  ;;  %790 = vmatprep.mubr.f32.mxu1 %v789_v43  ;;  %v803_v49 = vand.u32 4294901760, %v6048_v29  ;;  %4092 = vmatpush1.bf16.msra.mxu1 %v4091_v27  ;;  %v4133_v43 = vpack.c.bf16 %v7333_v6, %v7332_v23  ;;  %v4135_v27 = vpack.c.bf16 %v7338_v18, %v7334_v11  ;;  %v7492_v23 = vld [vmem:[#allocation71_spill] sm:$0xff]  ;;  %v7493_v6 = vld [vmem:[#allocation144_spill] sm:$0xff]  ;;  %v7495_v11 = vld [vmem:[#allocation74_spill] sm:$0xff] }
  0xf5   :  { %2455 = vmatmul.mubr.f32.gmra.mrb[58].mxu0 %v777_v8  ;;  %7418 = vst [vmem:[#allocation15_spill] sm:$0xff] %v6053_v53  ;;  %v809_v42 = vand.u32 4294901760, %v6053_v53  ;;  %4286 = vmatprep.subr.bf16.mxu0 %v7419_v7  ;;  %v4095_v22 = vpack.c.bf16 %v7422_v45, %v7421_v47  ;;  %v7425_v7 = vld [vmem:[#allocation98_spill] sm:$0xff]  ;;  %v7430_v45 = vld [vmem:[#allocation20_spill] sm:$0xff]  ;;  %v7496_v18 = vpack.c.bf16 %v7365_v46, %v7364_v26  ;;  %v7507_v38 = vld [vmem:[#allocation85_spill] sm:$0xff] }
  0xf6   :  { %2463 = vmatprep.mubr.f32.mxu0 %v787_v16  ;;  %v804_v13 = vsub.f32 %v6048_v29, %v803_v49  ;;  %4094 = vmatprep.subr.bf16.mxu1 %v4093_v1  ;;  %v4137_v16 = vpack.c.bf16 %v7349_v41, %v7348_v28  ;;  %v7431_v1 = vld [vmem:[#allocation27_spill] sm:$0xff]  ;;  %v7497_v28 = vld [vmem:[#allocation76_spill] sm:$0xff]  ;;  %v7498_v41 = vld [vmem:[#allocation146_spill] sm:$0xff]  ;;  %v7502_v26 = vpack.c.bf16 %v7380_v56, %v5029_v35 }
  0xf7   :  { %796 = vmatmul.mubr.f32.gmra.mrb[60].mxu1 %v795_v31  ;;  %v810_v60 = vsub.f32 %v6053_v53, %v809_v42  ;;  %v7423_v31 = vld [vmem:[#allocation21_spill] sm:$0xff]  ;;  %v7503_v46 = vld [vmem:[#allocation82_spill] sm:$0xff]  ;;  %v7506_v24 = vpack.c.bf16 %v7385_v9, %v7381_v19  ;;  %v7508_v35 = vpack.c.bf16 %v7393_v48, %v7392_v2  ;;  %v7509_v56 = vld [vmem:[#allocation88_spill] sm:$0xff]  ;;  %v7512_v19 = vpack.c.bf16 %v7398_v61, %v7394_v51 }
  0xf8   :  { %v805_v8 = vand.u32 4294901760, %v804_v13  ;;  %v7426_v13 = vld [vmem:[#allocation18_spill] sm:$0xff]  ;;  %v7514_v2 = vpack.c.bf16 %v7406_v0, %v7405_v62  ;;  %v7518_v51 = vpack.c.bf16 %v7411_v32, %v7407_v63  ;;  %v7519_v61 = vld [vmem:[#allocation99_spill] sm:$0xff]  ;;  %v7522_v0 = vld [vmem:[#allocation168_spill] sm:$0xff] }
  0xf9   :  { %2467 = vmatmul.mubr.f32.gmra.mrb[60].mxu0 %v793_v21  ;;  %v811_v37 = vand.u32 4294901760, %v810_v60  ;;  %v7427_v60 = vld [vmem:[#allocation103_spill] sm:$0xff]  ;;  %v7513_v9 = vld [vmem:[#allocation90_spill] sm:$0xff]  ;;  %v7545_v53 = vld [vmem:[#allocation92_spill] sm:$0xff] }
  0xfa   :  { %2475 = vmatprep.mubr.f32.mxu0 %v803_v49  ;;  %806 = vmatprep.mubr.f32.mxu1 %v805_v8  ;;  %v7424_v49 = vld [vmem:[#allocation22_spill] sm:$0xff]  ;;  %v7428_v8 = vld [vmem:[#allocation24_spill] sm:$0xff]  ;;  %v7483_v21 = vld [vmem:[#allocation63_spill] sm:$0xff] }
  0xfb   :  { %812 = vmatmul.mubr.f32.gmra.mrb[62].mxu1 %v811_v37  ;;  %v7429_v37 = vld [vmem:[#allocation25_spill] sm:$0xff]  ;;  %v7515_v48 = vld [vmem:[#allocation94_spill] sm:$0xff]  ;;  %v7521_v62 = vld [vmem:[#allocation167_spill] sm:$0xff] }
  0xfc   :  { %1203 = vmatprep.mubr.f32.mxu1 %v7420_v40  ;;  %v4099_v47 = vpack.c.bf16 %v7429_v37, %v7428_v8  ;;  %v4103_v8 = vpack.c.bf16 %v4877_v52, %v7436_v36  ;;  %v7439_v37 = vld [vmem:[#allocation111_spill] sm:$0xff]  ;;  %v7524_v63 = vld [vmem:[#allocation170_spill] sm:$0xff]  ;;  %v7546_v29 = vld [vmem:[#allocation197_spill] sm:$0xff] }
  0xfd   :  { %2479 = vmatmul.mubr.f32.gmra.mrb[62].mxu0 %v809_v42  ;;  %v4097_v42 = vpack.c.bf16 %v7424_v49, %v7423_v31  ;;  %v4101_v31 = vpack.c.bf16 %v7432_v3, %v7431_v1  ;;  %v7433_v49 = vld [vmem:[#allocation105_spill] sm:$0xff]  ;;  %v4105_v3 = vpack.c.bf16 %v4885_v55, %v4881_v54  ;;  %v7438_v1 = vld [vmem:[#allocation107_spill] sm:$0xff]  ;;  %v4109_v54 = vpack.c.bf16 %v4899_v10, %v4895_v5  ;;  %v7547_v15 = vld [vmem:[#allocation198_spill] sm:$0xff] }
  0xfe   :  { %2742 = vmatprep.mubr.f32.mxu0 %v7420_v40  ;;  %v7442_v36 = vld [vmem:[#allocation31_spill] sm:$0xff]  ;;  %v7443_v55 = vld [vmem:[#allocation113_spill] sm:$0xff]  ;;  %v4113_v5 = vpack.c.bf16 %v4915_v33, %v4909_v20  ;;  %v7455_v33 = vld [vmem:[#allocation120_spill] sm:$0xff] }
  0xff   :  { %1205 = vmatmul.mubr.f32.vlgmr.msra.gmra.mrb[0].mxu1 %v7425_v7  ;;  %v7447_v10 = vld [vmem:[#allocation115_spill] sm:$0xff] }
 0x100   :  { %4096 = vmatpush1.bf16.msra.mxu1 %v4095_v22  ;;  %1211 = vmatprep.mubr.f32.mxu1 %v7427_v60  ;;  %v7434_v22 = vld [vmem:[#allocation106_spill] sm:$0xff]  ;;  %v7525_v32 = vld [vmem:[#allocation175_spill] sm:$0xff] }
 0x101   :  { %2744 = vmatmul.mubr.f32.vlgmr.msra.gmra.mrb[0].mxu0 %v7425_v7  ;;  %4098 = vmatprep.subr.bf16.mxu1 %v4097_v42  ;;  %v7437_v42 = vld [vmem:[#allocation26_spill] sm:$0xff]  ;;  %v7548_v50 = vld [vmem:[#allocation199_spill] sm:$0xff] }
 0x102   :  { %4288 = vmatpush1.bf16.msra.mxu0 %v7426_v13  ;;  %2750 = vmatprep.mubr.f32.mxu0 %v7427_v60  ;;  %v7435_v13 = vld [vmem:[#allocation23_spill] sm:$0xff] }
 0x103   :  { %4290 = vmatprep.subr.bf16.mxu0 %v7430_v45  ;;  %1213 = vmatmul.mubr.f32.gmra.mrb[2].mxu1 %v7433_v49  ;;  %v7441_v45 = vld [vmem:[#allocation33_spill] sm:$0xff] }
 0x104   :  { %1219 = vmatprep.mubr.f32.mxu1 %v7434_v22  ;;  %4100 = vmatpush1.bf16.msra.mxu1 %v4099_v47  ;;  %v7440_v47 = vld [vmem:[#allocation29_spill] sm:$0xff]  ;;  %v4107_v52 = vpack.c.bf16 %v4893_v4, %v7441_v45  ;;  %v4111_v4 = vpack.c.bf16 %v4907_v14, %v4903_v12  ;;  %v7451_v45 = vld [vmem:[#allocation39_spill] sm:$0xff]  ;;  %v7452_v14 = vld [vmem:[#allocation36_spill] sm:$0xff] }
 0x105   :  { %2752 = vmatmul.mubr.f32.gmra.mrb[2].mxu0 %v7433_v49  ;;  %4102 = vmatprep.subr.bf16.mxu1 %v4101_v31  ;;  %v7444_v31 = vld [vmem:[#allocation114_spill] sm:$0xff] }
 0x106   :  { %2758 = vmatprep.mubr.f32.mxu0 %v7434_v22  ;;  %4292 = vmatpush1.bf16.msra.mxu0 %v7435_v13  ;;  %v7445_v13 = vld [vmem:[#allocation32_spill] sm:$0xff] }
 0x107   :  { %4294 = vmatprep.subr.bf16.mxu0 %v7437_v42  ;;  %1221 = vmatmul.mubr.f32.gmra.mrb[4].mxu1 %v7438_v1  ;;  %v7448_v42 = vld [vmem:[#allocation119_spill] sm:$0xff] }
 0x108   :  { %1227 = vmatprep.mubr.f32.mxu1 %v7439_v37  ;;  %4104 = vmatpush1.bf16.msra.mxu1 %v4103_v8  ;;  %v7446_v8 = vld [vmem:[#allocation34_spill] sm:$0xff] }
 0x109   :  { %2760 = vmatmul.mubr.f32.gmra.mrb[4].mxu0 %v7438_v1  ;;  %4106 = vmatprep.subr.bf16.mxu1 %v4105_v3  ;;  %v7449_v3 = vld [vmem:[#allocation35_spill] sm:$0xff] }
 0x10a   :  { %2766 = vmatprep.mubr.f32.mxu0 %v7439_v37  ;;  %4296 = vmatpush1.bf16.msra.mxu0 %v7440_v47  ;;  %v7450_v47 = vld [vmem:[#allocation37_spill] sm:$0xff] }
 0x10b   :  { %4298 = vmatprep.subr.bf16.mxu0 %v7442_v36  ;;  %1229 = vmatmul.mubr.f32.gmra.mrb[6].mxu1 %v7443_v55  ;;  %v4115_v12 = vpack.c.bf16 %v7451_v45, %v7450_v47  ;;  %v7454_v36 = vld [vmem:[#allocation42_spill] sm:$0xff]  ;;  %v7462_v45 = vld [vmem:[#allocation48_spill] sm:$0xff] }
 0x10c   :  { %1235 = vmatprep.mubr.f32.mxu1 %v7444_v31  ;;  %4108 = vmatpush1.bf16.msra.mxu1 %v4107_v52  ;;  %v7453_v52 = vld [vmem:[#allocation41_spill] sm:$0xff]  ;;  %v7461_v47 = vld [vmem:[#allocation46_spill] sm:$0xff] }
 0x10d   :  { %2768 = vmatmul.mubr.f32.gmra.mrb[6].mxu0 %v7443_v55  ;;  %4110 = vmatprep.subr.bf16.mxu1 %v4109_v54  ;;  %v4117_v20 = vpack.c.bf16 %v7454_v36, %v7453_v52  ;;  %v7456_v54 = vld [vmem:[#allocation122_spill] sm:$0xff]  ;;  %v7463_v52 = vld [vmem:[#allocation123_spill] sm:$0xff] }
 0x10e   :  { %2774 = vmatprep.mubr.f32.mxu0 %v7444_v31  ;;  %4300 = vmatpush1.bf16.msra.mxu0 %v7445_v13  ;;  %v7457_v13 = vld [vmem:[#allocation38_spill] sm:$0xff]  ;;  %v7464_v36 = vld [vmem:[#allocation127_spill] sm:$0xff] }
 0x10f   :  { %4302 = vmatprep.subr.bf16.mxu0 %v7446_v8  ;;  %1237 = vmatmul.mubr.f32.gmra.mrb[8].mxu1 %v7447_v10  ;;  %v7459_v8 = vld [vmem:[#allocation45_spill] sm:$0xff] }
 0x110   :  { %1243 = vmatprep.mubr.f32.mxu1 %v7448_v42  ;;  %4112 = vmatpush1.bf16.msra.mxu1 %v4111_v4  ;;  %v7458_v4 = vld [vmem:[#allocation44_spill] sm:$0xff] }
 0x111   :  { %2776 = vmatmul.mubr.f32.gmra.mrb[8].mxu0 %v7447_v10  ;;  %4114 = vmatprep.subr.bf16.mxu1 %v4113_v5  ;;  %v7460_v5 = vld [vmem:[#allocation40_spill] sm:$0xff] }
 0x112   :  { %2782 = vmatprep.mubr.f32.mxu0 %v7448_v42  ;;  %4304 = vmatpush1.bf16.msra.mxu0 %v7449_v3  ;;  %v4119_v3 = vpack.c.bf16 %v7459_v8, %v7458_v4  ;;  %v7469_v8 = vld [vmem:[#allocation53_spill] sm:$0xff] }
 0x113   :  { %4306 = vmatprep.subr.bf16.mxu0 %v7452_v14  ;;  %1245 = vmatmul.mubr.f32.gmra.mrb[10].mxu1 %v7455_v33  ;;  %v4121_v14 = vpack.c.bf16 %v7462_v45, %v7461_v47  ;;  %v7471_v45 = vld [vmem:[#allocation128_spill] sm:$0xff] }
 0x114   :  { %1251 = vmatprep.mubr.f32.mxu1 %v7456_v54  ;;  %4116 = vmatpush1.bf16.msra.mxu1 %v4115_v12  ;;  %v7465_v12 = vld [vmem:[#allocation43_spill] sm:$0xff] }
 0x115   :  { %2784 = vmatmul.mubr.f32.gmra.mrb[10].mxu0 %v7455_v33  ;;  %4118 = vmatprep.subr.bf16.mxu1 %v4117_v20  ;;  %v7468_v20 = vld [vmem:[#allocation47_spill] sm:$0xff] }
 0x116   :  { %2790 = vmatprep.mubr.f32.mxu0 %v7456_v54  ;;  %4308 = vmatpush1.bf16.msra.mxu0 %v7457_v13  ;;  %v7466_v13 = vld [vmem:[#allocation50_spill] sm:$0xff] }
 0x117   :  { %4310 = vmatprep.subr.bf16.mxu0 %v7460_v5  ;;  %1253 = vmatmul.mubr.f32.gmra.mrb[12].mxu1 %v7463_v52  ;;  %v4123_v4 = vpack.c.bf16 %v7467_v25, %v7466_v13  ;;  %v7470_v5 = vld [vmem:[#allocation54_spill] sm:$0xff]  ;;  %v7477_v13 = vld [vmem:[#allocation59_spill] sm:$0xff] }
 0x118   :  { %1259 = vmatprep.mubr.f32.mxu1 %v7464_v36  ;;  %4120 = vmatpush1.bf16.msra.mxu1 %v4119_v3  ;;  %v4125_v47 = vpack.c.bf16 %v7470_v5, %v7469_v8  ;;  %v7473_v3 = vld [vmem:[#allocation49_spill] sm:$0xff]  ;;  %v7479_v5 = vld [vmem:[#allocation130_spill] sm:$0xff] }
 0x119   :  { %2792 = vmatmul.mubr.f32.gmra.mrb[12].mxu0 %v7463_v52  ;;  %4122 = vmatprep.subr.bf16.mxu1 %v4121_v14  ;;  %v7476_v14 = vld [vmem:[#allocation52_spill] sm:$0xff] }
 0x11a   :  { %2798 = vmatprep.mubr.f32.mxu0 %v7464_v36  ;;  %4312 = vmatpush1.bf16.msra.mxu0 %v7465_v12  ;;  %v7474_v12 = vld [vmem:[#allocation55_spill] sm:$0xff] }
 0x11b   :  { %4314 = vmatprep.subr.bf16.mxu0 %v7468_v20  ;;  %1261 = vmatmul.mubr.f32.gmra.mrb[14].mxu1 %v7471_v45  ;;  %v4127_v25 = vpack.c.bf16 %v7475_v39, %v7474_v12  ;;  %v7478_v20 = vld [vmem:[#allocation60_spill] sm:$0xff] }
 0x11c   :  { %1267 = vmatprep.mubr.f32.mxu1 %v7472_v58  ;;  %4124 = vmatpush1.bf16.msra.mxu1 %v4123_v4  ;;  %v4129_v8 = vpack.c.bf16 %v7478_v20, %v7477_v13  ;;  %v7481_v4 = vld [vmem:[#allocation56_spill] sm:$0xff]  ;;  %v7487_v13 = vld [vmem:[#allocation61_spill] sm:$0xff]  ;;  %v7490_v20 = vld [vmem:[#allocation143_spill] sm:$0xff] }
 0x11d   :  { %2800 = vmatmul.mubr.f32.gmra.mrb[14].mxu0 %v7471_v45  ;;  %4126 = vmatprep.subr.bf16.mxu1 %v4125_v47  ;;  %v7484_v47 = vld [vmem:[#allocation58_spill] sm:$0xff]  ;;  %v7485_v12 = vld [vmem:[#allocation136_spill] sm:$0xff] }
 0x11e   :  { %2806 = vmatprep.mubr.f32.mxu0 %v7472_v58  ;;  %4316 = vmatpush1.bf16.msra.mxu0 %v7473_v3  ;;  %v7482_v3 = vld [vmem:[#allocation62_spill] sm:$0xff] }
 0x11f   :  { %4318 = vmatprep.subr.bf16.mxu0 %v7476_v14  ;;  %1269 = vmatmul.mubr.f32.gmra.mrb[16].mxu1 %v7479_v5  ;;  %v4131_v39 = vpack.c.bf16 %v7483_v21, %v7482_v3  ;;  %v7486_v14 = vld [vmem:[#allocation137_spill] sm:$0xff]  ;;  %v7489_v21 = vld [vmem:[#allocation138_spill] sm:$0xff]  ;;  %v7511_v3 = vld [vmem:[#allocation159_spill] sm:$0xff] }
 0x120   :  { %1275 = vmatprep.mubr.f32.mxu1 %v7480_v17  ;;  %4128 = vmatpush1.bf16.msra.mxu1 %v4127_v25  ;;  %v7488_v25 = vld [vmem:[#allocation65_spill] sm:$0xff] }
 0x121   :  { %2808 = vmatmul.mubr.f32.gmra.mrb[16].mxu0 %v7479_v5  ;;  %4130 = vmatprep.subr.bf16.mxu1 %v4129_v8  ;;  %v7491_v8 = vld [vmem:[#allocation67_spill] sm:$0xff] }
 0x122   :  { %2814 = vmatprep.mubr.f32.mxu0 %v7480_v17  ;;  %4320 = vmatpush1.bf16.msra.mxu0 %v7481_v4  ;;  %v7510_v4 = vld [vmem:[#allocation154_spill] sm:$0xff] }
 0x123   :  { %4322 = vmatprep.subr.bf16.mxu0 %v7484_v47  ;;  %1277 = vmatmul.mubr.f32.gmra.mrb[18].mxu1 %v7485_v12  ;;  %v7517_v47 = vld [vmem:[#allocation161_spill] sm:$0xff] }
 0x124   :  { %1283 = vmatprep.mubr.f32.mxu1 %v7486_v14  ;;  %4132 = vmatpush1.bf16.msra.mxu1 %v4131_v39  ;;  %v7516_v39 = vld [vmem:[#allocation160_spill] sm:$0xff] }
 0x125   :  { %2816 = vmatmul.mubr.f32.gmra.mrb[18].mxu0 %v7485_v12  ;;  %4134 = vmatprep.subr.bf16.mxu1 %v4133_v43  ;;  %v7494_v43 = vld [vmem:[#allocation145_spill] sm:$0xff] }
 0x126   :  { %2822 = vmatprep.mubr.f32.mxu0 %v7486_v14  ;;  %4324 = vmatpush1.bf16.msra.mxu0 %v7487_v13  ;;  %v7520_v13 = vld [vmem:[#allocation162_spill] sm:$0xff] }
 0x127   :  { %4326 = vmatprep.subr.bf16.mxu0 %v7488_v25  ;;  %1285 = vmatmul.mubr.f32.gmra.mrb[20].mxu1 %v7489_v21  ;;  %v7523_v25 = vld [vmem:[#allocation169_spill] sm:$0xff] }
 0x128   :  { %1291 = vmatprep.mubr.f32.mxu1 %v7490_v20  ;;  %4136 = vmatpush1.bf16.msra.mxu1 %v4135_v27  ;;  %v7499_v27 = vld [vmem:[#allocation151_spill] sm:$0xff] }
 0x129   :  { %2824 = vmatmul.mubr.f32.gmra.mrb[20].mxu0 %v7489_v21  ;;  %4138 = vmatprep.subr.bf16.mxu1 %v4137_v16  ;;  %v7504_v16 = vld [vmem:[#allocation152_spill] sm:$0xff] }
 0x12a   :  { %2830 = vmatprep.mubr.f32.mxu0 %v7490_v20  ;;  %4328 = vmatpush1.bf16.msra.mxu0 %v7491_v8  ;;  %v7526_v8 = vld [vmem:[#allocation176_spill] sm:$0xff] }
 0x12b   :  { %4330 = vmatprep.subr.bf16.mxu0 %v7492_v23  ;;  %1293 = vmatmul.mubr.f32.gmra.mrb[22].mxu1 %v7493_v6  ;;  %v7527_v23 = vld [vmem:[#allocation177_spill] sm:$0xff] }
 0x12c   :  { %1299 = vmatprep.mubr.f32.mxu1 %v7494_v43  ;;  %4140 = vmatpush1.bf16.msra.mxu1 %v4139_v44  ;;  %v7505_v44 = vld [vmem:[#allocation153_spill] sm:$0xff] }
 0x12d   :  { %2832 = vmatmul.mubr.f32.gmra.mrb[22].mxu0 %v7493_v6  ;;  %4142 = vmatprep.subr.bf16.mxu1 %v7496_v18  ;;  %v7529_v18 = vld [vmem:[#allocation69_spill] sm:$0xff] }
 0x12e   :  { %2838 = vmatprep.mubr.f32.mxu0 %v7494_v43  ;;  %4332 = vmatpush1.bf16.msra.mxu0 %v7495_v11  ;;  %v7528_v11 = vld [vmem:[#allocation178_spill] sm:$0xff] }
 0x12f   :  { %4334 = vmatprep.subr.bf16.mxu0 %v7497_v28  ;;  %1301 = vmatmul.mubr.f32.gmra.mrb[24].mxu1 %v7498_v41  ;;  %v7530_v28 = vld [vmem:[#allocation180_spill] sm:$0xff] }
 0x130   :  { %1307 = vmatprep.mubr.f32.mxu1 %v7499_v27  ;;  %4144 = vmatpush1.bf16.msra.mxu1 %v7500_v57  ;;  %v7531_v57 = vld [vmem:[#allocation181_spill] sm:$0xff] }
 0x131   :  { %2840 = vmatmul.mubr.f32.gmra.mrb[24].mxu0 %v7498_v41  ;;  %4146 = vmatprep.subr.bf16.mxu1 %v7502_v26  ;;  %v7533_v26 = vld [vmem:[#allocation75_spill] sm:$0xff] }
 0x132   :  { %2846 = vmatprep.mubr.f32.mxu0 %v7499_v27  ;;  %4336 = vmatpush1.bf16.msra.mxu0 %v7501_v30  ;;  %v7532_v30 = vld [vmem:[#allocation182_spill] sm:$0xff] }
 0x133   :  { %4338 = vmatprep.subr.bf16.mxu0 %v7503_v46  ;;  %1309 = vmatmul.mubr.f32.gmra.mrb[26].mxu1 %v7504_v16  ;;  %v7534_v46 = vld [vmem:[#allocation184_spill] sm:$0xff] }
 0x134   :  { %1315 = vmatprep.mubr.f32.mxu1 %v7505_v44  ;;  %4148 = vmatpush1.bf16.msra.mxu1 %v7506_v24  ;;  %v7535_v24 = vld [vmem:[#allocation185_spill] sm:$0xff] }
 0x135   :  { %2848 = vmatmul.mubr.f32.gmra.mrb[26].mxu0 %v7504_v16  ;;  %4150 = vmatprep.subr.bf16.mxu1 %v7508_v35  ;;  %v7537_v35 = vld [vmem:[#allocation81_spill] sm:$0xff] }
 0x136   :  { %2854 = vmatprep.mubr.f32.mxu0 %v7505_v44  ;;  %4340 = vmatpush1.bf16.msra.mxu0 %v7507_v38  ;;  %v7536_v38 = vld [vmem:[#allocation186_spill] sm:$0xff] }
 0x137   :  { %4342 = vmatprep.subr.bf16.mxu0 %v7509_v56  ;;  %1317 = vmatmul.mubr.f32.gmra.mrb[28].mxu1 %v7510_v4  ;;  %v7538_v56 = vld [vmem:[#allocation188_spill] sm:$0xff] }
 0x138   :  { %1323 = vmatprep.mubr.f32.mxu1 %v7511_v3  ;;  %4152 = vmatpush1.bf16.msra.mxu1 %v7512_v19  ;;  %v7539_v19 = vld [vmem:[#allocation189_spill] sm:$0xff] }
 0x139   :  { %2856 = vmatmul.mubr.f32.gmra.mrb[28].mxu0 %v7510_v4  ;;  %4154 = vmatprep.subr.bf16.mxu1 %v7514_v2  ;;  %v7541_v2 = vld [vmem:[#allocation86_spill] sm:$0xff] }
 0x13a   :  { %2862 = vmatprep.mubr.f32.mxu0 %v7511_v3  ;;  %4344 = vmatpush1.bf16.msra.mxu0 %v7513_v9  ;;  %v7540_v9 = vld [vmem:[#allocation190_spill] sm:$0xff] }
 0x13b   :  { %4346 = vmatprep.subr.bf16.mxu0 %v7515_v48  ;;  %1325 = vmatmul.mubr.f32.gmra.mrb[30].mxu1 %v7516_v39  ;;  %v7542_v48 = vld [vmem:[#allocation193_spill] sm:$0xff] }
 0x13c   :  { %1331 = vmatprep.mubr.f32.mxu1 %v7517_v47  ;;  %4156 = vmatpush1.bf16.msra.mxu1 %v7518_v51  ;;  %v7543_v51 = vld [vmem:[#allocation194_spill] sm:$0xff] }
 0x13d   :  { %2864 = vmatmul.mubr.f32.gmra.mrb[30].mxu0 %v7516_v39 }
 0x13e   :  { %2870 = vmatprep.mubr.f32.mxu0 %v7517_v47  ;;  %4348 = vmatpush1.bf16.msra.mxu0 %v7519_v61  ;;  %v7544_v61 = vld [vmem:[#allocation195_spill] sm:$0xff] }
 0x13f   :  { %1333 = vmatmul.mubr.f32.gmra.mrb[32].mxu1 %v7520_v13 }
 0x140   :  { %1339 = vmatprep.mubr.f32.mxu1 %v7521_v62 }
 0x141   :  { %2872 = vmatmul.mubr.f32.gmra.mrb[32].mxu0 %v7520_v13 }
 0x142   :  { %2878 = vmatprep.mubr.f32.mxu0 %v7521_v62 }
 0x143   :  { %1341 = vmatmul.mubr.f32.gmra.mrb[34].mxu1 %v7522_v0 }
 0x144   :  { %1347 = vmatprep.mubr.f32.mxu1 %v7523_v25 }
 0x145   :  { %2880 = vmatmul.mubr.f32.gmra.mrb[34].mxu0 %v7522_v0 }
 0x146   :  { %2886 = vmatprep.mubr.f32.mxu0 %v7523_v25 }
 0x147   :  { %1349 = vmatmul.mubr.f32.gmra.mrb[36].mxu1 %v7524_v63 }
 0x148   :  { %1355 = vmatprep.mubr.f32.mxu1 %v7525_v32 }
 0x149   :  { %2888 = vmatmul.mubr.f32.gmra.mrb[36].mxu0 %v7524_v63 }
 0x14a   :  { %2894 = vmatprep.mubr.f32.mxu0 %v7525_v32 }
 0x14b   :  { %1357 = vmatmul.mubr.f32.gmra.mrb[38].mxu1 %v7526_v8 }
 0x14c   :  { %1363 = vmatprep.mubr.f32.mxu1 %v7527_v23 }
 0x14d   :  { %2896 = vmatmul.mubr.f32.gmra.mrb[38].mxu0 %v7526_v8 }
 0x14e   :  { %2902 = vmatprep.mubr.f32.mxu0 %v7527_v23 }
 0x14f   :  { %1365 = vmatmul.mubr.f32.gmra.mrb[40].mxu1 %v7528_v11 }
 0x150   :  { %1371 = vmatprep.mubr.f32.mxu1 %v7529_v18 }
 0x151   :  { %2904 = vmatmul.mubr.f32.gmra.mrb[40].mxu0 %v7528_v11 }
 0x152   :  { %2910 = vmatprep.mubr.f32.mxu0 %v7529_v18 }
 0x153   :  { %1373 = vmatmul.mubr.f32.gmra.mrb[42].mxu1 %v7530_v28 }
 0x154   :  { %1379 = vmatprep.mubr.f32.mxu1 %v7531_v57 }
 0x155   :  { %2912 = vmatmul.mubr.f32.gmra.mrb[42].mxu0 %v7530_v28 }
 0x156   :  { %2918 = vmatprep.mubr.f32.mxu0 %v7531_v57 }
 0x157   :  { %1381 = vmatmul.mubr.f32.gmra.mrb[44].mxu1 %v7532_v30 }
 0x158   :  { %1387 = vmatprep.mubr.f32.mxu1 %v7533_v26 }
 0x159   :  { %2920 = vmatmul.mubr.f32.gmra.mrb[44].mxu0 %v7532_v30 }
 0x15a   :  { %2926 = vmatprep.mubr.f32.mxu0 %v7533_v26 }
 0x15b   :  { %1389 = vmatmul.mubr.f32.gmra.mrb[46].mxu1 %v7534_v46 }
 0x15c   :  { %1395 = vmatprep.mubr.f32.mxu1 %v7535_v24 }
 0x15d   :  { %2928 = vmatmul.mubr.f32.gmra.mrb[46].mxu0 %v7534_v46 }
 0x15e   :  { %2934 = vmatprep.mubr.f32.mxu0 %v7535_v24 }
 0x15f   :  { %1397 = vmatmul.mubr.f32.gmra.mrb[48].mxu1 %v7536_v38 }
 0x160   :  { %1403 = vmatprep.mubr.f32.mxu1 %v7537_v35 }
 0x161   :  { %2936 = vmatmul.mubr.f32.gmra.mrb[48].mxu0 %v7536_v38 }
 0x162   :  { %2942 = vmatprep.mubr.f32.mxu0 %v7537_v35 }
 0x163   :  { %1405 = vmatmul.mubr.f32.gmra.mrb[50].mxu1 %v7538_v56 }
 0x164   :  { %1411 = vmatprep.mubr.f32.mxu1 %v7539_v19 }
 0x165   :  { %2944 = vmatmul.mubr.f32.gmra.mrb[50].mxu0 %v7538_v56 }
 0x166   :  { %2950 = vmatprep.mubr.f32.mxu0 %v7539_v19 }
 0x167   :  { %1413 = vmatmul.mubr.f32.gmra.mrb[52].mxu1 %v7540_v9 }
 0x168   :  { %1419 = vmatprep.mubr.f32.mxu1 %v7541_v2 }
 0x169   :  { %2952 = vmatmul.mubr.f32.gmra.mrb[52].mxu0 %v7540_v9 }
 0x16a   :  { %2958 = vmatprep.mubr.f32.mxu0 %v7541_v2 }
 0x16b   :  { %1421 = vmatmul.mubr.f32.gmra.mrb[54].mxu1 %v7542_v48 }
 0x16c   :  { %1427 = vmatprep.mubr.f32.mxu1 %v7543_v51 }
 0x16d   :  { %2960 = vmatmul.mubr.f32.gmra.mrb[54].mxu0 %v7542_v48 }
 0x16e   :  { %2966 = vmatprep.mubr.f32.mxu0 %v7543_v51 }
 0x16f   :  { %1429 = vmatmul.mubr.f32.gmra.mrb[56].mxu1 %v7544_v61 }
 0x170   :  { %1435 = vmatprep.mubr.f32.mxu1 %v7545_v53 }
 0x171   :  { %2968 = vmatmul.mubr.f32.gmra.mrb[56].mxu0 %v7544_v61 }
 0x172   :  { %2974 = vmatprep.mubr.f32.mxu0 %v7545_v53  ;;  %v7549_v53 = vld [vmem:[#allocation101_spill] sm:$0xff] }
 0x173   :  { %1437 = vmatmul.mubr.f32.gmra.mrb[58].mxu1 %v7546_v29 }
 0x174   :  { %1443 = vmatprep.mubr.f32.mxu1 %v7547_v15 }
 0x175   :  { %2976 = vmatmul.mubr.f32.gmra.mrb[58].mxu0 %v7546_v29  ;;  %v7550_v29 = vld [vmem:[#allocation102_spill] sm:$0xff] }
 0x176   :  { %2982 = vmatprep.mubr.f32.mxu0 %v7547_v15  ;;  %v7551_v15 = vld [vmem:[#allocation104_spill] sm:$0xff] }
 0x177   :  { %1445 = vmatmul.mubr.f32.gmra.mrb[60].mxu1 %v7548_v50 }
 0x178   :  { %1451 = vmatprep.mubr.f32.mxu1 %v6043_v34 }
 0x179   :  { %2984 = vmatmul.mubr.f32.gmra.mrb[60].mxu0 %v7548_v50  ;;  %v7552_v50 = vld [vmem:[#allocation108_spill] sm:$0xff] }
 0x17a   :  { %2990 = vmatprep.mubr.f32.mxu0 %v6043_v34  ;;  %v7553_v34 = vld [vmem:[#allocation109_spill] sm:$0xff] }
 0x17b   :  { %1453 = vmatmul.mubr.f32.gmra.mrb[62].mxu1 %v6045_v59 }
 0x17c   :  { %1653 = vmatprep.mubr.f32.mxu1 %v7549_v53  ;;  %v7555_v53 = vld [vmem:[#allocation112_spill] sm:$0xff] }
 0x17d   :  { %2992 = vmatmul.mubr.f32.gmra.mrb[62].mxu0 %v6045_v59  ;;  %v7554_v59 = vld [vmem:[#allocation110_spill] sm:$0xff] }
 0x17e   :  { %3127 = vmatprep.mubr.f32.mxu0 %v7420_v40  ;;  %v7561_v40 = vld [vmem:[#allocation125_spill] sm:$0xff] }
 0x17f   :  { %1656 = vmatmul.mubr.f32.vlgmr.msra.gmra.mrb[0].mxu1 %v7550_v29  ;;  %v7556_v29 = vld [vmem:[#allocation116_spill] sm:$0xff] }
 0x180   :  { %1663 = vmatprep.mubr.f32.mxu1 %v7551_v15  ;;  %v7557_v15 = vld [vmem:[#allocation117_spill] sm:$0xff] }
 0x181   :  { %3129 = vmatmul.mubr.f32.vlgmr.msra.gmra.mrb[0].mxu0 %v7425_v7  ;;  %v7562_v7 = vld [vmem:[#allocation126_spill] sm:$0xff] }
 0x182   :  { %3135 = vmatprep.mubr.f32.mxu0 %v7427_v60  ;;  %v7563_v60 = vld [vmem:[#allocation131_spill] sm:$0xff] }
 0x183   :  { %1666 = vmatmul.mubr.f32.gmra.mrb[2].mxu1 %v7552_v50  ;;  %v7558_v50 = vld [vmem:[#allocation118_spill] sm:$0xff] }
 0x184   :  { %1673 = vmatprep.mubr.f32.mxu1 %v7553_v34  ;;  %v7559_v34 = vld [vmem:[#allocation121_spill] sm:$0xff] }
 0x185   :  { %3137 = vmatmul.mubr.f32.gmra.mrb[2].mxu0 %v7433_v49  ;;  %v7564_v49 = vld [vmem:[#allocation132_spill] sm:$0xff] }
 0x186   :  { %3143 = vmatprep.mubr.f32.mxu0 %v7434_v22  ;;  %v7565_v22 = vld [vmem:[#allocation133_spill] sm:$0xff] }
 0x187   :  { %1676 = vmatmul.mubr.f32.gmra.mrb[4].mxu1 %v7554_v59  ;;  %v7560_v59 = vld [vmem:[#allocation124_spill] sm:$0xff] }
 0x188   :  { %1683 = vmatprep.mubr.f32.mxu1 %v7555_v53  ;;  %v3385_v53 = vlaneseq }
 0x189   :  { %3145 = vmatmul.mubr.f32.gmra.mrb[4].mxu0 %v7438_v1  ;;  %v7566_v1 = vld [vmem:[#allocation134_spill] sm:$0xff] }
 0x18a   :  { %3151 = vmatprep.mubr.f32.mxu0 %v7439_v37  ;;  %v7567_v37 = vld [vmem:[#allocation139_spill] sm:$0xff] }
 0x18b   :  { %1686 = vmatmul.mubr.f32.gmra.mrb[6].mxu1 %v7556_v29  ;;  %v3386_v29 = vshrl.u32 %v3385_v53, 7  ;;  %v3533_v53 = vld [vmem:[#allocation5 + $0x48] sm:$0xff] }
 0x18c   :  { %1693 = vmatprep.mubr.f32.mxu1 %v7557_v15 }
 0x18d   :  { %3153 = vmatmul.mubr.f32.gmra.mrb[6].mxu0 %v7443_v55  ;;  %v7568_v55 = vld [vmem:[#allocation140_spill] sm:$0xff]  ;;  %v3387_v15 = vsub.s32 0, %v3386_v29 }
 0x18e   :  { %3159 = vmatprep.mubr.f32.mxu0 %v7444_v31  ;;  %v7569_v31 = vld [vmem:[#allocation141_spill] sm:$0xff] }
 0x18f   :  { %1696 = vmatmul.mubr.f32.gmra.mrb[8].mxu1 %v7558_v50  ;;  %v3383_v50 = vld [vmem:[%s6759_s3] sm:$0x3] }
 0x190   :  { %1703 = vmatprep.mubr.f32.mxu1 %v7559_v34  ;;  %v3391_v34 = vsub.s32 1, %v3386_v29 }
 0x191   :  { %3161 = vmatmul.mubr.f32.gmra.mrb[8].mxu0 %v7447_v10  ;;  %v7570_v10 = vld [vmem:[#allocation142_spill] sm:$0xff] }
 0x192   :  { %3167 = vmatprep.mubr.f32.mxu0 %v7448_v42  ;;  %v7572_v42 = vld [vmem:[#allocation148_spill] sm:$0xff] }
 0x193   :  { %1706 = vmatmul.mubr.f32.gmra.mrb[10].mxu1 %v7560_v59  ;;  %v6448_v59 = vrot.slane %v3383_v50, %v3387_v15 }
 0x194   :  { %1713 = vmatprep.mubr.f32.mxu1 %v7561_v40  ;;  %v3523_v40 = vld [vmem:[%s6758_s2] sm:$0x3]  ;;  %s4775_s2 = smov [#allocation7]  }
 0x195   :  { %3169 = vmatmul.mubr.f32.gmra.mrb[10].mxu0 %v7455_v33  ;;  %v7574_v33 = vld [vmem:[#allocation150_spill] sm:$0xff]  ;;  %s3936_s3 = sshll.u32 %s4775_s2, 4  ;;  %s3937_s3 = int_to_ptr.vmem [resolvable:$true] %s3936_s3 }
 0x196   :  { %3175 = vmatprep.mubr.f32.mxu0 %v7456_v54  ;;  %v7575_v54 = vld [vmem:[#allocation155_spill] sm:$0xff]  ;;  %s4719_s23 = scalar_lea.vmem %s3937_s3, 8192  ;;  %p4724_p3 = scmp.lt.s32.totalorder %s3937_s3, %s3937_s3 }
 0x197   :  { %1716 = vmatmul.mubr.f32.gmra.mrb[12].mxu1 %v7562_v7  ;;  %v3524_v7 = vld [vmem:[#allocation5] sm:$0xff]  ;;  %p4720_p2 = scmp.ne.s32.totalorder %s3937_s3, %s4719_s23  ;;  %p4725_p4 = scmp.lt.s32.totalorder %s4719_s23, %s4719_s23 }
 0x198   :  { %1723 = vmatprep.mubr.f32.mxu1 %v7563_v60  ;;  %v6453_v60 = vrot.slane %v3383_v50, %v3391_v34 }
 0x199   :  { %3177 = vmatmul.mubr.f32.gmra.mrb[12].mxu0 %v7463_v52  ;;  %v7576_v52 = vld [vmem:[#allocation156_spill] sm:$0xff]  ;;  %p4726_p5 = por %p4725_p4, %p4724_p3 }
 0x19a   :  { %3183 = vmatprep.mubr.f32.mxu0 %v7464_v36  ;;  %v7577_v36 = vld [vmem:[#allocation157_spill] sm:$0xff] }
 0x19b   :  { %1726 = vmatmul.mubr.f32.gmra.mrb[14].mxu1 %v7564_v49  ;;  %v3525_v49 = vld [vmem:[#allocation5 + $0x8] sm:$0xff]  ;;  %p4727_p6 = pnand %p4726_p5, %p4720_p2 }
 0x19c   :  { %1733 = vmatprep.mubr.f32.mxu1 %v7565_v22  ;;  %v3588_v22 = vadd.f32 %v3524_v7, %v6448_v59 }
 0x19d   :  { %3185 = vmatmul.mubr.f32.gmra.mrb[14].mxu0 %v7471_v45  ;;  %v7578_v45 = vld [vmem:[#allocation158_spill] sm:$0xff] }
 0x19e   :  { %3191 = vmatprep.mubr.f32.mxu0 %v7472_v58  ;;  %v7571_v58 = vld [vmem:[#allocation147_spill] sm:$0xff] }
 0x19f   :  { %1736 = vmatmul.mubr.f32.gmra.mrb[16].mxu1 %v7566_v1  ;;  %v6456_v1 = vrot.slane %v3523_v40, %v3387_v15 }
 0x1a0   :  { %1743 = vmatprep.mubr.f32.mxu1 %v7567_v37  ;;  %v3589_v37 = vadd.f32 %v3525_v49, %v6453_v60 }
 0x1a1   :  { %3193 = vmatmul.mubr.f32.gmra.mrb[16].mxu0 %v7479_v5  ;;  %v7579_v5 = vld [vmem:[#allocation163_spill] sm:$0xff] }
 0x1a2   :  { %3199 = vmatprep.mubr.f32.mxu0 %v7480_v17  ;;  %v7573_v17 = vld [vmem:[#allocation149_spill] sm:$0xff] }
 0x1a3   :  { %1746 = vmatmul.mubr.f32.gmra.mrb[18].mxu1 %v7568_v55  ;;  %v6459_v55 = vrot.slane %v3523_v40, %v3391_v34 }
 0x1a4   :  { %1753 = vmatprep.mubr.f32.mxu1 %v7569_v31  ;;  %v3526_v31 = vld [vmem:[#allocation5 + $0x10] sm:$0xff] }
 0x1a5   :  { %3201 = vmatmul.mubr.f32.gmra.mrb[18].mxu0 %v7485_v12  ;;  %v7580_v12 = vld [vmem:[#allocation164_spill] sm:$0xff] }
 0x1a6   :  { %3207 = vmatprep.mubr.f32.mxu0 %v7486_v14  ;;  %v7581_v14 = vld [vmem:[#allocation165_spill] sm:$0xff] }
 0x1a7   :  { %1756 = vmatmul.mubr.f32.gmra.mrb[20].mxu1 %v7570_v10  ;;  %v3791_v10 = vadd.f32 %v3523_v40, %v3383_v50 }
 0x1a8   :  { %1763 = vmatprep.mubr.f32.mxu1 %v7571_v58  ;;  %v3527_v58 = vld [vmem:[#allocation5 + $0x18] sm:$0xff] }
 0x1a9   :  { %3209 = vmatmul.mubr.f32.gmra.mrb[20].mxu0 %v7489_v21  ;;  %v7582_v21 = vld [vmem:[#allocation166_spill] sm:$0xff] }
 0x1aa   :  { %3215 = vmatprep.mubr.f32.mxu0 %v7490_v20  ;;  %v7583_v20 = vld [vmem:[#allocation171_spill] sm:$0xff] }
 0x1ab   :  { %1766 = vmatmul.mubr.f32.gmra.mrb[22].mxu1 %v7572_v42  ;;  %v3663_v42 = vmul.f32 %v6456_v1, %v3588_v22 }
 0x1ac   :  { %1773 = vmatprep.mubr.f32.mxu1 %v7573_v17  ;;  %v3590_v17 = vadd.f32 %v3526_v31, %v6448_v59 }
 0x1ad   :  { %3217 = vmatmul.mubr.f32.gmra.mrb[22].mxu0 %v7493_v6  ;;  %v7584_v6 = vld [vmem:[#allocation172_spill] sm:$0xff] }
 0x1ae   :  { %3223 = vmatprep.mubr.f32.mxu0 %v7494_v43  ;;  %v7585_v43 = vld [vmem:[#allocation173_spill] sm:$0xff] }
 0x1af   :  { %1776 = vmatmul.mubr.f32.gmra.mrb[24].mxu1 %v7574_v33 }
 0x1b0   :  { %1783 = vmatprep.mubr.f32.mxu1 %v7575_v54 }
 0x1b1   :  { %3225 = vmatmul.mubr.f32.gmra.mrb[24].mxu0 %v7498_v41  ;;  %v7586_v41 = vld [vmem:[#allocation174_spill] sm:$0xff] }
 0x1b2   :  { %3231 = vmatprep.mubr.f32.mxu0 %v7499_v27  ;;  %v7587_v27 = vld [vmem:[#allocation179_spill] sm:$0xff] }
 0x1b3   :  { %1786 = vmatmul.mubr.f32.gmra.mrb[26].mxu1 %v7576_v52  ;;  %v3664_v52 = vmul.f32 %v6459_v55, %v3589_v37 }
 0x1b4   :  { %1793 = vmatprep.mubr.f32.mxu1 %v7577_v36  ;;  %v3591_v36 = vadd.f32 %v3527_v58, %v6453_v60  ;;  %v3597_v58 = vadd.f32 %v3533_v53, %v6453_v60 }
 0x1b5   :  { %3233 = vmatmul.mubr.f32.gmra.mrb[26].mxu0 %v7504_v16  ;;  %v7588_v16 = vld [vmem:[#allocation64_spill] sm:$0xff] }
 0x1b6   :  { %3239 = vmatprep.mubr.f32.mxu0 %v7505_v44  ;;  %v7589_v44 = vld [vmem:[#allocation66_spill] sm:$0xff] }
 0x1b7   :  { %1796 = vmatmul.mubr.f32.gmra.mrb[28].mxu1 %v7578_v45  ;;  %v3528_v45 = vld [vmem:[#allocation5 + $0x20] sm:$0xff] }
 0x1b8   :  { %1803 = vmatprep.mubr.f32.mxu1 %v7579_v5 }
 0x1b9   :  { %3241 = vmatmul.mubr.f32.gmra.mrb[28].mxu0 %v7510_v4  ;;  %v7590_v4 = vld [vmem:[#allocation68_spill] sm:$0xff] }
 0x1ba   :  { %3247 = vmatprep.mubr.f32.mxu0 %v7511_v3  ;;  %v7591_v3 = vld [vmem:[#allocation183_spill] sm:$0xff] }
 0x1bb   :  { %1806 = vmatmul.mubr.f32.gmra.mrb[30].mxu1 %v7580_v12  ;;  %v6465_v12 = vrot.slane %v3791_v10, %v3387_v15 }
 0x1bc   :  { %1813 = vmatprep.mubr.f32.mxu1 %v7581_v14 }
 0x1bd   :  { %3249 = vmatmul.mubr.f32.gmra.mrb[30].mxu0 %v7516_v39  ;;  %v7592_v39 = vld [vmem:[#allocation70_spill] sm:$0xff] }
 0x1be   :  { %3255 = vmatprep.mubr.f32.mxu0 %v7517_v47  ;;  %v7593_v47 = vld [vmem:[#allocation72_spill] sm:$0xff] }
 0x1bf   :  { %1816 = vmatmul.mubr.f32.gmra.mrb[32].mxu1 %v7582_v21 }
 0x1c0   :  { %1823 = vmatprep.mubr.f32.mxu1 %v7583_v20  ;;  %v3529_v20 = vld [vmem:[#allocation5 + $0x28] sm:$0xff] }
 0x1c1   :  { %3257 = vmatmul.mubr.f32.gmra.mrb[32].mxu0 %v7520_v13  ;;  %v7594_v13 = vld [vmem:[#allocation73_spill] sm:$0xff] }
 0x1c2   :  { %3263 = vmatprep.mubr.f32.mxu0 %v7521_v62  ;;  %v7595_v62 = vld [vmem:[#allocation187_spill] sm:$0xff] }
 0x1c3   :  { %1826 = vmatmul.mubr.f32.gmra.mrb[34].mxu1 %v7584_v6 }
 0x1c4   :  { %1833 = vmatprep.mubr.f32.mxu1 %v7585_v43  ;;  %v6467_v43 = vrot.slane %v3791_v10, %v3391_v34 }
 0x1c5   :  { %3265 = vmatmul.mubr.f32.gmra.mrb[34].mxu0 %v7522_v0  ;;  %v7596_v0 = vld [vmem:[#allocation77_spill] sm:$0xff] }
 0x1c6   :  { %3271 = vmatprep.mubr.f32.mxu0 %v7523_v25  ;;  %v7597_v25 = vld [vmem:[#allocation78_spill] sm:$0xff] }
 0x1c7   :  { %1836 = vmatmul.mubr.f32.gmra.mrb[36].mxu1 %v7586_v41 }
 0x1c8   :  { %1843 = vmatprep.mubr.f32.mxu1 %v7587_v27 }
 0x1c9   :  { %3273 = vmatmul.mubr.f32.gmra.mrb[36].mxu0 %v7524_v63  ;;  %v7598_v63 = vld [vmem:[#allocation80_spill] sm:$0xff] }
 0x1ca   :  { %3279 = vmatprep.mubr.f32.mxu0 %v7525_v32  ;;  %v7599_v32 = vld [vmem:[#allocation191_spill] sm:$0xff] }
 0x1cb   :  { %1846 = vmatmul.mubr.f32.gmra.mrb[38].mxu1 %v7588_v16  ;;  %v3665_v16 = vmul.f32 %v6456_v1, %v3590_v17 }
 0x1cc   :  { %1853 = vmatprep.mubr.f32.mxu1 %v7589_v44  ;;  %v3592_v44 = vadd.f32 %v3528_v45, %v6448_v59 }
 0x1cd   :  { %3281 = vmatmul.mubr.f32.gmra.mrb[38].mxu0 %v7526_v8  ;;  %v7600_v8 = vld [vmem:[#allocation83_spill] sm:$0xff] }
 0x1ce   :  { %3287 = vmatprep.mubr.f32.mxu0 %v7527_v23  ;;  %v7601_v23 = vld [vmem:[#allocation84_spill] sm:$0xff] }
 0x1cf   :  { %1856 = vmatmul.mubr.f32.gmra.mrb[40].mxu1 %v7590_v4 }
 0x1d0   :  { %1863 = vmatprep.mubr.f32.mxu1 %v7591_v3 }
 0x1d1   :  { %3289 = vmatmul.mubr.f32.gmra.mrb[40].mxu0 %v7528_v11  ;;  %v7602_v11 = vld [vmem:[#allocation192_spill] sm:$0xff] }
 0x1d2   :  { %3295 = vmatprep.mubr.f32.mxu0 %v7529_v18  ;;  %v7603_v18 = vld [vmem:[#allocation196_spill] sm:$0xff] }
 0x1d3   :  { %1866 = vmatmul.mubr.f32.gmra.mrb[42].mxu1 %v7592_v39 }
 0x1d4   :  { %1873 = vmatprep.mubr.f32.mxu1 %v7593_v47 }
 0x1d5   :  { %3297 = vmatmul.mubr.f32.gmra.mrb[42].mxu0 %v7530_v28  ;;  %v7604_v28 = vld [vmem:[#allocation87_spill] sm:$0xff] }
 0x1d6   :  { %3303 = vmatprep.mubr.f32.mxu0 %v7531_v57  ;;  %v7605_v57 = vld [vmem:[#allocation89_spill] sm:$0xff] }
 0x1d7   :  { %1876 = vmatmul.mubr.f32.gmra.mrb[44].mxu1 %v7594_v13  ;;  %v3666_v13 = vmul.f32 %v6459_v55, %v3591_v36  ;;  %v3535_v36 = vld [vmem:[#allocation5 + $0x58] sm:$0xff] }
 0x1d8   :  { %1883 = vmatprep.mubr.f32.mxu1 %v7595_v62  ;;  %v3593_v62 = vadd.f32 %v3529_v20, %v6453_v60 }
 0x1d9   :  { %3305 = vmatmul.mubr.f32.gmra.mrb[44].mxu0 %v7532_v30  ;;  %v7606_v30 = vld [vmem:[#allocation91_spill] sm:$0xff] }
 0x1da   :  { %3311 = vmatprep.mubr.f32.mxu0 %v7533_v26  ;;  %v7607_v26 = vld [vmem:[#allocation200_spill] sm:$0xff] }
 0x1db   :  { %1886 = vmatmul.mubr.f32.gmra.mrb[46].mxu1 %v7596_v0  ;;  %v3530_v0 = vld [vmem:[#allocation5 + $0x30] sm:$0xff] }
 0x1dc   :  { %1893 = vmatprep.mubr.f32.mxu1 %v7597_v25 }
 0x1dd   :  { %3313 = vmatmul.mubr.f32.gmra.mrb[46].mxu0 %v7534_v46  ;;  %v7608_v46 = vld [vmem:[#allocation92_spill] sm:$0xff] }
 0x1de   :  { %3319 = vmatprep.mubr.f32.mxu0 %v7535_v24  ;;  %v7609_v24 = vld [vmem:[#allocation93_spill] sm:$0xff] }
 0x1df   :  { %1896 = vmatmul.mubr.f32.gmra.mrb[48].mxu1 %v7598_v63 }
 0x1e0   :  { %1903 = vmatprep.mubr.f32.mxu1 %v7599_v32 }
 0x1e1   :  { %3321 = vmatmul.mubr.f32.gmra.mrb[48].mxu0 %v7536_v38  ;;  %v7610_v38 = vld [vmem:[#allocation197_spill] sm:$0xff] }
 0x1e2   :  { %3327 = vmatprep.mubr.f32.mxu0 %v7537_v35  ;;  %v7611_v35 = vld [vmem:[#allocation95_spill] sm:$0xff] }
 0x1e3   :  { %1906 = vmatmul.mubr.f32.gmra.mrb[50].mxu1 %v7600_v8 }
 0x1e4   :  { %1913 = vmatprep.mubr.f32.mxu1 %v7601_v23  ;;  %v3531_v23 = vld [vmem:[#allocation5 + $0x38] sm:$0xff] }
 0x1e5   :  { %3329 = vmatmul.mubr.f32.gmra.mrb[50].mxu0 %v7538_v56  ;;  %v7612_v56 = vld [vmem:[#allocation198_spill] sm:$0xff] }
 0x1e6   :  { %3335 = vmatprep.mubr.f32.mxu0 %v7539_v19  ;;  %v7613_v19 = vld [vmem:[#allocation97_spill] sm:$0xff] }
 0x1e7   :  { %1916 = vmatmul.mubr.f32.gmra.mrb[52].mxu1 %v7602_v11 }
 0x1e8   :  { %1923 = vmatprep.mubr.f32.mxu1 %v7603_v18 }
 0x1e9   :  { %3337 = vmatmul.mubr.f32.gmra.mrb[52].mxu0 %v7540_v9  ;;  %v7614_v9 = vld [vmem:[#allocation199_spill] sm:$0xff] }
 0x1ea   :  { %3343 = vmatprep.mubr.f32.mxu0 %v7541_v2  ;;  %v7615_v2 = vld [vmem:[#allocation202_spill] sm:$0xff] }
 0x1eb   :  { %1926 = vmatmul.mubr.f32.gmra.mrb[54].mxu1 %v7604_v28 }
 0x1ec   :  { %1933 = vmatprep.mubr.f32.mxu1 %v7605_v57 }
 0x1ed   :  { %3345 = vmatmul.mubr.f32.gmra.mrb[54].mxu0 %v7542_v48  ;;  %v7616_v48 = vld [vmem:[#allocation100_spill] sm:$0xff] }
 0x1ee   :  { %3351 = vmatprep.mubr.f32.mxu0 %v7543_v51  ;;  %v7617_v51 = vld [vmem:[#allocation15_spill] sm:$0xff] }
 0x1ef   :  { %1936 = vmatmul.mubr.f32.gmra.mrb[56].mxu1 %v7606_v30  ;;  %v3667_v30 = vmul.f32 %v6456_v1, %v3592_v44 }
 0x1f0   :  { %1943 = vmatprep.mubr.f32.mxu1 %v7607_v26  ;;  %v3594_v26 = vadd.f32 %v3530_v0, %v6448_v59 }
 0x1f1   :  { %3353 = vmatmul.mubr.f32.gmra.mrb[56].mxu0 %v7544_v61  ;;  %v7618_v61 = vld [vmem:[#allocation201_spill] sm:$0xff] }
 0x1f2   :  { %3359 = vmatprep.mubr.f32.mxu0 %v7608_v46  ;;  %v3669_v40 = vmul.f32 %v6456_v1, %v3594_v26 }
 0x1f3   :  { %1946 = vmatmul.mubr.f32.gmra.mrb[58].mxu1 %v7609_v24 }
 0x1f4   :  { %1953 = vmatprep.mubr.f32.mxu1 %v7611_v35 }
 0x1f5   :  { %3361 = vmatmul.mubr.f32.gmra.mrb[58].mxu0 %v7610_v38 }
 0x1f6   :  { %3367 = vmatprep.mubr.f32.mxu0 %v7612_v56  ;;  %v3668_v56 = vmul.f32 %v6459_v55, %v3593_v62 }
 0x1f7   :  { %1956 = vmatmul.mubr.f32.gmra.mrb[60].mxu1 %v7613_v19  ;;  %v3595_v19 = vadd.f32 %v3531_v23, %v6453_v60 }
 0x1f8   :  { %1963 = vmatprep.mubr.f32.mxu1 %v7615_v2 }
 0x1f9   :  { %3369 = vmatmul.mubr.f32.gmra.mrb[60].mxu0 %v7614_v9  ;;  %v3532_v9 = vld [vmem:[#allocation5 + $0x40] sm:$0xff]  ;;  %v3670_v10 = vmul.f32 %v6459_v55, %v3595_v19 }
 0x1fa   :  { %3375 = vmatprep.mubr.f32.mxu0 %v7616_v48  ;;  %v3596_v7 = vadd.f32 %v3532_v9, %v6448_v59 }
 0x1fb   :  { %1966 = vmatmul.mubr.f32.gmra.mrb[62].mxu1 %v7617_v51 }
 0x1fc   :  { %v3671_v20 = vmul.f32 %v6456_v1, %v3596_v7 }
 0x1fd   :  { %3377 = vmatmul.mubr.f32.gmra.mrb[62].mxu0 %v7618_v61 }
 0x252   :  { %v1657_v33 = vpop.f32.mrb[0].mxu1 }
 0x253   :  { %v1659_v14 = vpop.f32.mrb[1].mxu1 }
 0x254   :  { %v3130_v54 = vpop.f32.mrb[0].mxu0 }
 0x255   :  { %v4349_v5 = vadd.f32 %v3130_v54, %v1657_v33  ;;  %v3132_v21 = vpop.f32.mrb[1].mxu0 }
 0x256   :  { %v4350_v6 = vadd.f32 %v3132_v21, %v1659_v14  ;;  %v1667_v39 = vpop.f32.mrb[2].mxu1 }
 0x257   :  { %v3395_v41 = vadd.f32 %v4349_v5, %v6448_v59  ;;  %v3727_v27 = vmul.f32 %v4349_v5, %v3663_v42  ;;  %v1669_v32 = vpop.f32.mrb[3].mxu1  ;;  %v3534_v42 = vld [vmem:[#allocation5 + $0x50] sm:$0xff] }
 0x258   :  { %v3396_v4 = vadd.f32 %v4350_v6, %v6453_v60  ;;  %v3728_v3 = vmul.f32 %v4350_v6, %v3664_v52  ;;  %v3138_v47 = vpop.f32.mrb[2].mxu0  ;;  %v3598_v6 = vadd.f32 %v3534_v42, %v6448_v59 }
 0x259   :  { %3459 = vst [vmem:[#allocation7] sm:$0xff] %v3395_v41  ;;  %v3803_v25 = vadd.f32 %v6465_v12, %v3727_v27  ;;  %v4351_v63 = vadd.f32 %v3138_v47, %v1667_v39  ;;  %v3140_v8 = vpop.f32.mrb[3].mxu0  ;;  %v3536_v39 = vld [vmem:[#allocation5 + $0x60] sm:$0xff] }
 0x25a   :  { %3460 = vst [vmem:[#allocation7 + $0x8] sm:$0xff] %v3396_v4  ;;  %v3804_v11 = vadd.f32 %v6467_v43, %v3728_v3  ;;  %v4352_v18 = vadd.f32 %v3140_v8, %v1669_v32  ;;  %v1677_v38 = vpop.f32.mrb[4].mxu1  ;;  %v3672_v4 = vmul.f32 %v6459_v55, %v3597_v58  ;;  %v3599_v3 = vadd.f32 %v3535_v36, %v6453_v60 }
 0x25b   :  { %3867 = vst [vmem:[#allocation8] sm:$0xff] %v3803_v25  ;;  %v3397_v28 = vadd.f32 %v4351_v63, %v6448_v59  ;;  %v3729_v57 = vmul.f32 %v4351_v63, %v3665_v16  ;;  %v1679_v51 = vpop.f32.mrb[5].mxu1  ;;  %v3537_v25 = vld [vmem:[#allocation5 + $0x68] sm:$0xff] }
 0x25c   :  { %3868 = vst [vmem:[#allocation8 + $0x8] sm:$0xff] %v3804_v11  ;;  %v3398_v46 = vadd.f32 %v4352_v18, %v6453_v60  ;;  %v3730_v24 = vmul.f32 %v4352_v18, %v3666_v13  ;;  %v3146_v35 = vpop.f32.mrb[4].mxu0  ;;  %v3673_v11 = vmul.f32 %v6456_v1, %v3598_v6  ;;  %v3600_v18 = vadd.f32 %v3536_v39, %v6448_v59 }
 0x25d   :  { %3461 = vst [vmem:[#allocation7 + $0x10] sm:$0xff] %v3397_v28  ;;  %v3805_v2 = vadd.f32 %v6465_v12, %v3729_v57  ;;  %v4353_v48 = vadd.f32 %v3146_v35, %v1677_v38  ;;  %v3148_v61 = vpop.f32.mrb[5].mxu0  ;;  %v3538_v38 = vld [vmem:[#allocation5 + $0x70] sm:$0xff] }
 0x25e   :  { %3462 = vst [vmem:[#allocation7 + $0x18] sm:$0xff] %v3398_v46  ;;  %v3806_v29 = vadd.f32 %v6467_v43, %v3730_v24  ;;  %v4354_v15 = vadd.f32 %v3148_v61, %v1679_v51  ;;  %v1687_v37 = vpop.f32.mrb[6].mxu1  ;;  %v3674_v46 = vmul.f32 %v6459_v55, %v3599_v3  ;;  %v3601_v24 = vadd.f32 %v3537_v25, %v6453_v60 }
 0x25f   :  { %3869 = vst [vmem:[#allocation8 + $0x10] sm:$0xff] %v3805_v2  ;;  %v3399_v50 = vadd.f32 %v4353_v48, %v6448_v59  ;;  %v3731_v34 = vmul.f32 %v4353_v48, %v3667_v30  ;;  %v1689_v54 = vpop.f32.mrb[7].mxu1  ;;  %v3539_v2 = vld [vmem:[#allocation5 + $0x78] sm:$0xff] }
 0x260   :  { %3870 = vst [vmem:[#allocation8 + $0x18] sm:$0xff] %v3806_v29  ;;  %v3400_v49 = vadd.f32 %v4354_v15, %v6453_v60  ;;  %v3732_v22 = vmul.f32 %v4354_v15, %v3668_v56  ;;  %v3154_v31 = vpop.f32.mrb[6].mxu0  ;;  %v3675_v29 = vmul.f32 %v6456_v1, %v3600_v18  ;;  %v3602_v15 = vadd.f32 %v3538_v38, %v6448_v59 }
 0x261   :  { %3463 = vst [vmem:[#allocation7 + $0x20] sm:$0xff] %v3399_v50  ;;  %v3807_v17 = vadd.f32 %v6465_v12, %v3731_v34  ;;  %v4355_v33 = vadd.f32 %v3154_v31, %v1687_v37  ;;  %v3156_v52 = vpop.f32.mrb[7].mxu0  ;;  %v3540_v37 = vld [vmem:[#allocation5 + $0x80] sm:$0xff] }
 0x262   :  { %3464 = vst [vmem:[#allocation7 + $0x28] sm:$0xff] %v3400_v49  ;;  %v3808_v45 = vadd.f32 %v6467_v43, %v3732_v22  ;;  %v4356_v5 = vadd.f32 %v3156_v52, %v1689_v54  ;;  %v1697_v16 = vpop.f32.mrb[8].mxu1  ;;  %v3676_v49 = vmul.f32 %v6459_v55, %v3601_v24  ;;  %v3603_v22 = vadd.f32 %v3539_v2, %v6453_v60 }
 0x263   :  { %3871 = vst [vmem:[#allocation8 + $0x20] sm:$0xff] %v3807_v17  ;;  %v3401_v14 = vadd.f32 %v4355_v33, %v6448_v59  ;;  %v3733_v21 = vmul.f32 %v4355_v33, %v3669_v40  ;;  %v1699_v62 = vpop.f32.mrb[9].mxu1  ;;  %v3541_v17 = vld [vmem:[#allocation5 + $0x88] sm:$0xff] }
 0x264   :  { %3872 = vst [vmem:[#allocation8 + $0x28] sm:$0xff] %v3808_v45  ;;  %v3402_v41 = vadd.f32 %v4356_v5, %v6453_v60  ;;  %v3734_v27 = vmul.f32 %v4356_v5, %v3670_v10  ;;  %v3162_v44 = vpop.f32.mrb[8].mxu0  ;;  %v3677_v45 = vmul.f32 %v6456_v1, %v3602_v15  ;;  %v3604_v5 = vadd.f32 %v3540_v37, %v6448_v59 }
 0x265   :  { %3465 = vst [vmem:[#allocation7 + $0x30] sm:$0xff] %v3401_v14  ;;  %v3809_v47 = vadd.f32 %v6465_v12, %v3733_v21  ;;  %v4357_v13 = vadd.f32 %v3162_v44, %v1697_v16  ;;  %v3164_v0 = vpop.f32.mrb[9].mxu0  ;;  %v3542_v16 = vld [vmem:[#allocation5 + $0x90] sm:$0xff] }
 0x266   :  { %3466 = vst [vmem:[#allocation7 + $0x38] sm:$0xff] %v3402_v41  ;;  %v3810_v63 = vadd.f32 %v6467_v43, %v3734_v27  ;;  %v4358_v32 = vadd.f32 %v3164_v0, %v1699_v62  ;;  %v1707_v30 = vpop.f32.mrb[10].mxu1  ;;  %v3678_v41 = vmul.f32 %v6459_v55, %v3603_v22  ;;  %v3605_v27 = vadd.f32 %v3541_v17, %v6453_v60 }
 0x267   :  { %3873 = vst [vmem:[#allocation8 + $0x30] sm:$0xff] %v3809_v47  ;;  %v3403_v8 = vadd.f32 %v4357_v13, %v6448_v59  ;;  %v3735_v23 = vmul.f32 %v4357_v13, %v3671_v20  ;;  %v1709_v19 = vpop.f32.mrb[11].mxu1  ;;  %v3543_v47 = vld [vmem:[#allocation5 + $0x98] sm:$0xff] }
 0x268   :  { %3874 = vst [vmem:[#allocation8 + $0x38] sm:$0xff] %v3810_v63  ;;  %v3404_v28 = vadd.f32 %v4358_v32, %v6453_v60  ;;  %v3736_v57 = vmul.f32 %v4358_v32, %v3672_v4  ;;  %v3170_v26 = vpop.f32.mrb[10].mxu0  ;;  %v3679_v63 = vmul.f32 %v6456_v1, %v3604_v5  ;;  %v3606_v32 = vadd.f32 %v3542_v16, %v6448_v59 }
 0x269   :  { %3467 = vst [vmem:[#allocation7 + $0x40] sm:$0xff] %v3403_v8  ;;  %v3811_v35 = vadd.f32 %v6465_v12, %v3735_v23  ;;  %v4359_v56 = vadd.f32 %v3170_v26, %v1707_v30  ;;  %v3172_v9 = vpop.f32.mrb[11].mxu0  ;;  %v3544_v30 = vld [vmem:[#allocation5 + $0xa0] sm:$0xff] }
 0x26a   :  { %3468 = vst [vmem:[#allocation7 + $0x48] sm:$0xff] %v3404_v28  ;;  %v3812_v48 = vadd.f32 %v6467_v43, %v3736_v57  ;;  %v4360_v51 = vadd.f32 %v3172_v9, %v1709_v19  ;;  %v1717_v40 = vpop.f32.mrb[12].mxu1  ;;  %v3680_v28 = vmul.f32 %v6459_v55, %v3605_v27  ;;  %v3607_v57 = vadd.f32 %v3543_v47, %v6453_v60 }
 0x26b   :  { %3875 = vst [vmem:[#allocation8 + $0x40] sm:$0xff] %v3811_v35  ;;  %v3405_v61 = vadd.f32 %v4359_v56, %v6448_v59  ;;  %v3737_v53 = vmul.f32 %v4359_v56, %v3673_v11  ;;  %v1719_v58 = vpop.f32.mrb[13].mxu1  ;;  %v3545_v35 = vld [vmem:[#allocation5 + $0xa8] sm:$0xff] }
 0x26c   :  { %3876 = vst [vmem:[#allocation8 + $0x48] sm:$0xff] %v3812_v48  ;;  %v3406_v50 = vadd.f32 %v4360_v51, %v6453_v60  ;;  %v3738_v34 = vmul.f32 %v4360_v51, %v3674_v46  ;;  %v3178_v7 = vpop.f32.mrb[12].mxu0  ;;  %v3681_v48 = vmul.f32 %v6456_v1, %v3606_v32  ;;  %v3608_v51 = vadd.f32 %v3544_v30, %v6448_v59 }
 0x26d   :  { %3469 = vst [vmem:[#allocation7 + $0x50] sm:$0xff] %v3405_v61  ;;  %v3813_v31 = vadd.f32 %v6465_v12, %v3737_v53  ;;  %v4361_v10 = vadd.f32 %v3178_v7, %v1717_v40  ;;  %v3180_v42 = vpop.f32.mrb[13].mxu0  ;;  %v3546_v40 = vld [vmem:[#allocation5 + $0xb0] sm:$0xff] }
 0x26e   :  { %3470 = vst [vmem:[#allocation7 + $0x58] sm:$0xff] %v3406_v50  ;;  %v3814_v33 = vadd.f32 %v6467_v43, %v3738_v34  ;;  %v4362_v54 = vadd.f32 %v3180_v42, %v1719_v58  ;;  %v1727_v20 = vpop.f32.mrb[14].mxu1  ;;  %v3682_v50 = vmul.f32 %v6459_v55, %v3607_v57  ;;  %v3609_v34 = vadd.f32 %v3545_v35, %v6453_v60 }
 0x26f   :  { %3877 = vst [vmem:[#allocation8 + $0x50] sm:$0xff] %v3813_v31  ;;  %v3407_v52 = vadd.f32 %v4361_v10, %v6448_v59  ;;  %v3739_v36 = vmul.f32 %v4361_v10, %v3675_v29  ;;  %v1729_v3 = vpop.f32.mrb[15].mxu1  ;;  %v3547_v31 = vld [vmem:[#allocation5 + $0xb8] sm:$0xff] }
 0x270   :  { %3878 = vst [vmem:[#allocation8 + $0x58] sm:$0xff] %v3814_v33  ;;  %v3408_v14 = vadd.f32 %v4362_v54, %v6453_v60  ;;  %v3740_v21 = vmul.f32 %v4362_v54, %v3676_v49  ;;  %v3186_v6 = vpop.f32.mrb[14].mxu0  ;;  %v3683_v33 = vmul.f32 %v6456_v1, %v3608_v51  ;;  %v3610_v54 = vadd.f32 %v3546_v40, %v6448_v59 }
 0x271   :  { %3471 = vst [vmem:[#allocation7 + $0x60] sm:$0xff] %v3407_v52  ;;  %v3815_v44 = vadd.f32 %v6465_v12, %v3739_v36  ;;  %v4363_v4 = vadd.f32 %v3186_v6, %v1727_v20  ;;  %v3188_v39 = vpop.f32.mrb[15].mxu0  ;;  %v3548_v20 = vld [vmem:[#allocation5 + $0xc0] sm:$0xff] }
 0x272   :  { %3472 = vst [vmem:[#allocation7 + $0x68] sm:$0xff] %v3408_v14  ;;  %v3816_v13 = vadd.f32 %v6467_v43, %v3740_v21  ;;  %v4364_v62 = vadd.f32 %v3188_v39, %v1729_v3  ;;  %v1737_v11 = vpop.f32.mrb[16].mxu1  ;;  %v3684_v14 = vmul.f32 %v6459_v55, %v3609_v34  ;;  %v3611_v21 = vadd.f32 %v3547_v31, %v6453_v60 }
 0x273   :  { %3879 = vst [vmem:[#allocation8 + $0x60] sm:$0xff] %v3815_v44  ;;  %v3409_v0 = vadd.f32 %v4363_v4, %v6448_v59  ;;  %v3741_v25 = vmul.f32 %v4363_v4, %v3677_v45  ;;  %v1739_v24 = vpop.f32.mrb[17].mxu1  ;;  %v3549_v44 = vld [vmem:[#allocation5 + $0xc8] sm:$0xff] }
 0x274   :  { %3880 = vst [vmem:[#allocation8 + $0x68] sm:$0xff] %v3816_v13  ;;  %v3410_v8 = vadd.f32 %v4364_v62, %v6453_v60  ;;  %v3742_v23 = vmul.f32 %v4364_v62, %v3678_v41  ;;  %v3194_v18 = vpop.f32.mrb[16].mxu0  ;;  %v3685_v13 = vmul.f32 %v6456_v1, %v3610_v54  ;;  %v3612_v62 = vadd.f32 %v3548_v20, %v6448_v59 }
 0x275   :  { %3473 = vst [vmem:[#allocation7 + $0x70] sm:$0xff] %v3409_v0  ;;  %v3817_v26 = vadd.f32 %v6465_v12, %v3741_v25  ;;  %v4365_v46 = vadd.f32 %v3194_v18, %v1737_v11  ;;  %v3196_v38 = vpop.f32.mrb[17].mxu0  ;;  %v3550_v11 = vld [vmem:[#allocation5 + $0xd0] sm:$0xff] }
 0x276   :  { %3474 = vst [vmem:[#allocation7 + $0x78] sm:$0xff] %v3410_v8  ;;  %v3818_v56 = vadd.f32 %v6467_v43, %v3742_v23  ;;  %v4366_v19 = vadd.f32 %v3196_v38, %v1739_v24  ;;  %v1747_v29 = vpop.f32.mrb[18].mxu1  ;;  %v3686_v8 = vmul.f32 %v6459_v55, %v3611_v21  ;;  %v3613_v23 = vadd.f32 %v3549_v44, %v6453_v60 }
 0x277   :  { %3881 = vst [vmem:[#allocation8 + $0x70] sm:$0xff] %v3817_v26  ;;  %v3411_v9 = vadd.f32 %v4365_v46, %v6448_v59  ;;  %v3743_v2 = vmul.f32 %v4365_v46, %v3679_v63  ;;  %v1749_v22 = vpop.f32.mrb[19].mxu1  ;;  %v3551_v26 = vld [vmem:[#allocation5 + $0xd8] sm:$0xff] }
 0x278   :  { %3882 = vst [vmem:[#allocation8 + $0x78] sm:$0xff] %v3818_v56  ;;  %v3412_v61 = vadd.f32 %v4366_v19, %v6453_v60  ;;  %v3744_v53 = vmul.f32 %v4366_v19, %v3680_v28  ;;  %v3202_v15 = vpop.f32.mrb[18].mxu0  ;;  %v3687_v56 = vmul.f32 %v6456_v1, %v3612_v62  ;;  %v3614_v19 = vadd.f32 %v3550_v11, %v6448_v59 }
 0x279   :  { %3475 = vst [vmem:[#allocation7 + $0x80] sm:$0xff] %v3411_v9  ;;  %v3819_v7 = vadd.f32 %v6465_v12, %v3743_v2  ;;  %v4367_v49 = vadd.f32 %v3202_v15, %v1747_v29  ;;  %v3204_v37 = vpop.f32.mrb[19].mxu0  ;;  %v3552_v29 = vld [vmem:[#allocation5 + $0xe0] sm:$0xff] }
 0x27a   :  { %3476 = vst [vmem:[#allocation7 + $0x88] sm:$0xff] %v3412_v61  ;;  %v3820_v10 = vadd.f32 %v6467_v43, %v3744_v53  ;;  %v4368_v58 = vadd.f32 %v3204_v37, %v1749_v22  ;;  %v1757_v45 = vpop.f32.mrb[20].mxu1  ;;  %v3688_v61 = vmul.f32 %v6459_v55, %v3613_v23  ;;  %v3615_v53 = vadd.f32 %v3551_v26, %v6453_v60 }
 0x27b   :  { %3883 = vst [vmem:[#allocation8 + $0x80] sm:$0xff] %v3819_v7  ;;  %v3413_v42 = vadd.f32 %v4367_v49, %v6448_v59  ;;  %v3745_v17 = vmul.f32 %v4367_v49, %v3681_v48  ;;  %v1759_v27 = vpop.f32.mrb[21].mxu1  ;;  %v3553_v7 = vld [vmem:[#allocation5 + $0xe8] sm:$0xff] }
 0x27c   :  { %3884 = vst [vmem:[#allocation8 + $0x88] sm:$0xff] %v3820_v10  ;;  %v3414_v52 = vadd.f32 %v4368_v58, %v6453_v60  ;;  %v3746_v36 = vmul.f32 %v4368_v58, %v3682_v50  ;;  %v3210_v5 = vpop.f32.mrb[20].mxu0  ;;  %v3689_v10 = vmul.f32 %v6456_v1, %v3614_v19  ;;  %v3616_v58 = vadd.f32 %v3552_v29, %v6448_v59 }
 0x27d   :  { %3477 = vst [vmem:[#allocation7 + $0x90] sm:$0xff] %v3413_v42  ;;  %v3821_v6 = vadd.f32 %v6465_v12, %v3745_v17  ;;  %v4369_v41 = vadd.f32 %v3210_v5, %v1757_v45  ;;  %v3212_v16 = vpop.f32.mrb[21].mxu0  ;;  %v3554_v45 = vld [vmem:[#allocation5 + $0xf0] sm:$0xff] }
 0x27e   :  { %3478 = vst [vmem:[#allocation7 + $0x98] sm:$0xff] %v3414_v52  ;;  %v3822_v4 = vadd.f32 %v6467_v43, %v3746_v36  ;;  %v4370_v3 = vadd.f32 %v3212_v16, %v1759_v27  ;;  %v1767_v63 = vpop.f32.mrb[22].mxu1  ;;  %v3690_v52 = vmul.f32 %v6459_v55, %v3615_v53  ;;  %v3617_v36 = vadd.f32 %v3553_v7, %v6453_v60 }
 0x27f   :  { %3885 = vst [vmem:[#allocation8 + $0x90] sm:$0xff] %v3821_v6  ;;  %v3415_v39 = vadd.f32 %v4369_v41, %v6448_v59  ;;  %v3747_v47 = vmul.f32 %v4369_v41, %v3683_v33  ;;  %v1769_v57 = vpop.f32.mrb[23].mxu1  ;;  %v3555_v6 = vld [vmem:[#allocation5 + $0xf8] sm:$0xff] }
 0x280   :  { %3886 = vst [vmem:[#allocation8 + $0x98] sm:$0xff] %v3822_v4  ;;  %v3416_v0 = vadd.f32 %v4370_v3, %v6453_v60  ;;  %v3748_v25 = vmul.f32 %v4370_v3, %v3684_v14  ;;  %v3218_v32 = vpop.f32.mrb[22].mxu0  ;;  %v3691_v4 = vmul.f32 %v6456_v1, %v3616_v58  ;;  %v3618_v3 = vadd.f32 %v3554_v45, %v6448_v59 }
 0x281   :  { %3479 = vst [vmem:[#allocation7 + $0xa0] sm:$0xff] %v3415_v39  ;;  %v3823_v18 = vadd.f32 %v6465_v12, %v3747_v47  ;;  %v4371_v28 = vadd.f32 %v3218_v32, %v1767_v63  ;;  %v3220_v30 = vpop.f32.mrb[23].mxu0  ;;  %v3556_v63 = vld [vmem:[#allocation5 + $0x100] sm:$0xff] }
 0x282   :  { %3480 = vst [vmem:[#allocation7 + $0xa8] sm:$0xff] %v3416_v0  ;;  %v3824_v46 = vadd.f32 %v6467_v43, %v3748_v25  ;;  %v4372_v24 = vadd.f32 %v3220_v30, %v1769_v57  ;;  %v1777_v48 = vpop.f32.mrb[24].mxu1  ;;  %v3692_v0 = vmul.f32 %v6459_v55, %v3617_v36  ;;  %v3619_v25 = vadd.f32 %v3555_v6, %v6453_v60 }
 0x283   :  { %3887 = vst [vmem:[#allocation8 + $0xa0] sm:$0xff] %v3823_v18  ;;  %v3417_v38 = vadd.f32 %v4371_v28, %v6448_v59  ;;  %v3749_v35 = vmul.f32 %v4371_v28, %v3685_v13  ;;  %v1779_v34 = vpop.f32.mrb[25].mxu1  ;;  %v3557_v18 = vld [vmem:[#allocation5 + $0x108] sm:$0xff] }
 0x284   :  { %3888 = vst [vmem:[#allocation8 + $0xa8] sm:$0xff] %v3824_v46  ;;  %v3418_v9 = vadd.f32 %v4372_v24, %v6453_v60  ;;  %v3750_v2 = vmul.f32 %v4372_v24, %v3686_v8  ;;  %v3226_v51 = vpop.f32.mrb[24].mxu0  ;;  %v3693_v46 = vmul.f32 %v6456_v1, %v3618_v3  ;;  %v3620_v24 = vadd.f32 %v3556_v63, %v6448_v59 }
 0x285   :  { %3481 = vst [vmem:[#allocation7 + $0xb0] sm:$0xff] %v3417_v38  ;;  %v3825_v15 = vadd.f32 %v6465_v12, %v3749_v35  ;;  %v4373_v50 = vadd.f32 %v3226_v51, %v1777_v48  ;;  %v3228_v40 = vpop.f32.mrb[25].mxu0  ;;  %v3558_v48 = vld [vmem:[#allocation5 + $0x110] sm:$0xff] }
 0x286   :  { %3482 = vst [vmem:[#allocation7 + $0xb8] sm:$0xff] %v3418_v9  ;;  %v3826_v49 = vadd.f32 %v6467_v43, %v3750_v2  ;;  %v4374_v22 = vadd.f32 %v3228_v40, %v1779_v34  ;;  %v1787_v33 = vpop.f32.mrb[26].mxu1  ;;  %v3694_v9 = vmul.f32 %v6459_v55, %v3619_v25  ;;  %v3621_v2 = vadd.f32 %v3557_v18, %v6453_v60 }
 0x287   :  { %3889 = vst [vmem:[#allocation8 + $0xb0] sm:$0xff] %v3825_v15  ;;  %v3419_v37 = vadd.f32 %v4373_v50, %v6448_v59  ;;  %v3751_v31 = vmul.f32 %v4373_v50, %v3687_v56  ;;  %v1789_v21 = vpop.f32.mrb[27].mxu1  ;;  %v3559_v15 = vld [vmem:[#allocation5 + $0x118] sm:$0xff] }
 0x288   :  { %3890 = vst [vmem:[#allocation8 + $0xb8] sm:$0xff] %v3826_v49  ;;  %v3420_v42 = vadd.f32 %v4374_v22, %v6453_v60  ;;  %v3752_v17 = vmul.f32 %v4374_v22, %v3688_v61  ;;  %v3234_v54 = vpop.f32.mrb[26].mxu0  ;;  %v3695_v49 = vmul.f32 %v6456_v1, %v3620_v24  ;;  %v3622_v22 = vadd.f32 %v3558_v48, %v6448_v59 }
 0x289   :  { %3483 = vst [vmem:[#allocation7 + $0xc0] sm:$0xff] %v3419_v37  ;;  %v3827_v5 = vadd.f32 %v6465_v12, %v3751_v31  ;;  %v4375_v14 = vadd.f32 %v3234_v54, %v1787_v33  ;;  %v3236_v20 = vpop.f32.mrb[27].mxu0  ;;  %v3560_v33 = vld [vmem:[#allocation5 + $0x120] sm:$0xff] }
 0x28a   :  { %3484 = vst [vmem:[#allocation7 + $0xc8] sm:$0xff] %v3420_v42  ;;  %v3828_v41 = vadd.f32 %v6467_v43, %v3752_v17  ;;  %v4376_v27 = vadd.f32 %v3236_v20, %v1789_v21  ;;  %v1797_v13 = vpop.f32.mrb[28].mxu1  ;;  %v3696_v42 = vmul.f32 %v6459_v55, %v3621_v2  ;;  %v3623_v17 = vadd.f32 %v3559_v15, %v6453_v60 }
 0x28b   :  { %3891 = vst [vmem:[#allocation8 + $0xc0] sm:$0xff] %v3827_v5  ;;  %v3421_v16 = vadd.f32 %v4375_v14, %v6448_v59  ;;  %v3753_v44 = vmul.f32 %v4375_v14, %v3689_v10  ;;  %v1799_v23 = vpop.f32.mrb[29].mxu1  ;;  %v3561_v5 = vld [vmem:[#allocation5 + $0x128] sm:$0xff] }
 0x28c   :  { %3892 = vst [vmem:[#allocation8 + $0xc8] sm:$0xff] %v3828_v41  ;;  %v3422_v39 = vadd.f32 %v4376_v27, %v6453_v60  ;;  %v3754_v47 = vmul.f32 %v4376_v27, %v3690_v52  ;;  %v3242_v62 = vpop.f32.mrb[28].mxu0  ;;  %v3697_v41 = vmul.f32 %v6456_v1, %v3622_v22  ;;  %v3624_v27 = vadd.f32 %v3560_v33, %v6448_v59 }
 0x28d   :  { %3485 = vst [vmem:[#allocation7 + $0xd0] sm:$0xff] %v3421_v16  ;;  %v3829_v32 = vadd.f32 %v6465_v12, %v3753_v44  ;;  %v4377_v8 = vadd.f32 %v3242_v62, %v1797_v13  ;;  %v3244_v11 = vpop.f32.mrb[29].mxu0  ;;  %v3562_v13 = vld [vmem:[#allocation5 + $0x130] sm:$0xff] }
 0x28e   :  { %3486 = vst [vmem:[#allocation7 + $0xd8] sm:$0xff] %v3422_v39  ;;  %v3830_v28 = vadd.f32 %v6467_v43, %v3754_v47  ;;  %v4378_v57 = vadd.f32 %v3244_v11, %v1799_v23  ;;  %v1807_v56 = vpop.f32.mrb[30].mxu1  ;;  %v3698_v39 = vmul.f32 %v6459_v55, %v3623_v17  ;;  %v3625_v47 = vadd.f32 %v3561_v5, %v6453_v60 }
 0x28f   :  { %3893 = vst [vmem:[#allocation8 + $0xd0] sm:$0xff] %v3829_v32  ;;  %v3423_v30 = vadd.f32 %v4377_v8, %v6448_v59  ;;  %v3755_v26 = vmul.f32 %v4377_v8, %v3691_v4  ;;  %v1809_v53 = vpop.f32.mrb[31].mxu1  ;;  %v3563_v32 = vld [vmem:[#allocation5 + $0x138] sm:$0xff] }
 0x290   :  { %3894 = vst [vmem:[#allocation8 + $0xd8] sm:$0xff] %v3830_v28  ;;  %v3424_v38 = vadd.f32 %v4378_v57, %v6453_v60  ;;  %v3756_v35 = vmul.f32 %v4378_v57, %v3692_v0  ;;  %v3250_v19 = vpop.f32.mrb[30].mxu0  ;;  %v3699_v28 = vmul.f32 %v6456_v1, %v3624_v27  ;;  %v3626_v57 = vadd.f32 %v3562_v13, %v6448_v59 }
 0x291   :  { %3487 = vst [vmem:[#allocation7 + $0xe0] sm:$0xff] %v3423_v30  ;;  %v3831_v51 = vadd.f32 %v6465_v12, %v3755_v26  ;;  %v4379_v61 = vadd.f32 %v3250_v19, %v1807_v56  ;;  %v3252_v29 = vpop.f32.mrb[31].mxu0  ;;  %v3564_v56 = vld [vmem:[#allocation5 + $0x140] sm:$0xff] }
 0x292   :  { %3488 = vst [vmem:[#allocation7 + $0xe8] sm:$0xff] %v3424_v38  ;;  %v3832_v50 = vadd.f32 %v6467_v43, %v3756_v35  ;;  %v4380_v34 = vadd.f32 %v3252_v29, %v1809_v53  ;;  %v1817_v10 = vpop.f32.mrb[32].mxu1  ;;  %v3700_v38 = vmul.f32 %v6459_v55, %v3625_v47  ;;  %v3627_v35 = vadd.f32 %v3563_v32, %v6453_v60 }
 0x293   :  { %3895 = vst [vmem:[#allocation8 + $0xe0] sm:$0xff] %v3831_v51  ;;  %v3425_v40 = vadd.f32 %v4379_v61, %v6448_v59  ;;  %v3757_v7 = vmul.f32 %v4379_v61, %v3693_v46  ;;  %v1819_v36 = vpop.f32.mrb[33].mxu1  ;;  %v3565_v51 = vld [vmem:[#allocation5 + $0x148] sm:$0xff] }
 0x294   :  { %3896 = vst [vmem:[#allocation8 + $0xe8] sm:$0xff] %v3832_v50  ;;  %v3426_v37 = vadd.f32 %v4380_v34, %v6453_v60  ;;  %v3758_v31 = vmul.f32 %v4380_v34, %v3694_v9  ;;  %v3258_v58 = vpop.f32.mrb[32].mxu0  ;;  %v3701_v50 = vmul.f32 %v6456_v1, %v3626_v57  ;;  %v3628_v34 = vadd.f32 %v3564_v56, %v6448_v59 }
 0x295   :  { %3489 = vst [vmem:[#allocation7 + $0xf0] sm:$0xff] %v3425_v40  ;;  %v3833_v54 = vadd.f32 %v6465_v12, %v3757_v7  ;;  %v4381_v52 = vadd.f32 %v3258_v58, %v1817_v10  ;;  %v3260_v45 = vpop.f32.mrb[33].mxu0  ;;  %v3566_v10 = vld [vmem:[#allocation5 + $0x150] sm:$0xff] }
 0x296   :  { %3490 = vst [vmem:[#allocation7 + $0xf8] sm:$0xff] %v3426_v37  ;;  %v3834_v14 = vadd.f32 %v6467_v43, %v3758_v31  ;;  %v4382_v21 = vadd.f32 %v3260_v45, %v1819_v36  ;;  %v1827_v4 = vpop.f32.mrb[34].mxu1  ;;  %v3702_v37 = vmul.f32 %v6459_v55, %v3627_v35  ;;  %v3629_v31 = vadd.f32 %v3565_v51, %v6453_v60 }
 0x297   :  { %3897 = vst [vmem:[#allocation8 + $0xf0] sm:$0xff] %v3833_v54  ;;  %v3427_v20 = vadd.f32 %v4381_v52, %v6448_v59  ;;  %v3759_v6 = vmul.f32 %v4381_v52, %v3695_v49  ;;  %v1829_v25 = vpop.f32.mrb[35].mxu1  ;;  %v3567_v54 = vld [vmem:[#allocation5 + $0x158] sm:$0xff] }
 0x298   :  { %3898 = vst [vmem:[#allocation8 + $0xf8] sm:$0xff] %v3834_v14  ;;  %v3428_v16 = vadd.f32 %v4382_v21, %v6453_v60  ;;  %v3760_v44 = vmul.f32 %v4382_v21, %v3696_v42  ;;  %v3266_v3 = vpop.f32.mrb[34].mxu0  ;;  %v3703_v14 = vmul.f32 %v6456_v1, %v3628_v34  ;;  %v3630_v21 = vadd.f32 %v3566_v10, %v6448_v59 }
 0x299   :  { %3491 = vst [vmem:[#allocation7 + $0x100] sm:$0xff] %v3427_v20  ;;  %v3835_v62 = vadd.f32 %v6465_v12, %v3759_v6  ;;  %v4383_v0 = vadd.f32 %v3266_v3, %v1827_v4  ;;  %v3268_v63 = vpop.f32.mrb[35].mxu0  ;;  %v3568_v4 = vld [vmem:[#allocation5 + $0x160] sm:$0xff] }
 0x29a   :  { %3492 = vst [vmem:[#allocation7 + $0x108] sm:$0xff] %v3428_v16  ;;  %v3836_v8 = vadd.f32 %v6467_v43, %v3760_v44  ;;  %v4384_v23 = vadd.f32 %v3268_v63, %v1829_v25  ;;  %v1837_v46 = vpop.f32.mrb[36].mxu1  ;;  %v3704_v16 = vmul.f32 %v6459_v55, %v3629_v31  ;;  %v3631_v44 = vadd.f32 %v3567_v54, %v6453_v60 }
 0x29b   :  { %3899 = vst [vmem:[#allocation8 + $0x100] sm:$0xff] %v3835_v62  ;;  %v3429_v11 = vadd.f32 %v4383_v0, %v6448_v59  ;;  %v3761_v18 = vmul.f32 %v4383_v0, %v3697_v41  ;;  %v1839_v2 = vpop.f32.mrb[37].mxu1  ;;  %v3569_v62 = vld [vmem:[#allocation5 + $0x168] sm:$0xff] }
 0x29c   :  { %3900 = vst [vmem:[#allocation8 + $0x108] sm:$0xff] %v3836_v8  ;;  %v3430_v30 = vadd.f32 %v4384_v23, %v6453_v60  ;;  %v3762_v26 = vmul.f32 %v4384_v23, %v3698_v39  ;;  %v3274_v24 = vpop.f32.mrb[36].mxu0  ;;  %v3705_v8 = vmul.f32 %v6456_v1, %v3630_v21  ;;  %v3632_v23 = vadd.f32 %v3568_v4, %v6448_v59 }
 0x29d   :  { %3493 = vst [vmem:[#allocation7 + $0x110] sm:$0xff] %v3429_v11  ;;  %v3837_v19 = vadd.f32 %v6465_v12, %v3761_v18  ;;  %v4385_v9 = vadd.f32 %v3274_v24, %v1837_v46  ;;  %v3276_v48 = vpop.f32.mrb[37].mxu0  ;;  %v3570_v46 = vld [vmem:[#allocation5 + $0x170] sm:$0xff] }
 0x29e   :  { %3494 = vst [vmem:[#allocation7 + $0x118] sm:$0xff] %v3430_v30  ;;  %v3838_v61 = vadd.f32 %v6467_v43, %v3762_v26  ;;  %v4386_v53 = vadd.f32 %v3276_v48, %v1839_v2  ;;  %v1847_v49 = vpop.f32.mrb[38].mxu1  ;;  %v3706_v30 = vmul.f32 %v6459_v55, %v3631_v44  ;;  %v3633_v26 = vadd.f32 %v3569_v62, %v6453_v60 }
 0x29f   :  { %3901 = vst [vmem:[#allocation8 + $0x110] sm:$0xff] %v3837_v19  ;;  %v3431_v29 = vadd.f32 %v4385_v9, %v6448_v59  ;;  %v3763_v15 = vmul.f32 %v4385_v9, %v3699_v28  ;;  %v1849_v17 = vpop.f32.mrb[39].mxu1  ;;  %v3571_v19 = vld [vmem:[#allocation5 + $0x178] sm:$0xff] }
 0x2a0   :  { %3902 = vst [vmem:[#allocation8 + $0x118] sm:$0xff] %v3838_v61  ;;  %v3432_v40 = vadd.f32 %v4386_v53, %v6453_v60  ;;  %v3764_v7 = vmul.f32 %v4386_v53, %v3700_v38  ;;  %v3282_v22 = vpop.f32.mrb[38].mxu0  ;;  %v3707_v61 = vmul.f32 %v6456_v1, %v3632_v23  ;;  %v3634_v53 = vadd.f32 %v3570_v46, %v6448_v59 }
 0x2a1   :  { %3495 = vst [vmem:[#allocation7 + $0x120] sm:$0xff] %v3431_v29  ;;  %v3839_v58 = vadd.f32 %v6465_v12, %v3763_v15  ;;  %v4387_v42 = vadd.f32 %v3282_v22, %v1847_v49  ;;  %v3284_v33 = vpop.f32.mrb[39].mxu0  ;;  %v3572_v49 = vld [vmem:[#allocation5 + $0x180] sm:$0xff] }
 0x2a2   :  { %3496 = vst [vmem:[#allocation7 + $0x128] sm:$0xff] %v3432_v40  ;;  %v3840_v52 = vadd.f32 %v6467_v43, %v3764_v7  ;;  %v4388_v36 = vadd.f32 %v3284_v33, %v1849_v17  ;;  %v1857_v41 = vpop.f32.mrb[40].mxu1  ;;  %v3708_v40 = vmul.f32 %v6459_v55, %v3633_v26  ;;  %v3635_v7 = vadd.f32 %v3571_v19, %v6453_v60 }
 0x2a3   :  { %3903 = vst [vmem:[#allocation8 + $0x120] sm:$0xff] %v3839_v58  ;;  %v3433_v45 = vadd.f32 %v4387_v42, %v6448_v59  ;;  %v3765_v5 = vmul.f32 %v4387_v42, %v3701_v50  ;;  %v1859_v47 = vpop.f32.mrb[41].mxu1  ;;  %v3573_v58 = vld [vmem:[#allocation5 + $0x188] sm:$0xff] }
 0x2a4   :  { %3904 = vst [vmem:[#allocation8 + $0x128] sm:$0xff] %v3840_v52  ;;  %v3434_v20 = vadd.f32 %v4388_v36, %v6453_v60  ;;  %v3766_v6 = vmul.f32 %v4388_v36, %v3702_v37  ;;  %v3290_v27 = vpop.f32.mrb[40].mxu0  ;;  %v3709_v52 = vmul.f32 %v6456_v1, %v3634_v53  ;;  %v3636_v36 = vadd.f32 %v3572_v49, %v6448_v59 }
 0x2a5   :  { %3497 = vst [vmem:[#allocation7 + $0x130] sm:$0xff] %v3433_v45  ;;  %v3841_v3 = vadd.f32 %v6465_v12, %v3765_v5  ;;  %v4389_v39 = vadd.f32 %v3290_v27, %v1857_v41  ;;  %v3292_v13 = vpop.f32.mrb[41].mxu0  ;;  %v3574_v41 = vld [vmem:[#allocation5 + $0x190] sm:$0xff] }
 0x2a6   :  { %3498 = vst [vmem:[#allocation7 + $0x138] sm:$0xff] %v3434_v20  ;;  %v3842_v0 = vadd.f32 %v6467_v43, %v3766_v6  ;;  %v4390_v25 = vadd.f32 %v3292_v13, %v1859_v47  ;;  %v1867_v28 = vpop.f32.mrb[42].mxu1  ;;  %v3710_v20 = vmul.f32 %v6459_v55, %v3635_v7  ;;  %v3637_v6 = vadd.f32 %v3573_v58, %v6453_v60 }
 0x2a7   :  { %3905 = vst [vmem:[#allocation8 + $0x130] sm:$0xff] %v3841_v3  ;;  %v3435_v63 = vadd.f32 %v4389_v39, %v6448_v59  ;;  %v3767_v32 = vmul.f32 %v4389_v39, %v3703_v14  ;;  %v1869_v35 = vpop.f32.mrb[43].mxu1  ;;  %v3575_v3 = vld [vmem:[#allocation5 + $0x198] sm:$0xff] }
 0x2a8   :  { %3906 = vst [vmem:[#allocation8 + $0x138] sm:$0xff] %v3842_v0  ;;  %v3436_v11 = vadd.f32 %v4390_v25, %v6453_v60  ;;  %v3768_v18 = vmul.f32 %v4390_v25, %v3704_v16  ;;  %v3298_v57 = vpop.f32.mrb[42].mxu0  ;;  %v3711_v0 = vmul.f32 %v6456_v1, %v3636_v36  ;;  %v3638_v25 = vadd.f32 %v3574_v41, %v6448_v59 }
 0x2a9   :  { %3499 = vst [vmem:[#allocation7 + $0x140] sm:$0xff] %v3435_v63  ;;  %v3843_v24 = vadd.f32 %v6465_v12, %v3767_v32  ;;  %v4391_v38 = vadd.f32 %v3298_v57, %v1867_v28  ;;  %v3300_v56 = vpop.f32.mrb[43].mxu0  ;;  %v3576_v28 = vld [vmem:[#allocation5 + $0x1a0] sm:$0xff] }
 0x2aa   :  { %3500 = vst [vmem:[#allocation7 + $0x148] sm:$0xff] %v3436_v11  ;;  %v3844_v9 = vadd.f32 %v6467_v43, %v3768_v18  ;;  %v4392_v2 = vadd.f32 %v3300_v56, %v1869_v35  ;;  %v1877_v50 = vpop.f32.mrb[44].mxu1  ;;  %v3712_v11 = vmul.f32 %v6459_v55, %v3637_v6  ;;  %v3639_v18 = vadd.f32 %v3575_v3, %v6453_v60 }
 0x2ab   :  { %3907 = vst [vmem:[#allocation8 + $0x140] sm:$0xff] %v3843_v24  ;;  %v3437_v48 = vadd.f32 %v4391_v38, %v6448_v59  ;;  %v3769_v51 = vmul.f32 %v4391_v38, %v3705_v8  ;;  %v1879_v31 = vpop.f32.mrb[45].mxu1  ;;  %v3577_v24 = vld [vmem:[#allocation5 + $0x1a8] sm:$0xff] }
 0x2ac   :  { %3908 = vst [vmem:[#allocation8 + $0x148] sm:$0xff] %v3844_v9  ;;  %v3438_v29 = vadd.f32 %v4392_v2, %v6453_v60  ;;  %v3770_v15 = vmul.f32 %v4392_v2, %v3706_v30  ;;  %v3306_v34 = vpop.f32.mrb[44].mxu0  ;;  %v3713_v9 = vmul.f32 %v6456_v1, %v3638_v25  ;;  %v3640_v2 = vadd.f32 %v3576_v28, %v6448_v59 }
 0x2ad   :  { %3501 = vst [vmem:[#allocation7 + $0x150] sm:$0xff] %v3437_v48  ;;  %v3845_v22 = vadd.f32 %v6465_v12, %v3769_v51  ;;  %v4393_v37 = vadd.f32 %v3306_v34, %v1877_v50  ;;  %v3308_v10 = vpop.f32.mrb[45].mxu0  ;;  %v3578_v50 = vld [vmem:[#allocation5 + $0x1b0] sm:$0xff] }
 0x2ae   :  { %3502 = vst [vmem:[#allocation7 + $0x158] sm:$0xff] %v3438_v29  ;;  %v3846_v42 = vadd.f32 %v6467_v43, %v3770_v15  ;;  %v4394_v17 = vadd.f32 %v3308_v10, %v1879_v31  ;;  %v1887_v14 = vpop.f32.mrb[46].mxu1  ;;  %v3714_v29 = vmul.f32 %v6459_v55, %v3639_v18  ;;  %v3641_v15 = vadd.f32 %v3577_v24, %v6453_v60 }
 0x2af   :  { %3909 = vst [vmem:[#allocation8 + $0x150] sm:$0xff] %v3845_v22  ;;  %v3439_v33 = vadd.f32 %v4393_v37, %v6448_v59  ;;  %v3771_v54 = vmul.f32 %v4393_v37, %v3707_v61  ;;  %v1889_v44 = vpop.f32.mrb[47].mxu1  ;;  %v3579_v22 = vld [vmem:[#allocation5 + $0x1b8] sm:$0xff] }
 0x2b0   :  { %3910 = vst [vmem:[#allocation8 + $0x158] sm:$0xff] %v3846_v42  ;;  %v3440_v45 = vadd.f32 %v4394_v17, %v6453_v60  ;;  %v3772_v5 = vmul.f32 %v4394_v17, %v3708_v40  ;;  %v3314_v21 = vpop.f32.mrb[46].mxu0  ;;  %v3715_v42 = vmul.f32 %v6456_v1, %v3640_v2  ;;  %v3642_v17 = vadd.f32 %v3578_v50, %v6448_v59 }
 0x2b1   :  { %3503 = vst [vmem:[#allocation7 + $0x160] sm:$0xff] %v3439_v33  ;;  %v3847_v27 = vadd.f32 %v6465_v12, %v3771_v54  ;;  %v4395_v16 = vadd.f32 %v3314_v21, %v1887_v14  ;;  %v3316_v4 = vpop.f32.mrb[47].mxu0  ;;  %v3580_v14 = vld [vmem:[#allocation5 + $0x1c0] sm:$0xff] }
 0x2b2   :  { %3504 = vst [vmem:[#allocation7 + $0x168] sm:$0xff] %v3440_v45  ;;  %v3848_v39 = vadd.f32 %v6467_v43, %v3772_v5  ;;  %v4396_v47 = vadd.f32 %v3316_v4, %v1889_v44  ;;  %v1897_v8 = vpop.f32.mrb[48].mxu1  ;;  %v3716_v45 = vmul.f32 %v6459_v55, %v3641_v15  ;;  %v3643_v5 = vadd.f32 %v3579_v22, %v6453_v60 }
 0x2b3   :  { %3911 = vst [vmem:[#allocation8 + $0x160] sm:$0xff] %v3847_v27  ;;  %v3441_v13 = vadd.f32 %v4395_v16, %v6448_v59  ;;  %v3773_v62 = vmul.f32 %v4395_v16, %v3709_v52  ;;  %v1899_v26 = vpop.f32.mrb[49].mxu1  ;;  %v3581_v27 = vld [vmem:[#allocation5 + $0x1c8] sm:$0xff] }
 0x2b4   :  { %3912 = vst [vmem:[#allocation8 + $0x168] sm:$0xff] %v3848_v39  ;;  %v3442_v63 = vadd.f32 %v4396_v47, %v6453_v60  ;;  %v3774_v32 = vmul.f32 %v4396_v47, %v3710_v20  ;;  %v3322_v23 = vpop.f32.mrb[48].mxu0  ;;  %v3717_v39 = vmul.f32 %v6456_v1, %v3642_v17  ;;  %v3644_v47 = vadd.f32 %v3580_v14, %v6448_v59 }
 0x2b5   :  { %3505 = vst [vmem:[#allocation7 + $0x170] sm:$0xff] %v3441_v13  ;;  %v3849_v57 = vadd.f32 %v6465_v12, %v3773_v62  ;;  %v4397_v30 = vadd.f32 %v3322_v23, %v1897_v8  ;;  %v3324_v46 = vpop.f32.mrb[49].mxu0  ;;  %v3582_v8 = vld [vmem:[#allocation5 + $0x1d0] sm:$0xff] }
 0x2b6   :  { %3506 = vst [vmem:[#allocation7 + $0x178] sm:$0xff] %v3442_v63  ;;  %v3850_v38 = vadd.f32 %v6467_v43, %v3774_v32  ;;  %v4398_v35 = vadd.f32 %v3324_v46, %v1899_v26  ;;  %v1907_v61 = vpop.f32.mrb[50].mxu1  ;;  %v3718_v63 = vmul.f32 %v6459_v55, %v3643_v5  ;;  %v3645_v32 = vadd.f32 %v3581_v27, %v6453_v60 }
 0x2b7   :  { %3913 = vst [vmem:[#allocation8 + $0x170] sm:$0xff] %v3849_v57  ;;  %v3443_v56 = vadd.f32 %v4397_v30, %v6448_v59  ;;  %v3775_v19 = vmul.f32 %v4397_v30, %v3711_v0  ;;  %v1909_v7 = vpop.f32.mrb[51].mxu1  ;;  %v3583_v57 = vld [vmem:[#allocation5 + $0x1d8] sm:$0xff] }
 0x2b8   :  { %3914 = vst [vmem:[#allocation8 + $0x178] sm:$0xff] %v3850_v38  ;;  %v3444_v48 = vadd.f32 %v4398_v35, %v6453_v60  ;;  %v3776_v51 = vmul.f32 %v4398_v35, %v3712_v11  ;;  %v3330_v53 = vpop.f32.mrb[50].mxu0  ;;  %v3719_v38 = vmul.f32 %v6456_v1, %v3644_v47  ;;  %v3646_v35 = vadd.f32 %v3582_v8, %v6448_v59 }
 0x2b9   :  { %3507 = vst [vmem:[#allocation7 + $0x180] sm:$0xff] %v3443_v56  ;;  %v3851_v34 = vadd.f32 %v6465_v12, %v3775_v19  ;;  %v4399_v40 = vadd.f32 %v3330_v53, %v1907_v61  ;;  %v3332_v49 = vpop.f32.mrb[51].mxu0  ;;  %v3584_v61 = vld [vmem:[#allocation5 + $0x1e0] sm:$0xff] }
 0x2ba   :  { %3508 = vst [vmem:[#allocation7 + $0x188] sm:$0xff] %v3444_v48  ;;  %v3852_v37 = vadd.f32 %v6467_v43, %v3776_v51  ;;  %v4400_v31 = vadd.f32 %v3332_v49, %v1909_v7  ;;  %v1917_v52 = vpop.f32.mrb[52].mxu1  ;;  %v3720_v48 = vmul.f32 %v6459_v55, %v3645_v32  ;;  %v3647_v51 = vadd.f32 %v3583_v57, %v6453_v60 }
 0x2bb   :  { %3915 = vst [vmem:[#allocation8 + $0x180] sm:$0xff] %v3851_v34  ;;  %v3445_v10 = vadd.f32 %v4399_v40, %v6448_v59  ;;  %v3777_v58 = vmul.f32 %v4399_v40, %v3713_v9  ;;  %v1919_v6 = vpop.f32.mrb[53].mxu1  ;;  %v3585_v34 = vld [vmem:[#allocation5 + $0x1e8] sm:$0xff] }
 0x2bc   :  { %3916 = vst [vmem:[#allocation8 + $0x188] sm:$0xff] %v3852_v37  ;;  %v3446_v33 = vadd.f32 %v4400_v31, %v6453_v60  ;;  %v3778_v54 = vmul.f32 %v4400_v31, %v3714_v29  ;;  %v3338_v36 = vpop.f32.mrb[52].mxu0  ;;  %v3721_v37 = vmul.f32 %v6456_v1, %v3646_v35  ;;  %v3648_v31 = vadd.f32 %v3584_v61, %v6448_v59 }
 0x2bd   :  { %3509 = vst [vmem:[#allocation7 + $0x190] sm:$0xff] %v3445_v10  ;;  %v3853_v21 = vadd.f32 %v6465_v12, %v3777_v58  ;;  %v4401_v20 = vadd.f32 %v3338_v36, %v1917_v52  ;;  %v3340_v41 = vpop.f32.mrb[53].mxu0  ;;  %v3586_v52 = vld [vmem:[#allocation5 + $0x1f0] sm:$0xff] }
 0x2be   :  { %3510 = vst [vmem:[#allocation7 + $0x198] sm:$0xff] %v3446_v33  ;;  %v3854_v16 = vadd.f32 %v6467_v43, %v3778_v54  ;;  %v4402_v44 = vadd.f32 %v3340_v41, %v1919_v6  ;;  %v1927_v0 = vpop.f32.mrb[54].mxu1  ;;  %v3722_v33 = vmul.f32 %v6459_v55, %v3647_v51  ;;  %v3649_v54 = vadd.f32 %v3585_v34, %v6453_v60 }
 0x2bf   :  { %3917 = vst [vmem:[#allocation8 + $0x190] sm:$0xff] %v3853_v21  ;;  %v3447_v4 = vadd.f32 %v4401_v20, %v6448_v59  ;;  %v3779_v3 = vmul.f32 %v4401_v20, %v3715_v42  ;;  %v1929_v18 = vpop.f32.mrb[55].mxu1  ;;  %v3587_v21 = vld [vmem:[#allocation5 + $0x1f8] sm:$0xff] }
 0x2c0   :  { %3918 = vst [vmem:[#allocation8 + $0x198] sm:$0xff] %v3854_v16  ;;  %v3448_v13 = vadd.f32 %v4402_v44, %v6453_v60  ;;  %v3780_v62 = vmul.f32 %v4402_v44, %v3716_v45  ;;  %v3346_v25 = vpop.f32.mrb[54].mxu0  ;;  %v3723_v16 = vmul.f32 %v6456_v1, %v3648_v31  ;;  %v3650_v44 = vadd.f32 %v3586_v52, %v6448_v59 }
 0x2c1   :  { %3511 = vst [vmem:[#allocation7 + $0x1a0] sm:$0xff] %v3447_v4  ;;  %v3855_v23 = vadd.f32 %v6465_v12, %v3779_v3  ;;  %v4403_v11 = vadd.f32 %v3346_v25, %v1927_v0  ;;  %v3348_v28 = vpop.f32.mrb[55].mxu0 }
 0x2c2   :  { %3512 = vst [vmem:[#allocation7 + $0x1a8] sm:$0xff] %v3448_v13  ;;  %v3856_v30 = vadd.f32 %v6467_v43, %v3780_v62  ;;  %v4404_v26 = vadd.f32 %v3348_v28, %v1929_v18  ;;  %v1937_v9 = vpop.f32.mrb[56].mxu1  ;;  %v3724_v13 = vmul.f32 %v6459_v55, %v3649_v54  ;;  %v3651_v62 = vadd.f32 %v3587_v21, %v6453_v60 }
 0x2c3   :  { %3919 = vst [vmem:[#allocation8 + $0x1a0] sm:$0xff] %v3855_v23  ;;  %v3449_v46 = vadd.f32 %v4403_v11, %v6448_v59  ;;  %v3781_v24 = vmul.f32 %v4403_v11, %v3717_v39  ;;  %v1939_v15 = vpop.f32.mrb[57].mxu1  ;;  %v3725_v28 = vmul.f32 %v6456_v1, %v3650_v44 }
 0x2c4   :  { %3920 = vst [vmem:[#allocation8 + $0x1a8] sm:$0xff] %v3856_v30  ;;  %v3450_v56 = vadd.f32 %v4404_v26, %v6453_v60  ;;  %v3782_v19 = vmul.f32 %v4404_v26, %v3718_v63  ;;  %v3354_v2 = vpop.f32.mrb[56].mxu0 }
 0x2c5   :  { %3513 = vst [vmem:[#allocation7 + $0x1b0] sm:$0xff] %v3449_v46  ;;  %v3857_v53 = vadd.f32 %v6465_v12, %v3781_v24  ;;  %v4405_v29 = vadd.f32 %v3354_v2, %v1937_v9  ;;  %v3356_v50 = vpop.f32.mrb[57].mxu0  ;;  %v3726_v24 = vmul.f32 %v6459_v55, %v3651_v62 }
 0x2c6   :  { %3514 = vst [vmem:[#allocation7 + $0x1b8] sm:$0xff] %v3450_v56  ;;  %v3858_v40 = vadd.f32 %v6467_v43, %v3782_v19  ;;  %v4406_v7 = vadd.f32 %v3356_v50, %v1939_v15  ;;  %v1947_v42 = vpop.f32.mrb[58].mxu1 }
 0x2c7   :  { %3921 = vst [vmem:[#allocation8 + $0x1b0] sm:$0xff] %v3857_v53  ;;  %v3451_v49 = vadd.f32 %v4405_v29, %v6448_v59  ;;  %v3783_v22 = vmul.f32 %v4405_v29, %v3719_v38  ;;  %v1949_v5 = vpop.f32.mrb[59].mxu1 }
 0x2c8   :  { %3922 = vst [vmem:[#allocation8 + $0x1b8] sm:$0xff] %v3858_v40  ;;  %v3452_v10 = vadd.f32 %v4406_v7, %v6453_v60  ;;  %v3784_v58 = vmul.f32 %v4406_v7, %v3720_v48  ;;  %v3362_v17 = vpop.f32.mrb[58].mxu0 }
 0x2c9   :  { %3515 = vst [vmem:[#allocation7 + $0x1c0] sm:$0xff] %v3451_v49  ;;  %v3859_v36 = vadd.f32 %v6465_v12, %v3783_v22  ;;  %v4407_v45 = vadd.f32 %v3362_v17, %v1947_v42  ;;  %v3364_v14 = vpop.f32.mrb[59].mxu0 }
 0x2ca   :  { %3516 = vst [vmem:[#allocation7 + $0x1c8] sm:$0xff] %v3452_v10  ;;  %v3860_v20 = vadd.f32 %v6467_v43, %v3784_v58  ;;  %v4408_v6 = vadd.f32 %v3364_v14, %v1949_v5  ;;  %v1957_v39 = vpop.f32.mrb[60].mxu1 }
 0x2cb   :  { %3923 = vst [vmem:[#allocation8 + $0x1c0] sm:$0xff] %v3859_v36  ;;  %v3453_v41 = vadd.f32 %v4407_v45, %v6448_v59  ;;  %v3785_v27 = vmul.f32 %v4407_v45, %v3721_v37  ;;  %v1959_v63 = vpop.f32.mrb[61].mxu1 }
 0x2cc   :  { %3924 = vst [vmem:[#allocation8 + $0x1c8] sm:$0xff] %v3860_v20  ;;  %v3454_v4 = vadd.f32 %v4408_v6, %v6453_v60  ;;  %v3786_v3 = vmul.f32 %v4408_v6, %v3722_v33  ;;  %v3370_v47 = vpop.f32.mrb[60].mxu0 }
 0x2cd   :  { %3517 = vst [vmem:[#allocation7 + $0x1d0] sm:$0xff] %v3453_v41  ;;  %v3861_v0 = vadd.f32 %v6465_v12, %v3785_v27  ;;  %v4409_v25 = vadd.f32 %v3370_v47, %v1957_v39  ;;  %v3372_v32 = vpop.f32.mrb[61].mxu0 }
 0x2ce   :  { %3518 = vst [vmem:[#allocation7 + $0x1d8] sm:$0xff] %v3454_v4  ;;  %v3862_v8 = vadd.f32 %v6467_v43, %v3786_v3  ;;  %v4410_v23 = vadd.f32 %v3372_v32, %v1959_v63  ;;  %v1967_v26 = vpop.f32.mrb[62].mxu1 }
 0x2cf   :  { %3925 = vst [vmem:[#allocation8 + $0x1d0] sm:$0xff] %v3861_v0  ;;  %v3455_v11 = vadd.f32 %v4409_v25, %v6448_v59  ;;  %v3787_v18 = vmul.f32 %v4409_v25, %v3723_v16  ;;  %v1969_v56 = vpop.f32.mrb[63].mxu1 }
 0x2d0   :  { %3926 = vst [vmem:[#allocation8 + $0x1d8] sm:$0xff] %v3862_v8  ;;  %v3456_v57 = vadd.f32 %v4410_v23, %v6453_v60  ;;  %v3788_v30 = vmul.f32 %v4410_v23, %v3724_v13  ;;  %v3378_v46 = vpop.f32.mrb[62].mxu0 }
 0x2d1   :  { %3519 = vst [vmem:[#allocation7 + $0x1e0] sm:$0xff] %v3455_v11  ;;  %v3863_v38 = vadd.f32 %v6465_v12, %v3787_v18  ;;  %v4411_v35 = vadd.f32 %v3378_v46, %v1967_v26  ;;  %v3380_v19 = vpop.f32.mrb[63].mxu0 }
 0x2d2   :  { %3520 = vst [vmem:[#allocation7 + $0x1e8] sm:$0xff] %v3456_v57  ;;  %v3864_v9 = vadd.f32 %v6467_v43, %v3788_v30  ;;  %v4412_v1 = vadd.f32 %v3380_v19, %v1969_v56 }
 0x2d3   :  { %3927 = vst [vmem:[#allocation8 + $0x1e0] sm:$0xff] %v3863_v38  ;;  %v3457_v2 = vadd.f32 %v4411_v35, %v6448_v59  ;;  %v3789_v48 = vmul.f32 %v4411_v35, %v3725_v28 }
 0x2d4   :  { %3928 = vst [vmem:[#allocation8 + $0x1e8] sm:$0xff] %v3864_v9  ;;  %v3458_v55 = vadd.f32 %v4412_v1, %v6453_v60  ;;  %v3790_v51 = vmul.f32 %v4412_v1, %v3726_v24 }
 0x2d5   :  { %3521 = vst [vmem:[#allocation7 + $0x1f0] sm:$0xff] %v3457_v2  ;;  %v3865_v61 = vadd.f32 %v6465_v12, %v3789_v48 }
 0x2d6   :  { %3522 = vst [vmem:[#allocation7 + $0x1f8] sm:$0xff] %v3458_v55  ;;  %v3866_v53 = vadd.f32 %v6467_v43, %v3790_v51 }
 0x2d7   :  { %3929 = vst [vmem:[#allocation8 + $0x1f0] sm:$0xff] %v3865_v61 }
 0x2d8   :  { %4730 = shalt.err (!%p4727_p6)
}
 0x2d9   :  { %s4731_s26 = scalar_lea.hbm %s6760_s4, 8192 }
 0x2da   :  { %p4732_p7 = scmp.ne.s32.totalorder %s6760_s4, %s4731_s26  ;;  %p4735_p8 = scmp.lt.u32.totalorder %s4731_s26, %s6760_s4 }
 0x2dc   :  { %p4737_p9 = pnand %p4735_p8, %p4732_p7 }
 0x2de   :  { %4740 = shalt.err (!%p4737_p9)
}
 0x2df   :  { %3942 = dma.vmem_to_hbm [thread:$0]  %s3937_s3, 8192, %s6760_s4, [#allocation4], %s4772_s28, %s4772_s28, %s4773_s29   ;;  %3930 = vst [vmem:[#allocation8 + $0x1f8] sm:$0xff] %v3866_v53 }
 0x2e0   :  { %s4741_s10 = scalar_lea.vmem %s6719_s22, 8192  ;;  %p4746_p11 = scmp.lt.s32.totalorder %s6719_s22, %s6719_s22 }
 0x2e1   :  { %p4742_p10 = scmp.ne.s32.totalorder %s6719_s22, %s4741_s10  ;;  %p4747_p12 = scmp.lt.s32.totalorder %s4741_s10, %s4741_s10 }
 0x2e3   :  { %p4748_p13 = por %p4747_p12, %p4746_p11 }
 0x2e5   :  { %p4749_p0 = pnand %p4748_p13, %p4742_p10 }
 0x2e7   :  { %4752 = shalt.err (!%p4749_p0)
}
 0x2e8   :  { %s4753_s13 = scalar_lea.hbm %s6761_s5, 8192 }
 0x2e9   :  { %p4754_p1 = scmp.ne.s32.totalorder %s6761_s5, %s4753_s13  ;;  %p4757_p2 = scmp.lt.u32.totalorder %s4753_s13, %s6761_s5 }
 0x2eb   :  { %p4759_p3 = pnand %p4757_p2, %p4754_p1 }
 0x2ed   :  { %4762 = shalt.err (!%p4759_p3)
}
 0x2ee   :  { %3954 = dma.vmem_to_hbm [thread:$0]  %s6719_s22, 8192, %s6761_s5, [#allocation9], %s4772_s28, %s4772_s28, %s4773_s29  }
 0x2ef   :  { %4767 = dma.done.wait [#allocation4], 8192  }
 0x2f0   :  { %4768 = vsyncadd [#allocation4], 4294959104 }
 0x2f1   :  { %4769 = dma.done.wait [#allocation9], 8192  }
 0x2f2   :  { %4770 = vsyncadd [#allocation9], 4294959104 }
 0x2f3   :  { %3961 = vsyncpa [#allocation3], 1 }
 0x2f4   :  { %3962 = vsyncpa [#allocation6], 1 }
 0x2f5   :  { %3963 = vsyncpa [#allocation4], 1 }
 0x2f6   :  { %3964 = vsyncpa [#allocation9], 1 }

</bundles_post_ra>
